<compile_context>
chip_gen: v7x
topology: tpu7x:2x2x1
jax: 0.10.0
libtpu: 0.0.40
codegen_flags: <defaults>
</compile_context>

<pallas_src>
import functools
import math

import jax
import jax.numpy as jnp
from jax import lax
from jax.experimental import pallas as pl
from jax.experimental.pallas import tpu as pltpu

# ---- model hyperparameters (synthetic stand-in for the Mistral backbone) ----
D_MODEL = 32
N_HEADS = 4
HEAD_DIM = D_MODEL // N_HEADS
N_LAYERS = 2
D_FF = 64
VOCAB = 64
Z_DIM = 16
LORA_R = 4
LORA_SCALE = 0.5
EPS = 1e-6
NEG_INF = -1e9           # additive attention-mask bias (f32 scores => safe)
MASK_LOG = -1e30         # stands in for attention_mask.log().nan_to_num()
ATTN_SCALE = 1.0 / math.sqrt(HEAD_DIM)

OUT_PAD = 128            # packed output slab: lanes [0:64]=logits, [64:96]=hidden
MEAN_PAD = 128           # mean output padded to a full 128-lane vreg


# --------------------------- in-kernel helpers -------------------------------

def _rms(x, w):
    var = jnp.mean(x * x, axis=-1, keepdims=True)
    return x * lax.rsqrt(var + EPS) * w


def _softmax_lastdim(s):
    m = jnp.max(s, axis=-1, keepdims=True)
    p = jnp.exp(s - m)
    return p * pl.reciprocal(jnp.sum(p, axis=-1, keepdims=True), approx=True)


_DN_QK = (((1,), (1,)), ((), ()))      # contract last dims (q @ k^T)


def _layer_step(x, score_bias, ln1, wqkv, wo, ln2, wgu, down):
    """One fused transformer layer for a single batch row.

    x: (S, D) f32.  score_bias: (1, S) or (S, S) f32, pre-built (hoisted
    key-padding + causal bias), added once per head.
    """
    # --- attention block ---
    xn = _rms(x, ln1)
    qkv = jnp.dot(xn.astype(jnp.bfloat16), wqkv,
                  preferred_element_type=jnp.float32)                 # (S, 3D)
    qkv_bf = qkv.astype(jnp.bfloat16)                                 # one cast
    ctx_heads = []
    for h in range(N_HEADS):                                          # static unroll
        lo, hi = h * HEAD_DIM, (h + 1) * HEAD_DIM
        qh = qkv_bf[:, lo:hi]
        kh = qkv_bf[:, D_MODEL + lo:D_MODEL + hi]
        vh = qkv_bf[:, 2 * D_MODEL + lo:2 * D_MODEL + hi]
        s = lax.dot_general(qh, kh, _DN_QK,
                            preferred_element_type=jnp.float32) * ATTN_SCALE
        p = _softmax_lastdim(s + score_bias)
        ctx_heads.append(jnp.dot(p.astype(jnp.bfloat16), vh,
                                 preferred_element_type=jnp.float32))  # (S, Dh)
    ctx = jnp.concatenate(ctx_heads, axis=-1)                          # (S, D)
    attn_out = jnp.dot(ctx.astype(jnp.bfloat16), wo,
                       preferred_element_type=jnp.float32)             # 1 MXU push
    x = x + attn_out

    # --- SwiGLU MLP block ---
    xn2 = _rms(x, ln2)
    gu = jnp.dot(xn2.astype(jnp.bfloat16), wgu,
                 preferred_element_type=jnp.float32)                   # (S, 2*D_FF)
    gate = gu[:, :D_FF]
    up = gu[:, D_FF:]
    act = gate * jax.nn.sigmoid(gate) * up                             # f32 math
    mlp = jnp.dot(act.astype(jnp.bfloat16), down,
                  preferred_element_type=jnp.float32)
    return x + mlp


# --------------------------- fused forward kernel ----------------------------

def _fused_kernel(enc_x_ref, enc_bias_ref, noise_ref, dec_x_ref, dec_bias_ref,
                  ln1_ref, wqkv_enc_ref, wqkv_dec_ref, wo_ref, ln2_ref,
                  wgu_ref, down_ref, lnf_ref,
                  fw_ref, fb_ref, wet_ref, web_ref, wdt_ref, wdb_ref, lmh_ref,
                  out_ref, mean_ref, *, z_pos):
    """Whole VAERouter.forward for one batch row.  grid = (batch,)."""
    # ======================= encoder pass (bidirectional) ====================
    s_enc = enc_x_ref.shape[1]
    enc_bias = enc_bias_ref[0]                                         # (1, S_enc)
    x = enc_x_ref[0]                                                   # (S_enc, D)
    for l in range(N_LAYERS):                                          # static unroll
        x = _layer_step(x, enc_bias,
                        ln1_ref[l], wqkv_enc_ref[l], wo_ref[l],
                        ln2_ref[l], wgu_ref[l], down_ref[l])
    xf = _rms(x, lnf_ref[...])                                         # (S_enc, D)

    # VAEComponent.encode: scores = f(h) + log(mask); softmax over sequence;
    # computed in (1, S) row orientation (lane-dense, no transposes).
    xf_bf = xf.astype(jnp.bfloat16)
    scores = (lax.dot_general(fw_ref[...].astype(jnp.bfloat16), xf_bf, _DN_QK,
                              preferred_element_type=jnp.float32)
              + fb_ref[...])                                           # (1, S_enc)
    scores = scores + jnp.where(enc_bias >= -0.5, 0.0, MASK_LOG)       # valid <=> bias==0
    w_row = _softmax_lastdim(scores)                                   # (1, S_enc)
    pooled = jnp.dot(w_row.astype(jnp.bfloat16), xf_bf,
                     preferred_element_type=jnp.float32)               # (1, D)
    mean = (jnp.dot(pooled.astype(jnp.bfloat16), wet_ref[...],
                    preferred_element_type=jnp.float32) + web_ref[...])  # (1, Z)
    mean_ref[0] = jnp.concatenate(
        [mean, jnp.zeros((1, MEAN_PAD - Z_DIM), jnp.float32)], axis=-1)

    # ======================= sample + decoder pass (causal) ==================
    z = mean + noise_ref[0]                                            # tau = 1.0
    z_embed = (jnp.dot(z.astype(jnp.bfloat16), wdt_ref[...],
                       preferred_element_type=jnp.float32) + wdb_ref[...])  # (1, D)

    s_dec = dec_x_ref.shape[1]
    pos = lax.broadcasted_iota(jnp.int32, (s_dec, 1), 0)
    x = jnp.where(pos == z_pos, z_embed, dec_x_ref[0])                 # inject z row

    # hoisted causal + key-padding bias: built once per batch row.
    qi = lax.broadcasted_iota(jnp.int32, (s_dec, s_dec), 0)
    ki = lax.broadcasted_iota(jnp.int32, (s_dec, s_dec), 1)
    dec_bias = jnp.where(ki <= qi, 0.0, NEG_INF) + dec_bias_ref[0]     # (S, S)

    for l in range(N_LAYERS):                                          # static unroll
        x = _layer_step(x, dec_bias,
                        ln1_ref[l], wqkv_dec_ref[l], wo_ref[l],
                        ln2_ref[l], wgu_ref[l], down_ref[l])
    xf = _rms(x, lnf_ref[...])                                         # (S_dec, D)
    logits = jnp.dot(xf.astype(jnp.bfloat16), lmh_ref[...],
                     preferred_element_type=jnp.float32)               # (S_dec, VOCAB)
    # lane-dense 128-wide packed output: [logits | hidden | zero pad]
    out_ref[0] = jnp.concatenate(
        [logits, xf,
         jnp.zeros((s_dec, OUT_PAD - VOCAB - D_MODEL), jnp.float32)], axis=-1)


# --------------------------- BlockSpec helpers -------------------------------

def _per_batch(shape):
    nd = len(shape)
    return pl.BlockSpec(shape, lambda b, _nd=nd: (b,) + (0,) * (_nd - 1))


def _shared(shape):
    nd = len(shape)
    return pl.BlockSpec(shape, lambda b, _nd=nd: (0,) * _nd)


_COMPILER_PARAMS = pltpu.CompilerParams(dimension_semantics=("parallel",))


# --------------------------- parameters --------------------------------------

def init_params(key):
    def nrm(k, shape, scale):
        return jax.random.normal(k, shape, jnp.float32) * scale

    keys = iter(jax.random.split(key, 256))
    embed = nrm(next(keys), (VOCAB, D_MODEL), 0.02)
    lm_head = nrm(next(keys), (D_MODEL, VOCAB), 0.02)

    ln1, ln2, wo, wgu, down = [], [], [], [], []
    wqkv = {"encoder": [], "decoder": []}
    for _ in range(N_LAYERS):
        wq = nrm(next(keys), (D_MODEL, D_MODEL), 0.05)
        wk = nrm(next(keys), (D_MODEL, D_MODEL), 0.05)
        wv = nrm(next(keys), (D_MODEL, D_MODEL), 0.05)
        wo_l = nrm(next(keys), (D_MODEL, D_MODEL), 0.05)
        gate = nrm(next(keys), (D_MODEL, D_FF), 0.05)
        up = nrm(next(keys), (D_MODEL, D_FF), 0.05)
        down_l = nrm(next(keys), (D_FF, D_MODEL), 0.05)
        ln1.append(jnp.ones((1, D_MODEL), jnp.float32))
        ln2.append(jnp.ones((1, D_MODEL), jnp.float32))
        wo.append(wo_l)
        wgu.append(jnp.concatenate([gate, up], axis=1))
        down.append(down_l)
        for name in ("encoder", "decoder"):
            a_q = nrm(next(keys), (LORA_R, D_MODEL), 0.05)
            b_q = nrm(next(keys), (D_MODEL, LORA_R), 0.05)
            a_v = nrm(next(keys), (LORA_R, D_MODEL), 0.05)
            b_v = nrm(next(keys), (D_MODEL, LORA_R), 0.05)
            # torch LoRA merge (set_adapter): W_eff = W + scale * B @ A (stored transposed)
            wq_eff = wq + LORA_SCALE * (a_q.T @ b_q.T)
            wv_eff = wv + LORA_SCALE * (a_v.T @ b_v.T)
            wqkv[name].append(jnp.concatenate([wq_eff, wk, wv_eff], axis=1))

    # VAEComponent: w_e orthogonal columns, w_d.weight = w_e.weight.T
    q_mat, _ = jnp.linalg.qr(
        jax.random.normal(next(keys), (D_MODEL, Z_DIM), jnp.float32))

    return {
        "embed": embed,                                           # gather table (f32)
        "lm_head_t": lm_head.astype(jnp.bfloat16),                # (D, VOCAB)
        "ln_f": jnp.ones((1, D_MODEL), jnp.float32),
        "ln1": jnp.stack(ln1),                                    # (L, 1, D)
        "ln2": jnp.stack(ln2),                                    # (L, 1, D)
        "wqkv": {n: jnp.stack(w).astype(jnp.bfloat16) for n, w in wqkv.items()},
        "wo": jnp.stack(wo).astype(jnp.bfloat16),                 # (L, D, D)
        "wgu": jnp.stack(wgu).astype(jnp.bfloat16),               # (L, D, 2*D_FF)
        "down": jnp.stack(down).astype(jnp.bfloat16),             # (L, D_FF, D)
        "vae": {
            "f_w": nrm(next(keys), (1, D_MODEL), 0.05),
            "f_b": jnp.zeros((1, 1), jnp.float32),
            "w_e_t": q_mat.astype(jnp.bfloat16),                  # (D, Z)
            "w_e_b": jnp.zeros((1, Z_DIM), jnp.float32),
            "w_d_t": q_mat.T.astype(jnp.bfloat16),                # (Z, D)
            "w_d_b": jnp.zeros((1, D_MODEL), jnp.float32),
        },
    }


# --------------------------- forward (glue + 1 fused kernel) ------------------

def input_ids_to_embeds(params, input_ids):
    # one_hot(ids) @ embed_weight  ==  row gather
    # TODO(synk): the gather + [prefix|z|target] concat could also be moved
    # in-kernel via scalar-prefetched ids; kept in the (jitted) wrapper here.
    return jnp.take(params["embed"], input_ids, axis=0)


def vae_forward(params, embed_ids, embed_mask, target_ids, target_mask,
                decoder_prefix_ids, decoder_prefix_mask, noise):
    b, s_enc = embed_ids.shape
    d = D_MODEL

    # encoder inputs ('encoder' adapter, causal mask disabled)
    enc_x0 = input_ids_to_embeds(params, embed_ids)
    enc_bias = jnp.where(embed_mask > 0, 0.0, NEG_INF).astype(jnp.float32)
    enc_bias = enc_bias.reshape(b, 1, s_enc)

    # decoder inputs ('decoder' adapter, causal): sequence = [prefix, z, target],
    # padded up to a multiple of 16 rows (pad rows masked via key-padding bias).
    prefix_embeds = input_ids_to_embeds(params, decoder_prefix_ids)
    target_embeds = input_ids_to_embeds(params, target_ids)
    z_pos = decoder_prefix_ids.shape[1]
    s_dec = z_pos + 1 + target_ids.shape[1]
    s_pad = ((s_dec + 15) // 16) * 16
    dec_x0 = jnp.concatenate(
        [prefix_embeds,
         jnp.zeros((b, 1, d), jnp.float32),              # z row filled in-kernel
         target_embeds,
         jnp.zeros((b, s_pad - s_dec, d), jnp.float32)], axis=1)
    dec_mask = jnp.concatenate(
        [decoder_prefix_mask.astype(jnp.float32),
         jnp.ones((b, 1), jnp.float32),
         target_mask.astype(jnp.float32),
         jnp.zeros((b, s_pad - s_dec), jnp.float32)], axis=1)
    dec_bias = jnp.where(dec_mask > 0, 0.0, NEG_INF).astype(jnp.float32)
    dec_bias = dec_bias.reshape(b, 1, s_pad)
    noise3 = noise.reshape(b, 1, Z_DIM)

    out_slab, mean_pad = pl.pallas_call(
        functools.partial(_fused_kernel, z_pos=z_pos),
        out_shape=(jax.ShapeDtypeStruct((b, s_pad, OUT_PAD), jnp.float32),
                   jax.ShapeDtypeStruct((b, 1, MEAN_PAD), jnp.float32)),
        grid=(b,),
        in_specs=[
            _per_batch((1, s_enc, d)),         # encoder input embeds
            _per_batch((1, 1, s_enc)),         # encoder key-padding bias
            _per_batch((1, 1, Z_DIM)),         # noise (z = mean + noise)
            _per_batch((1, s_pad, d)),         # decoder input embeds (padded)
            _per_batch((1, 1, s_pad)),         # decoder key-padding bias
            _shared((N_LAYERS, 1, d)),         # ln1
            _shared((N_LAYERS, d, 3 * d)),     # fused qkv ('encoder', LoRA merged)
            _shared((N_LAYERS, d, 3 * d)),     # fused qkv ('decoder', LoRA merged)
            _shared((N_LAYERS, d, d)),         # out proj
            _shared((N_LAYERS, 1, d)),         # ln2
            _shared((N_LAYERS, d, 2 * D_FF)),  # fused gate|up
            _shared((N_LAYERS, D_FF, d)),      # down proj
            _shared((1, d)),                   # final norm
            _shared((1, d)),                   # vae f.weight
            _shared((1, 1)),                   # vae f.bias
            _shared((d, Z_DIM)),               # vae w_e.weight^T
            _shared((1, Z_DIM)),               # vae w_e.bias
            _shared((Z_DIM, d)),               # vae w_d.weight^T
            _shared((1, d)),                   # vae w_d.bias
            _shared((d, VOCAB)),               # lm_head
        ],
        out_specs=(_per_batch((1, s_pad, OUT_PAD)),
                   _per_batch((1, 1, MEAN_PAD))),
        compiler_params=_COMPILER_PARAMS,
    )(enc_x0, enc_bias, noise3, dec_x0, dec_bias,
      params["ln1"], params["wqkv"]["encoder"], params["wqkv"]["decoder"],
      params["wo"], params["ln2"], params["wgu"], params["down"],
      params["ln_f"], params["vae"]["f_w"], params["vae"]["f_b"],
      params["vae"]["w_e_t"], params["vae"]["w_e_b"],
      params["vae"]["w_d_t"], params["vae"]["w_d_b"], params["lm_head_t"])

    logits = out_slab[:, :s_dec, :VOCAB]
    hidden = out_slab[:, :s_dec, VOCAB:VOCAB + D_MODEL]
    mean = mean_pad[:, 0, :Z_DIM]
    return logits, hidden, mean


# TODO(synk): generate()/generate_cfg() (autoregressive loops with KV cache +
# gumbel argmax) and the HF/PEFT checkpoint save/load machinery are not translated.

if __name__ == "__main__":
    key = jax.random.PRNGKey(0)
    k_params, k_emb, k_tgt, k_pref, k_noise = jax.random.split(key, 5)
    params = init_params(k_params)

    B, S_EMB, S_TGT, S_PREF = 2, 8, 8, 4
    embed_ids = jax.random.randint(k_emb, (B, S_EMB), 0, VOCAB, dtype=jnp.int32)
    target_ids = jax.random.randint(k_tgt, (B, S_TGT), 0, VOCAB, dtype=jnp.int32)
    decoder_prefix_ids = jax.random.randint(k_pref, (B, S_PREF), 0, VOCAB, dtype=jnp.int32)
    embed_mask = jnp.array([[1] * S_EMB, [1] * (S_EMB - 2) + [0, 0]], dtype=jnp.int32)
    target_mask = jnp.array([[1] * S_TGT, [1] * (S_TGT - 1) + [0]], dtype=jnp.int32)
    decoder_prefix_mask = jnp.ones((B, S_PREF), dtype=jnp.int32)
    noise = jax.random.normal(k_noise, (B, Z_DIM), jnp.float32)      # tau = 1.0

    fwd = jax.jit(vae_forward)
    logits, hidden, mean = fwd(params, embed_ids, embed_mask, target_ids,
                               target_mask, decoder_prefix_ids,
                               decoder_prefix_mask, noise)
    jax.block_until_ready((logits, hidden, mean))

    S_DEC = S_PREF + 1 + S_TGT
    assert logits.shape == (B, S_DEC, VOCAB)
    assert hidden.shape == (B, S_DEC, D_MODEL)
    assert mean.shape == (B, Z_DIM)
    assert bool(jnp.all(jnp.isfinite(logits))) and bool(jnp.all(jnp.isfinite(mean)))
    assert bool(jnp.all(jnp.isfinite(hidden)))
    print("KERNEL_OK")
</pallas_src>

<mosaic_0001>
module attributes {stable_mosaic.version = 11 : i64} {
  func.func @_fused_kernel(%arg0: i32, %arg1: memref<1x8x32xf32, #tpu.memory_space<vmem>>, %arg2: memref<1x1x8xf32, #tpu.memory_space<vmem>>, %arg3: memref<1x1x16xf32, #tpu.memory_space<vmem>>, %arg4: memref<1x16x32xf32, #tpu.memory_space<vmem>>, %arg5: memref<1x1x16xf32, #tpu.memory_space<vmem>>, %arg6: memref<2x1x32xf32, #tpu.memory_space<vmem>>, %arg7: memref<2x32x96xbf16, #tpu.memory_space<vmem>>, %arg8: memref<2x32x96xbf16, #tpu.memory_space<vmem>>, %arg9: memref<2x32x32xbf16, #tpu.memory_space<vmem>>, %arg10: memref<2x1x32xf32, #tpu.memory_space<vmem>>, %arg11: memref<2x32x128xbf16, #tpu.memory_space<vmem>>, %arg12: memref<2x64x32xbf16, #tpu.memory_space<vmem>>, %arg13: memref<1x32xf32, #tpu.memory_space<vmem>>, %arg14: memref<1x32xf32, #tpu.memory_space<vmem>>, %arg15: memref<1x1xf32, #tpu.memory_space<vmem>>, %arg16: memref<32x16xbf16, #tpu.memory_space<vmem>>, %arg17: memref<1x16xf32, #tpu.memory_space<vmem>>, %arg18: memref<16x32xbf16, #tpu.memory_space<vmem>>, %arg19: memref<1x32xf32, #tpu.memory_space<vmem>>, %arg20: memref<32x64xbf16, #tpu.memory_space<vmem>>, %arg21: memref<1x16x128xf32, #tpu.memory_space<vmem>>, %arg22: memref<1x1x128xf32, #tpu.memory_space<vmem>>) attributes {dimension_semantics = [#tpu.dimension_semantics<parallel>], iteration_bounds = array<i64: 2>, scalar_prefetch = 0 : i64, scratch_operands = 0 : i64, tpu.core_type = #tpu.core_type<tc>, window_params = [{transform_indices = @transform_0, window_bounds = array<i64: 1, 8, 32>}, {transform_indices = @transform_1, window_bounds = array<i64: 1, 1, 8>}, {transform_indices = @transform_2, window_bounds = array<i64: 1, 1, 16>}, {transform_indices = @transform_3, window_bounds = array<i64: 1, 16, 32>}, {transform_indices = @transform_4, window_bounds = array<i64: 1, 1, 16>}, {pipeline_mode = #tpu.pipeline_mode<synchronous>, transform_indices = @transform_5, window_bounds = array<i64: 2, 1, 32>}, {pipeline_mode = #tpu.pipeline_mode<synchronous>, transform_indices = @transform_6, window_bounds = array<i64: 2, 32, 96>}, {pipeline_mode = #tpu.pipeline_mode<synchronous>, transform_indices = @transform_7, window_bounds = array<i64: 2, 32, 96>}, {pipeline_mode = #tpu.pipeline_mode<synchronous>, transform_indices = @transform_8, window_bounds = array<i64: 2, 32, 32>}, {pipeline_mode = #tpu.pipeline_mode<synchronous>, transform_indices = @transform_9, window_bounds = array<i64: 2, 1, 32>}, {pipeline_mode = #tpu.pipeline_mode<synchronous>, transform_indices = @transform_10, window_bounds = array<i64: 2, 32, 128>}, {pipeline_mode = #tpu.pipeline_mode<synchronous>, transform_indices = @transform_11, window_bounds = array<i64: 2, 64, 32>}, {pipeline_mode = #tpu.pipeline_mode<synchronous>, transform_indices = @transform_12, window_bounds = array<i64: 1, 32>}, {pipeline_mode = #tpu.pipeline_mode<synchronous>, transform_indices = @transform_13, window_bounds = array<i64: 1, 32>}, {pipeline_mode = #tpu.pipeline_mode<synchronous>, transform_indices = @transform_14, window_bounds = array<i64: 1, 1>}, {pipeline_mode = #tpu.pipeline_mode<synchronous>, transform_indices = @transform_15, window_bounds = array<i64: 32, 16>}, {pipeline_mode = #tpu.pipeline_mode<synchronous>, transform_indices = @transform_16, window_bounds = array<i64: 1, 16>}, {pipeline_mode = #tpu.pipeline_mode<synchronous>, transform_indices = @transform_17, window_bounds = array<i64: 16, 32>}, {pipeline_mode = #tpu.pipeline_mode<synchronous>, transform_indices = @transform_18, window_bounds = array<i64: 1, 32>}, {pipeline_mode = #tpu.pipeline_mode<synchronous>, transform_indices = @transform_19, window_bounds = array<i64: 32, 64>}, {transform_indices = @transform_20, window_bounds = array<i64: 1, 16, 128>}, {transform_indices = @transform_21, window_bounds = array<i64: 1, 1, 128>}]} {
    %c0 = arith.constant 0 : index
    %c0_0 = arith.constant 0 : index
    %c0_1 = arith.constant 0 : index
    %0 = vector.load %arg2[%c0, %c0_0, %c0_1] : memref<1x1x8xf32, #tpu.memory_space<vmem>>, vector<1x1x8xf32>
    %1 = vector.shape_cast %0 : vector<1x1x8xf32> to vector<1x8xf32>
    %c0_2 = arith.constant 0 : index
    %c0_3 = arith.constant 0 : index
    %c0_4 = arith.constant 0 : index
    %2 = vector.load %arg1[%c0_2, %c0_3, %c0_4] : memref<1x8x32xf32, #tpu.memory_space<vmem>>, vector<1x8x32xf32>
    %3 = vector.shape_cast %2 : vector<1x8x32xf32> to vector<8x32xf32>
    %c0_5 = arith.constant 0 : index
    %c0_6 = arith.constant 0 : index
    %c0_7 = arith.constant 0 : index
    %4 = vector.load %arg6[%c0_5, %c0_6, %c0_7] : memref<2x1x32xf32, #tpu.memory_space<vmem>>, vector<1x1x32xf32>
    %5 = vector.shape_cast %4 : vector<1x1x32xf32> to vector<1x32xf32>
    %c0_8 = arith.constant 0 : index
    %c0_9 = arith.constant 0 : index
    %c0_10 = arith.constant 0 : index
    %6 = vector.load %arg7[%c0_8, %c0_9, %c0_10] : memref<2x32x96xbf16, #tpu.memory_space<vmem>>, vector<1x32x96xbf16>
    %7 = vector.shape_cast %6 : vector<1x32x96xbf16> to vector<32x96xbf16>
    %c0_11 = arith.constant 0 : index
    %c0_12 = arith.constant 0 : index
    %c0_13 = arith.constant 0 : index
    %8 = vector.load %arg9[%c0_11, %c0_12, %c0_13] : memref<2x32x32xbf16, #tpu.memory_space<vmem>>, vector<1x32x32xbf16>
    %9 = vector.shape_cast %8 : vector<1x32x32xbf16> to vector<32x32xbf16>
    %c0_14 = arith.constant 0 : index
    %c0_15 = arith.constant 0 : index
    %c0_16 = arith.constant 0 : index
    %10 = vector.load %arg10[%c0_14, %c0_15, %c0_16] : memref<2x1x32xf32, #tpu.memory_space<vmem>>, vector<1x1x32xf32>
    %11 = vector.shape_cast %10 : vector<1x1x32xf32> to vector<1x32xf32>
    %c0_17 = arith.constant 0 : index
    %c0_18 = arith.constant 0 : index
    %c0_19 = arith.constant 0 : index
    %12 = vector.load %arg11[%c0_17, %c0_18, %c0_19] : memref<2x32x128xbf16, #tpu.memory_space<vmem>>, vector<1x32x128xbf16>
    %13 = vector.shape_cast %12 : vector<1x32x128xbf16> to vector<32x128xbf16>
    %c0_20 = arith.constant 0 : index
    %c0_21 = arith.constant 0 : index
    %c0_22 = arith.constant 0 : index
    %14 = vector.load %arg12[%c0_20, %c0_21, %c0_22] : memref<2x64x32xbf16, #tpu.memory_space<vmem>>, vector<1x64x32xbf16>
    %15 = vector.shape_cast %14 : vector<1x64x32xbf16> to vector<64x32xbf16>
    %16 = arith.mulf %3, %3 : vector<8x32xf32>
    %cst = arith.constant dense<0.000000e+00> : vector<8xf32>
    %17 = vector.multi_reduction <add>, %16, %cst [1] : vector<8x32xf32> to vector<8xf32>
    %18 = vector.shape_cast %17 : vector<8xf32> to vector<8x1xf32>
    %cst_23 = arith.constant 3.200000e+01 : f32
    %19 = vector.broadcast %cst_23 : f32 to vector<8x1xf32>
    %20 = arith.divf %18, %19 : vector<8x1xf32>
    %cst_24 = arith.constant 9.99999997E-7 : f32
    %21 = vector.broadcast %cst_24 : f32 to vector<8x1xf32>
    %22 = arith.addf %20, %21 : vector<8x1xf32>
    %23 = math.rsqrt %22 : vector<8x1xf32>
    %24 = vector.broadcast %23 : vector<8x1xf32> to vector<8x32xf32>
    %25 = arith.mulf %3, %24 : vector<8x32xf32>
    %26 = vector.broadcast %5 : vector<1x32xf32> to vector<8x32xf32>
    %27 = arith.mulf %25, %26 : vector<8x32xf32>
    %28 = arith.truncf %27 : vector<8x32xf32> to vector<8x32xbf16>
    %cst_25 = arith.constant dense<0.000000e+00> : vector<8x96xf32>
    %29 = tpu.matmul %28, %7, %cst_25 {dimension_numbers = #tpu.dot_dimension_numbers<[1], [0], [0], [1], [0, 0, 1, 1], [], []>} : vector<8x32xbf16>, vector<32x96xbf16>, vector<8x96xf32> -> vector<8x96xf32>
    %30 = arith.truncf %29 : vector<8x96xf32> to vector<8x96xbf16>
    %31 = vector.extract_strided_slice %30 {offsets = [0, 0], sizes = [8, 8], strides = [1, 1]} : vector<8x96xbf16> to vector<8x8xbf16>
    %32 = vector.extract_strided_slice %30 {offsets = [0, 32], sizes = [8, 8], strides = [1, 1]} : vector<8x96xbf16> to vector<8x8xbf16>
    %33 = vector.extract_strided_slice %30 {offsets = [0, 64], sizes = [8, 8], strides = [1, 1]} : vector<8x96xbf16> to vector<8x8xbf16>
    %cst_26 = arith.constant dense<0.000000e+00> : vector<8x8xf32>
    %34 = tpu.matmul %31, %32, %cst_26 {dimension_numbers = #tpu.dot_dimension_numbers<[1], [1], [0], [0], [0, 0, 1, 0], [], []>} : vector<8x8xbf16>, vector<8x8xbf16>, vector<8x8xf32> -> vector<8x8xf32>
    %cst_27 = arith.constant 0.353553385 : f32
    %35 = vector.broadcast %cst_27 : f32 to vector<8x8xf32>
    %36 = arith.mulf %34, %35 : vector<8x8xf32>
    %37 = vector.broadcast %1 : vector<1x8xf32> to vector<8x8xf32>
    %38 = arith.addf %36, %37 : vector<8x8xf32>
    %cst_28 = arith.constant dense<0xFF800000> : vector<8xf32>
    %39 = vector.multi_reduction <maximumf>, %38, %cst_28 [1] : vector<8x8xf32> to vector<8xf32>
    %40 = vector.shape_cast %39 : vector<8xf32> to vector<8x1xf32>
    %41 = vector.broadcast %40 : vector<8x1xf32> to vector<8x8xf32>
    %42 = arith.subf %38, %41 : vector<8x8xf32>
    %43 = math.exp %42 : vector<8x8xf32>
    %cst_29 = arith.constant dense<0.000000e+00> : vector<8xf32>
    %44 = vector.multi_reduction <add>, %43, %cst_29 [1] : vector<8x8xf32> to vector<8xf32>
    %45 = vector.shape_cast %44 : vector<8xf32> to vector<8x1xf32>
    %46 = tpu.reciprocal %45 {approx = true} : vector<8x1xf32> -> vector<8x1xf32>
    %47 = vector.broadcast %46 : vector<8x1xf32> to vector<8x8xf32>
    %48 = arith.mulf %43, %47 : vector<8x8xf32>
    %49 = arith.truncf %48 : vector<8x8xf32> to vector<8x8xbf16>
    %cst_30 = arith.constant dense<0.000000e+00> : vector<8x8xf32>
    %50 = tpu.matmul %49, %33, %cst_30 {dimension_numbers = #tpu.dot_dimension_numbers<[1], [0], [0], [1], [0, 0, 1, 1], [], []>} : vector<8x8xbf16>, vector<8x8xbf16>, vector<8x8xf32> -> vector<8x8xf32>
    %51 = vector.extract_strided_slice %30 {offsets = [0, 8], sizes = [8, 8], strides = [1, 1]} : vector<8x96xbf16> to vector<8x8xbf16>
    %52 = vector.extract_strided_slice %30 {offsets = [0, 40], sizes = [8, 8], strides = [1, 1]} : vector<8x96xbf16> to vector<8x8xbf16>
    %53 = vector.extract_strided_slice %30 {offsets = [0, 72], sizes = [8, 8], strides = [1, 1]} : vector<8x96xbf16> to vector<8x8xbf16>
    %cst_31 = arith.constant dense<0.000000e+00> : vector<8x8xf32>
    %54 = tpu.matmul %51, %52, %cst_31 {dimension_numbers = #tpu.dot_dimension_numbers<[1], [1], [0], [0], [0, 0, 1, 0], [], []>} : vector<8x8xbf16>, vector<8x8xbf16>, vector<8x8xf32> -> vector<8x8xf32>
    %cst_32 = arith.constant 0.353553385 : f32
    %55 = vector.broadcast %cst_32 : f32 to vector<8x8xf32>
    %56 = arith.mulf %54, %55 : vector<8x8xf32>
    %57 = vector.broadcast %1 : vector<1x8xf32> to vector<8x8xf32>
    %58 = arith.addf %56, %57 : vector<8x8xf32>
    %cst_33 = arith.constant dense<0xFF800000> : vector<8xf32>
    %59 = vector.multi_reduction <maximumf>, %58, %cst_33 [1] : vector<8x8xf32> to vector<8xf32>
    %60 = vector.shape_cast %59 : vector<8xf32> to vector<8x1xf32>
    %61 = vector.broadcast %60 : vector<8x1xf32> to vector<8x8xf32>
    %62 = arith.subf %58, %61 : vector<8x8xf32>
    %63 = math.exp %62 : vector<8x8xf32>
    %cst_34 = arith.constant dense<0.000000e+00> : vector<8xf32>
    %64 = vector.multi_reduction <add>, %63, %cst_34 [1] : vector<8x8xf32> to vector<8xf32>
    %65 = vector.shape_cast %64 : vector<8xf32> to vector<8x1xf32>
    %66 = tpu.reciprocal %65 {approx = true} : vector<8x1xf32> -> vector<8x1xf32>
    %67 = vector.broadcast %66 : vector<8x1xf32> to vector<8x8xf32>
    %68 = arith.mulf %63, %67 : vector<8x8xf32>
    %69 = arith.truncf %68 : vector<8x8xf32> to vector<8x8xbf16>
    %cst_35 = arith.constant dense<0.000000e+00> : vector<8x8xf32>
    %70 = tpu.matmul %69, %53, %cst_35 {dimension_numbers = #tpu.dot_dimension_numbers<[1], [0], [0], [1], [0, 0, 1, 1], [], []>} : vector<8x8xbf16>, vector<8x8xbf16>, vector<8x8xf32> -> vector<8x8xf32>
    %71 = vector.extract_strided_slice %30 {offsets = [0, 16], sizes = [8, 8], strides = [1, 1]} : vector<8x96xbf16> to vector<8x8xbf16>
    %72 = vector.extract_strided_slice %30 {offsets = [0, 48], sizes = [8, 8], strides = [1, 1]} : vector<8x96xbf16> to vector<8x8xbf16>
    %73 = vector.extract_strided_slice %30 {offsets = [0, 80], sizes = [8, 8], strides = [1, 1]} : vector<8x96xbf16> to vector<8x8xbf16>
    %cst_36 = arith.constant dense<0.000000e+00> : vector<8x8xf32>
    %74 = tpu.matmul %71, %72, %cst_36 {dimension_numbers = #tpu.dot_dimension_numbers<[1], [1], [0], [0], [0, 0, 1, 0], [], []>} : vector<8x8xbf16>, vector<8x8xbf16>, vector<8x8xf32> -> vector<8x8xf32>
    %cst_37 = arith.constant 0.353553385 : f32
    %75 = vector.broadcast %cst_37 : f32 to vector<8x8xf32>
    %76 = arith.mulf %74, %75 : vector<8x8xf32>
    %77 = vector.broadcast %1 : vector<1x8xf32> to vector<8x8xf32>
    %78 = arith.addf %76, %77 : vector<8x8xf32>
    %cst_38 = arith.constant dense<0xFF800000> : vector<8xf32>
    %79 = vector.multi_reduction <maximumf>, %78, %cst_38 [1] : vector<8x8xf32> to vector<8xf32>
    %80 = vector.shape_cast %79 : vector<8xf32> to vector<8x1xf32>
    %81 = vector.broadcast %80 : vector<8x1xf32> to vector<8x8xf32>
    %82 = arith.subf %78, %81 : vector<8x8xf32>
    %83 = math.exp %82 : vector<8x8xf32>
    %cst_39 = arith.constant dense<0.000000e+00> : vector<8xf32>
    %84 = vector.multi_reduction <add>, %83, %cst_39 [1] : vector<8x8xf32> to vector<8xf32>
    %85 = vector.shape_cast %84 : vector<8xf32> to vector<8x1xf32>
    %86 = tpu.reciprocal %85 {approx = true} : vector<8x1xf32> -> vector<8x1xf32>
    %87 = vector.broadcast %86 : vector<8x1xf32> to vector<8x8xf32>
    %88 = arith.mulf %83, %87 : vector<8x8xf32>
    %89 = arith.truncf %88 : vector<8x8xf32> to vector<8x8xbf16>
    %cst_40 = arith.constant dense<0.000000e+00> : vector<8x8xf32>
    %90 = tpu.matmul %89, %73, %cst_40 {dimension_numbers = #tpu.dot_dimension_numbers<[1], [0], [0], [1], [0, 0, 1, 1], [], []>} : vector<8x8xbf16>, vector<8x8xbf16>, vector<8x8xf32> -> vector<8x8xf32>
    %91 = vector.extract_strided_slice %30 {offsets = [0, 24], sizes = [8, 8], strides = [1, 1]} : vector<8x96xbf16> to vector<8x8xbf16>
    %92 = vector.extract_strided_slice %30 {offsets = [0, 56], sizes = [8, 8], strides = [1, 1]} : vector<8x96xbf16> to vector<8x8xbf16>
    %93 = vector.extract_strided_slice %30 {offsets = [0, 88], sizes = [8, 8], strides = [1, 1]} : vector<8x96xbf16> to vector<8x8xbf16>
    %cst_41 = arith.constant dense<0.000000e+00> : vector<8x8xf32>
    %94 = tpu.matmul %91, %92, %cst_41 {dimension_numbers = #tpu.dot_dimension_numbers<[1], [1], [0], [0], [0, 0, 1, 0], [], []>} : vector<8x8xbf16>, vector<8x8xbf16>, vector<8x8xf32> -> vector<8x8xf32>
    %cst_42 = arith.constant 0.353553385 : f32
    %95 = vector.broadcast %cst_42 : f32 to vector<8x8xf32>
    %96 = arith.mulf %94, %95 : vector<8x8xf32>
    %97 = vector.broadcast %1 : vector<1x8xf32> to vector<8x8xf32>
    %98 = arith.addf %96, %97 : vector<8x8xf32>
    %cst_43 = arith.constant dense<0xFF800000> : vector<8xf32>
    %99 = vector.multi_reduction <maximumf>, %98, %cst_43 [1] : vector<8x8xf32> to vector<8xf32>
    %100 = vector.shape_cast %99 : vector<8xf32> to vector<8x1xf32>
    %101 = vector.broadcast %100 : vector<8x1xf32> to vector<8x8xf32>
    %102 = arith.subf %98, %101 : vector<8x8xf32>
    %103 = math.exp %102 : vector<8x8xf32>
    %cst_44 = arith.constant dense<0.000000e+00> : vector<8xf32>
    %104 = vector.multi_reduction <add>, %103, %cst_44 [1] : vector<8x8xf32> to vector<8xf32>
    %105 = vector.shape_cast %104 : vector<8xf32> to vector<8x1xf32>
    %106 = tpu.reciprocal %105 {approx = true} : vector<8x1xf32> -> vector<8x1xf32>
    %107 = vector.broadcast %106 : vector<8x1xf32> to vector<8x8xf32>
    %108 = arith.mulf %103, %107 : vector<8x8xf32>
    %109 = arith.truncf %108 : vector<8x8xf32> to vector<8x8xbf16>
    %cst_45 = arith.constant dense<0.000000e+00> : vector<8x8xf32>
    %110 = tpu.matmul %109, %93, %cst_45 {dimension_numbers = #tpu.dot_dimension_numbers<[1], [0], [0], [1], [0, 0, 1, 1], [], []>} : vector<8x8xbf16>, vector<8x8xbf16>, vector<8x8xf32> -> vector<8x8xf32>
    %111 = tpu.concatenate %50, %70, %90, %110 in 1 : vector<8x8xf32>, vector<8x8xf32>, vector<8x8xf32>, vector<8x8xf32> -> vector<8x32xf32>
    %112 = arith.truncf %111 : vector<8x32xf32> to vector<8x32xbf16>
    %cst_46 = arith.constant dense<0.000000e+00> : vector<8x32xf32>
    %113 = tpu.matmul %112, %9, %cst_46 {dimension_numbers = #tpu.dot_dimension_numbers<[1], [0], [0], [1], [0, 0, 1, 1], [], []>} : vector<8x32xbf16>, vector<32x32xbf16>, vector<8x32xf32> -> vector<8x32xf32>
    %114 = arith.addf %3, %113 : vector<8x32xf32>
    %115 = arith.mulf %114, %114 : vector<8x32xf32>
    %cst_47 = arith.constant dense<0.000000e+00> : vector<8xf32>
    %116 = vector.multi_reduction <add>, %115, %cst_47 [1] : vector<8x32xf32> to vector<8xf32>
    %117 = vector.shape_cast %116 : vector<8xf32> to vector<8x1xf32>
    %cst_48 = arith.constant 3.200000e+01 : f32
    %118 = vector.broadcast %cst_48 : f32 to vector<8x1xf32>
    %119 = arith.divf %117, %118 : vector<8x1xf32>
    %cst_49 = arith.constant 9.99999997E-7 : f32
    %120 = vector.broadcast %cst_49 : f32 to vector<8x1xf32>
    %121 = arith.addf %119, %120 : vector<8x1xf32>
    %122 = math.rsqrt %121 : vector<8x1xf32>
    %123 = vector.broadcast %122 : vector<8x1xf32> to vector<8x32xf32>
    %124 = arith.mulf %114, %123 : vector<8x32xf32>
    %125 = vector.broadcast %11 : vector<1x32xf32> to vector<8x32xf32>
    %126 = arith.mulf %124, %125 : vector<8x32xf32>
    %127 = arith.truncf %126 : vector<8x32xf32> to vector<8x32xbf16>
    %cst_50 = arith.constant dense<0.000000e+00> : vector<8x128xf32>
    %128 = tpu.matmul %127, %13, %cst_50 {dimension_numbers = #tpu.dot_dimension_numbers<[1], [0], [0], [1], [0, 0, 1, 1], [], []>} : vector<8x32xbf16>, vector<32x128xbf16>, vector<8x128xf32> -> vector<8x128xf32>
    %129 = vector.extract_strided_slice %128 {offsets = [0, 0], sizes = [8, 64], strides = [1, 1]} : vector<8x128xf32> to vector<8x64xf32>
    %130 = vector.extract_strided_slice %128 {offsets = [0, 64], sizes = [8, 64], strides = [1, 1]} : vector<8x128xf32> to vector<8x64xf32>
    %131 = arith.negf %129 : vector<8x64xf32>
    %132 = math.exp %131 : vector<8x64xf32>
    %cst_51 = arith.constant 1.000000e+00 : f32
    %133 = vector.broadcast %cst_51 : f32 to vector<8x64xf32>
    %134 = arith.addf %133, %132 : vector<8x64xf32>
    %135 = arith.divf %133, %134 : vector<8x64xf32>
    %136 = arith.mulf %129, %135 : vector<8x64xf32>
    %137 = arith.mulf %136, %130 : vector<8x64xf32>
    %138 = arith.truncf %137 : vector<8x64xf32> to vector<8x64xbf16>
    %cst_52 = arith.constant dense<0.000000e+00> : vector<8x32xf32>
    %139 = tpu.matmul %138, %15, %cst_52 {dimension_numbers = #tpu.dot_dimension_numbers<[1], [0], [0], [1], [0, 0, 1, 1], [], []>} : vector<8x64xbf16>, vector<64x32xbf16>, vector<8x32xf32> -> vector<8x32xf32>
    %140 = arith.addf %114, %139 : vector<8x32xf32>
    %c1 = arith.constant 1 : index
    %c0_53 = arith.constant 0 : index
    %c0_54 = arith.constant 0 : index
    %141 = vector.load %arg6[%c1, %c0_53, %c0_54] : memref<2x1x32xf32, #tpu.memory_space<vmem>>, vector<1x1x32xf32>
    %142 = vector.shape_cast %141 : vector<1x1x32xf32> to vector<1x32xf32>
    %c1_55 = arith.constant 1 : index
    %c0_56 = arith.constant 0 : index
    %c0_57 = arith.constant 0 : index
    %143 = vector.load %arg7[%c1_55, %c0_56, %c0_57] : memref<2x32x96xbf16, #tpu.memory_space<vmem>>, vector<1x32x96xbf16>
    %144 = vector.shape_cast %143 : vector<1x32x96xbf16> to vector<32x96xbf16>
    %c1_58 = arith.constant 1 : index
    %c0_59 = arith.constant 0 : index
    %c0_60 = arith.constant 0 : index
    %145 = vector.load %arg9[%c1_58, %c0_59, %c0_60] : memref<2x32x32xbf16, #tpu.memory_space<vmem>>, vector<1x32x32xbf16>
    %146 = vector.shape_cast %145 : vector<1x32x32xbf16> to vector<32x32xbf16>
    %c1_61 = arith.constant 1 : index
    %c0_62 = arith.constant 0 : index
    %c0_63 = arith.constant 0 : index
    %147 = vector.load %arg10[%c1_61, %c0_62, %c0_63] : memref<2x1x32xf32, #tpu.memory_space<vmem>>, vector<1x1x32xf32>
    %148 = vector.shape_cast %147 : vector<1x1x32xf32> to vector<1x32xf32>
    %c1_64 = arith.constant 1 : index
    %c0_65 = arith.constant 0 : index
    %c0_66 = arith.constant 0 : index
    %149 = vector.load %arg11[%c1_64, %c0_65, %c0_66] : memref<2x32x128xbf16, #tpu.memory_space<vmem>>, vector<1x32x128xbf16>
    %150 = vector.shape_cast %149 : vector<1x32x128xbf16> to vector<32x128xbf16>
    %c1_67 = arith.constant 1 : index
    %c0_68 = arith.constant 0 : index
    %c0_69 = arith.constant 0 : index
    %151 = vector.load %arg12[%c1_67, %c0_68, %c0_69] : memref<2x64x32xbf16, #tpu.memory_space<vmem>>, vector<1x64x32xbf16>
    %152 = vector.shape_cast %151 : vector<1x64x32xbf16> to vector<64x32xbf16>
    %153 = arith.mulf %140, %140 : vector<8x32xf32>
    %cst_70 = arith.constant dense<0.000000e+00> : vector<8xf32>
    %154 = vector.multi_reduction <add>, %153, %cst_70 [1] : vector<8x32xf32> to vector<8xf32>
    %155 = vector.shape_cast %154 : vector<8xf32> to vector<8x1xf32>
    %cst_71 = arith.constant 3.200000e+01 : f32
    %156 = vector.broadcast %cst_71 : f32 to vector<8x1xf32>
    %157 = arith.divf %155, %156 : vector<8x1xf32>
    %cst_72 = arith.constant 9.99999997E-7 : f32
    %158 = vector.broadcast %cst_72 : f32 to vector<8x1xf32>
    %159 = arith.addf %157, %158 : vector<8x1xf32>
    %160 = math.rsqrt %159 : vector<8x1xf32>
    %161 = vector.broadcast %160 : vector<8x1xf32> to vector<8x32xf32>
    %162 = arith.mulf %140, %161 : vector<8x32xf32>
    %163 = vector.broadcast %142 : vector<1x32xf32> to vector<8x32xf32>
    %164 = arith.mulf %162, %163 : vector<8x32xf32>
    %165 = arith.truncf %164 : vector<8x32xf32> to vector<8x32xbf16>
    %cst_73 = arith.constant dense<0.000000e+00> : vector<8x96xf32>
    %166 = tpu.matmul %165, %144, %cst_73 {dimension_numbers = #tpu.dot_dimension_numbers<[1], [0], [0], [1], [0, 0, 1, 1], [], []>} : vector<8x32xbf16>, vector<32x96xbf16>, vector<8x96xf32> -> vector<8x96xf32>
    %167 = arith.truncf %166 : vector<8x96xf32> to vector<8x96xbf16>
    %168 = vector.extract_strided_slice %167 {offsets = [0, 0], sizes = [8, 8], strides = [1, 1]} : vector<8x96xbf16> to vector<8x8xbf16>
    %169 = vector.extract_strided_slice %167 {offsets = [0, 32], sizes = [8, 8], strides = [1, 1]} : vector<8x96xbf16> to vector<8x8xbf16>
    %170 = vector.extract_strided_slice %167 {offsets = [0, 64], sizes = [8, 8], strides = [1, 1]} : vector<8x96xbf16> to vector<8x8xbf16>
    %cst_74 = arith.constant dense<0.000000e+00> : vector<8x8xf32>
    %171 = tpu.matmul %168, %169, %cst_74 {dimension_numbers = #tpu.dot_dimension_numbers<[1], [1], [0], [0], [0, 0, 1, 0], [], []>} : vector<8x8xbf16>, vector<8x8xbf16>, vector<8x8xf32> -> vector<8x8xf32>
    %cst_75 = arith.constant 0.353553385 : f32
    %172 = vector.broadcast %cst_75 : f32 to vector<8x8xf32>
    %173 = arith.mulf %171, %172 : vector<8x8xf32>
    %174 = vector.broadcast %1 : vector<1x8xf32> to vector<8x8xf32>
    %175 = arith.addf %173, %174 : vector<8x8xf32>
    %cst_76 = arith.constant dense<0xFF800000> : vector<8xf32>
    %176 = vector.multi_reduction <maximumf>, %175, %cst_76 [1] : vector<8x8xf32> to vector<8xf32>
    %177 = vector.shape_cast %176 : vector<8xf32> to vector<8x1xf32>
    %178 = vector.broadcast %177 : vector<8x1xf32> to vector<8x8xf32>
    %179 = arith.subf %175, %178 : vector<8x8xf32>
    %180 = math.exp %179 : vector<8x8xf32>
    %cst_77 = arith.constant dense<0.000000e+00> : vector<8xf32>
    %181 = vector.multi_reduction <add>, %180, %cst_77 [1] : vector<8x8xf32> to vector<8xf32>
    %182 = vector.shape_cast %181 : vector<8xf32> to vector<8x1xf32>
    %183 = tpu.reciprocal %182 {approx = true} : vector<8x1xf32> -> vector<8x1xf32>
    %184 = vector.broadcast %183 : vector<8x1xf32> to vector<8x8xf32>
    %185 = arith.mulf %180, %184 : vector<8x8xf32>
    %186 = arith.truncf %185 : vector<8x8xf32> to vector<8x8xbf16>
    %cst_78 = arith.constant dense<0.000000e+00> : vector<8x8xf32>
    %187 = tpu.matmul %186, %170, %cst_78 {dimension_numbers = #tpu.dot_dimension_numbers<[1], [0], [0], [1], [0, 0, 1, 1], [], []>} : vector<8x8xbf16>, vector<8x8xbf16>, vector<8x8xf32> -> vector<8x8xf32>
    %188 = vector.extract_strided_slice %167 {offsets = [0, 8], sizes = [8, 8], strides = [1, 1]} : vector<8x96xbf16> to vector<8x8xbf16>
    %189 = vector.extract_strided_slice %167 {offsets = [0, 40], sizes = [8, 8], strides = [1, 1]} : vector<8x96xbf16> to vector<8x8xbf16>
    %190 = vector.extract_strided_slice %167 {offsets = [0, 72], sizes = [8, 8], strides = [1, 1]} : vector<8x96xbf16> to vector<8x8xbf16>
    %cst_79 = arith.constant dense<0.000000e+00> : vector<8x8xf32>
    %191 = tpu.matmul %188, %189, %cst_79 {dimension_numbers = #tpu.dot_dimension_numbers<[1], [1], [0], [0], [0, 0, 1, 0], [], []>} : vector<8x8xbf16>, vector<8x8xbf16>, vector<8x8xf32> -> vector<8x8xf32>
    %cst_80 = arith.constant 0.353553385 : f32
    %192 = vector.broadcast %cst_80 : f32 to vector<8x8xf32>
    %193 = arith.mulf %191, %192 : vector<8x8xf32>
    %194 = vector.broadcast %1 : vector<1x8xf32> to vector<8x8xf32>
    %195 = arith.addf %193, %194 : vector<8x8xf32>
    %cst_81 = arith.constant dense<0xFF800000> : vector<8xf32>
    %196 = vector.multi_reduction <maximumf>, %195, %cst_81 [1] : vector<8x8xf32> to vector<8xf32>
    %197 = vector.shape_cast %196 : vector<8xf32> to vector<8x1xf32>
    %198 = vector.broadcast %197 : vector<8x1xf32> to vector<8x8xf32>
    %199 = arith.subf %195, %198 : vector<8x8xf32>
    %200 = math.exp %199 : vector<8x8xf32>
    %cst_82 = arith.constant dense<0.000000e+00> : vector<8xf32>
    %201 = vector.multi_reduction <add>, %200, %cst_82 [1] : vector<8x8xf32> to vector<8xf32>
    %202 = vector.shape_cast %201 : vector<8xf32> to vector<8x1xf32>
    %203 = tpu.reciprocal %202 {approx = true} : vector<8x1xf32> -> vector<8x1xf32>
    %204 = vector.broadcast %203 : vector<8x1xf32> to vector<8x8xf32>
    %205 = arith.mulf %200, %204 : vector<8x8xf32>
    %206 = arith.truncf %205 : vector<8x8xf32> to vector<8x8xbf16>
    %cst_83 = arith.constant dense<0.000000e+00> : vector<8x8xf32>
    %207 = tpu.matmul %206, %190, %cst_83 {dimension_numbers = #tpu.dot_dimension_numbers<[1], [0], [0], [1], [0, 0, 1, 1], [], []>} : vector<8x8xbf16>, vector<8x8xbf16>, vector<8x8xf32> -> vector<8x8xf32>
    %208 = vector.extract_strided_slice %167 {offsets = [0, 16], sizes = [8, 8], strides = [1, 1]} : vector<8x96xbf16> to vector<8x8xbf16>
    %209 = vector.extract_strided_slice %167 {offsets = [0, 48], sizes = [8, 8], strides = [1, 1]} : vector<8x96xbf16> to vector<8x8xbf16>
    %210 = vector.extract_strided_slice %167 {offsets = [0, 80], sizes = [8, 8], strides = [1, 1]} : vector<8x96xbf16> to vector<8x8xbf16>
    %cst_84 = arith.constant dense<0.000000e+00> : vector<8x8xf32>
    %211 = tpu.matmul %208, %209, %cst_84 {dimension_numbers = #tpu.dot_dimension_numbers<[1], [1], [0], [0], [0, 0, 1, 0], [], []>} : vector<8x8xbf16>, vector<8x8xbf16>, vector<8x8xf32> -> vector<8x8xf32>
    %cst_85 = arith.constant 0.353553385 : f32
    %212 = vector.broadcast %cst_85 : f32 to vector<8x8xf32>
    %213 = arith.mulf %211, %212 : vector<8x8xf32>
    %214 = vector.broadcast %1 : vector<1x8xf32> to vector<8x8xf32>
    %215 = arith.addf %213, %214 : vector<8x8xf32>
    %cst_86 = arith.constant dense<0xFF800000> : vector<8xf32>
    %216 = vector.multi_reduction <maximumf>, %215, %cst_86 [1] : vector<8x8xf32> to vector<8xf32>
    %217 = vector.shape_cast %216 : vector<8xf32> to vector<8x1xf32>
    %218 = vector.broadcast %217 : vector<8x1xf32> to vector<8x8xf32>
    %219 = arith.subf %215, %218 : vector<8x8xf32>
    %220 = math.exp %219 : vector<8x8xf32>
    %cst_87 = arith.constant dense<0.000000e+00> : vector<8xf32>
    %221 = vector.multi_reduction <add>, %220, %cst_87 [1] : vector<8x8xf32> to vector<8xf32>
    %222 = vector.shape_cast %221 : vector<8xf32> to vector<8x1xf32>
    %223 = tpu.reciprocal %222 {approx = true} : vector<8x1xf32> -> vector<8x1xf32>
    %224 = vector.broadcast %223 : vector<8x1xf32> to vector<8x8xf32>
    %225 = arith.mulf %220, %224 : vector<8x8xf32>
    %226 = arith.truncf %225 : vector<8x8xf32> to vector<8x8xbf16>
    %cst_88 = arith.constant dense<0.000000e+00> : vector<8x8xf32>
    %227 = tpu.matmul %226, %210, %cst_88 {dimension_numbers = #tpu.dot_dimension_numbers<[1], [0], [0], [1], [0, 0, 1, 1], [], []>} : vector<8x8xbf16>, vector<8x8xbf16>, vector<8x8xf32> -> vector<8x8xf32>
    %228 = vector.extract_strided_slice %167 {offsets = [0, 24], sizes = [8, 8], strides = [1, 1]} : vector<8x96xbf16> to vector<8x8xbf16>
    %229 = vector.extract_strided_slice %167 {offsets = [0, 56], sizes = [8, 8], strides = [1, 1]} : vector<8x96xbf16> to vector<8x8xbf16>
    %230 = vector.extract_strided_slice %167 {offsets = [0, 88], sizes = [8, 8], strides = [1, 1]} : vector<8x96xbf16> to vector<8x8xbf16>
    %cst_89 = arith.constant dense<0.000000e+00> : vector<8x8xf32>
    %231 = tpu.matmul %228, %229, %cst_89 {dimension_numbers = #tpu.dot_dimension_numbers<[1], [1], [0], [0], [0, 0, 1, 0], [], []>} : vector<8x8xbf16>, vector<8x8xbf16>, vector<8x8xf32> -> vector<8x8xf32>
    %cst_90 = arith.constant 0.353553385 : f32
    %232 = vector.broadcast %cst_90 : f32 to vector<8x8xf32>
    %233 = arith.mulf %231, %232 : vector<8x8xf32>
    %234 = vector.broadcast %1 : vector<1x8xf32> to vector<8x8xf32>
    %235 = arith.addf %233, %234 : vector<8x8xf32>
    %cst_91 = arith.constant dense<0xFF800000> : vector<8xf32>
    %236 = vector.multi_reduction <maximumf>, %235, %cst_91 [1] : vector<8x8xf32> to vector<8xf32>
    %237 = vector.shape_cast %236 : vector<8xf32> to vector<8x1xf32>
    %238 = vector.broadcast %237 : vector<8x1xf32> to vector<8x8xf32>
    %239 = arith.subf %235, %238 : vector<8x8xf32>
    %240 = math.exp %239 : vector<8x8xf32>
    %cst_92 = arith.constant dense<0.000000e+00> : vector<8xf32>
    %241 = vector.multi_reduction <add>, %240, %cst_92 [1] : vector<8x8xf32> to vector<8xf32>
    %242 = vector.shape_cast %241 : vector<8xf32> to vector<8x1xf32>
    %243 = tpu.reciprocal %242 {approx = true} : vector<8x1xf32> -> vector<8x1xf32>
    %244 = vector.broadcast %243 : vector<8x1xf32> to vector<8x8xf32>
    %245 = arith.mulf %240, %244 : vector<8x8xf32>
    %246 = arith.truncf %245 : vector<8x8xf32> to vector<8x8xbf16>
    %cst_93 = arith.constant dense<0.000000e+00> : vector<8x8xf32>
    %247 = tpu.matmul %246, %230, %cst_93 {dimension_numbers = #tpu.dot_dimension_numbers<[1], [0], [0], [1], [0, 0, 1, 1], [], []>} : vector<8x8xbf16>, vector<8x8xbf16>, vector<8x8xf32> -> vector<8x8xf32>
    %248 = tpu.concatenate %187, %207, %227, %247 in 1 : vector<8x8xf32>, vector<8x8xf32>, vector<8x8xf32>, vector<8x8xf32> -> vector<8x32xf32>
    %249 = arith.truncf %248 : vector<8x32xf32> to vector<8x32xbf16>
    %cst_94 = arith.constant dense<0.000000e+00> : vector<8x32xf32>
    %250 = tpu.matmul %249, %146, %cst_94 {dimension_numbers = #tpu.dot_dimension_numbers<[1], [0], [0], [1], [0, 0, 1, 1], [], []>} : vector<8x32xbf16>, vector<32x32xbf16>, vector<8x32xf32> -> vector<8x32xf32>
    %251 = arith.addf %140, %250 : vector<8x32xf32>
    %252 = arith.mulf %251, %251 : vector<8x32xf32>
    %cst_95 = arith.constant dense<0.000000e+00> : vector<8xf32>
    %253 = vector.multi_reduction <add>, %252, %cst_95 [1] : vector<8x32xf32> to vector<8xf32>
    %254 = vector.shape_cast %253 : vector<8xf32> to vector<8x1xf32>
    %cst_96 = arith.constant 3.200000e+01 : f32
    %255 = vector.broadcast %cst_96 : f32 to vector<8x1xf32>
    %256 = arith.divf %254, %255 : vector<8x1xf32>
    %cst_97 = arith.constant 9.99999997E-7 : f32
    %257 = vector.broadcast %cst_97 : f32 to vector<8x1xf32>
    %258 = arith.addf %256, %257 : vector<8x1xf32>
    %259 = math.rsqrt %258 : vector<8x1xf32>
    %260 = vector.broadcast %259 : vector<8x1xf32> to vector<8x32xf32>
    %261 = arith.mulf %251, %260 : vector<8x32xf32>
    %262 = vector.broadcast %148 : vector<1x32xf32> to vector<8x32xf32>
    %263 = arith.mulf %261, %262 : vector<8x32xf32>
    %264 = arith.truncf %263 : vector<8x32xf32> to vector<8x32xbf16>
    %cst_98 = arith.constant dense<0.000000e+00> : vector<8x128xf32>
    %265 = tpu.matmul %264, %150, %cst_98 {dimension_numbers = #tpu.dot_dimension_numbers<[1], [0], [0], [1], [0, 0, 1, 1], [], []>} : vector<8x32xbf16>, vector<32x128xbf16>, vector<8x128xf32> -> vector<8x128xf32>
    %266 = vector.extract_strided_slice %265 {offsets = [0, 0], sizes = [8, 64], strides = [1, 1]} : vector<8x128xf32> to vector<8x64xf32>
    %267 = vector.extract_strided_slice %265 {offsets = [0, 64], sizes = [8, 64], strides = [1, 1]} : vector<8x128xf32> to vector<8x64xf32>
    %268 = arith.negf %266 : vector<8x64xf32>
    %269 = math.exp %268 : vector<8x64xf32>
    %cst_99 = arith.constant 1.000000e+00 : f32
    %270 = vector.broadcast %cst_99 : f32 to vector<8x64xf32>
    %271 = arith.addf %270, %269 : vector<8x64xf32>
    %272 = arith.divf %270, %271 : vector<8x64xf32>
    %273 = arith.mulf %266, %272 : vector<8x64xf32>
    %274 = arith.mulf %273, %267 : vector<8x64xf32>
    %275 = arith.truncf %274 : vector<8x64xf32> to vector<8x64xbf16>
    %cst_100 = arith.constant dense<0.000000e+00> : vector<8x32xf32>
    %276 = tpu.matmul %275, %152, %cst_100 {dimension_numbers = #tpu.dot_dimension_numbers<[1], [0], [0], [1], [0, 0, 1, 1], [], []>} : vector<8x64xbf16>, vector<64x32xbf16>, vector<8x32xf32> -> vector<8x32xf32>
    %277 = arith.addf %251, %276 : vector<8x32xf32>
    %c0_101 = arith.constant 0 : index
    %c0_102 = arith.constant 0 : index
    %278 = vector.load %arg13[%c0_101, %c0_102] : memref<1x32xf32, #tpu.memory_space<vmem>>, vector<1x32xf32>
    %279 = arith.mulf %277, %277 : vector<8x32xf32>
    %cst_103 = arith.constant dense<0.000000e+00> : vector<8xf32>
    %280 = vector.multi_reduction <add>, %279, %cst_103 [1] : vector<8x32xf32> to vector<8xf32>
    %281 = vector.shape_cast %280 : vector<8xf32> to vector<8x1xf32>
    %cst_104 = arith.constant 3.200000e+01 : f32
    %282 = vector.broadcast %cst_104 : f32 to vector<8x1xf32>
    %283 = arith.divf %281, %282 : vector<8x1xf32>
    %cst_105 = arith.constant 9.99999997E-7 : f32
    %284 = vector.broadcast %cst_105 : f32 to vector<8x1xf32>
    %285 = arith.addf %283, %284 : vector<8x1xf32>
    %286 = math.rsqrt %285 : vector<8x1xf32>
    %287 = vector.broadcast %286 : vector<8x1xf32> to vector<8x32xf32>
    %288 = arith.mulf %277, %287 : vector<8x32xf32>
    %289 = vector.broadcast %278 : vector<1x32xf32> to vector<8x32xf32>
    %290 = arith.mulf %288, %289 : vector<8x32xf32>
    %291 = arith.truncf %290 : vector<8x32xf32> to vector<8x32xbf16>
    %c0_106 = arith.constant 0 : index
    %c0_107 = arith.constant 0 : index
    %292 = vector.load %arg14[%c0_106, %c0_107] : memref<1x32xf32, #tpu.memory_space<vmem>>, vector<1x32xf32>
    %293 = arith.truncf %292 : vector<1x32xf32> to vector<1x32xbf16>
    %cst_108 = arith.constant dense<0.000000e+00> : vector<1x8xf32>
    %294 = tpu.matmul %293, %291, %cst_108 {dimension_numbers = #tpu.dot_dimension_numbers<[1], [1], [0], [0], [0, 0, 1, 0], [], []>} : vector<1x32xbf16>, vector<8x32xbf16>, vector<1x8xf32> -> vector<1x8xf32>
    %c0_109 = arith.constant 0 : index
    %c0_110 = arith.constant 0 : index
    %295 = vector.load %arg15[%c0_109, %c0_110] : memref<1x1xf32, #tpu.memory_space<vmem>>, vector<1x1xf32>
    %296 = vector.broadcast %295 : vector<1x1xf32> to vector<1x8xf32>
    %297 = arith.addf %294, %296 : vector<1x8xf32>
    %cst_111 = arith.constant -5.000000e-01 : f32
    %298 = vector.broadcast %cst_111 : f32 to vector<1x8xf32>
    %299 = arith.cmpf oge, %1, %298 : vector<1x8xf32>
    %cst_112 = arith.constant 0.000000e+00 : f32
    %cst_113 = arith.constant -1.000000e+30 : f32
    %300 = vector.broadcast %cst_112 : f32 to vector<1x8xf32>
    %301 = vector.broadcast %cst_113 : f32 to vector<1x8xf32>
    %302 = arith.select %299, %300, %301 : vector<1x8xi1>, vector<1x8xf32>
    %303 = arith.addf %297, %302 : vector<1x8xf32>
    %cst_114 = arith.constant dense<0xFF800000> : vector<1xf32>
    %304 = vector.multi_reduction <maximumf>, %303, %cst_114 [1] : vector<1x8xf32> to vector<1xf32>
    %305 = vector.shape_cast %304 : vector<1xf32> to vector<1x1xf32>
    %306 = vector.broadcast %305 : vector<1x1xf32> to vector<1x8xf32>
    %307 = arith.subf %303, %306 : vector<1x8xf32>
    %308 = math.exp %307 : vector<1x8xf32>
    %cst_115 = arith.constant dense<0.000000e+00> : vector<1xf32>
    %309 = vector.multi_reduction <add>, %308, %cst_115 [1] : vector<1x8xf32> to vector<1xf32>
    %310 = vector.shape_cast %309 : vector<1xf32> to vector<1x1xf32>
    %311 = tpu.reciprocal %310 {approx = true} : vector<1x1xf32> -> vector<1x1xf32>
    %312 = vector.broadcast %311 : vector<1x1xf32> to vector<1x8xf32>
    %313 = arith.mulf %308, %312 : vector<1x8xf32>
    %314 = arith.truncf %313 : vector<1x8xf32> to vector<1x8xbf16>
    %cst_116 = arith.constant dense<0.000000e+00> : vector<1x32xf32>
    %315 = tpu.matmul %314, %291, %cst_116 {dimension_numbers = #tpu.dot_dimension_numbers<[1], [0], [0], [1], [0, 0, 1, 1], [], []>} : vector<1x8xbf16>, vector<8x32xbf16>, vector<1x32xf32> -> vector<1x32xf32>
    %316 = arith.truncf %315 : vector<1x32xf32> to vector<1x32xbf16>
    %c0_117 = arith.constant 0 : index
    %c0_118 = arith.constant 0 : index
    %317 = vector.load %arg16[%c0_117, %c0_118] : memref<32x16xbf16, #tpu.memory_space<vmem>>, vector<32x16xbf16>
    %cst_119 = arith.constant dense<0.000000e+00> : vector<1x16xf32>
    %318 = tpu.matmul %316, %317, %cst_119 {dimension_numbers = #tpu.dot_dimension_numbers<[1], [0], [0], [1], [0, 0, 1, 1], [], []>} : vector<1x32xbf16>, vector<32x16xbf16>, vector<1x16xf32> -> vector<1x16xf32>
    %c0_120 = arith.constant 0 : index
    %c0_121 = arith.constant 0 : index
    %319 = vector.load %arg17[%c0_120, %c0_121] : memref<1x16xf32, #tpu.memory_space<vmem>>, vector<1x16xf32>
    %320 = arith.addf %318, %319 : vector<1x16xf32>
    %cst_122 = arith.constant 0.000000e+00 : f32
    %321 = vector.broadcast %cst_122 : f32 to vector<1x112xf32>
    %322 = tpu.concatenate %320, %321 in 1 : vector<1x16xf32>, vector<1x112xf32> -> vector<1x128xf32>
    %c0_123 = arith.constant 0 : index
    %c0_124 = arith.constant 0 : index
    %c0_125 = arith.constant 0 : index
    %323 = vector.load %arg22[%c0_123, %c0_124, %c0_125] : memref<1x1x128xf32, #tpu.memory_space<vmem>>, vector<1x1x128xf32>
    %324 = vector.shape_cast %323 : vector<1x1x128xf32> to vector<1x128xf32>
    %325 = vector.shape_cast %322 : vector<1x128xf32> to vector<1x1x128xf32>
    tpu.vector_store %arg22[%c0_123, %c0_124, %c0_125], %325 {strides = array<i32>} : memref<1x1x128xf32, #tpu.memory_space<vmem>>, vector<1x1x128xf32>,
    %c0_126 = arith.constant 0 : index
    %c0_127 = arith.constant 0 : index
    %c0_128 = arith.constant 0 : index
    %326 = vector.load %arg3[%c0_126, %c0_127, %c0_128] : memref<1x1x16xf32, #tpu.memory_space<vmem>>, vector<1x1x16xf32>
    %327 = vector.shape_cast %326 : vector<1x1x16xf32> to vector<1x16xf32>
    %328 = arith.addf %320, %327 : vector<1x16xf32>
    %329 = arith.truncf %328 : vector<1x16xf32> to vector<1x16xbf16>
    %c0_129 = arith.constant 0 : index
    %c0_130 = arith.constant 0 : index
    %330 = vector.load %arg18[%c0_129, %c0_130] : memref<16x32xbf16, #tpu.memory_space<vmem>>, vector<16x32xbf16>
    %cst_131 = arith.constant dense<0.000000e+00> : vector<1x32xf32>
    %331 = tpu.matmul %329, %330, %cst_131 {dimension_numbers = #tpu.dot_dimension_numbers<[1], [0], [0], [1], [0, 0, 1, 1], [], []>} : vector<1x16xbf16>, vector<16x32xbf16>, vector<1x32xf32> -> vector<1x32xf32>
    %c0_132 = arith.constant 0 : index
    %c0_133 = arith.constant 0 : index
    %332 = vector.load %arg19[%c0_132, %c0_133] : memref<1x32xf32, #tpu.memory_space<vmem>>, vector<1x32xf32>
    %333 = arith.addf %331, %332 : vector<1x32xf32>
    %334 = tpu.iota {dimensions = array<i32: 0>} : vector<16x1xi32>
    %c4_i32 = arith.constant 4 : i32
    %335 = vector.broadcast %c4_i32 : i32 to vector<16x1xi32>
    %336 = arith.cmpi eq, %334, %335 : vector<16x1xi32>
    %c0_134 = arith.constant 0 : index
    %c0_135 = arith.constant 0 : index
    %c0_136 = arith.constant 0 : index
    %337 = vector.load %arg4[%c0_134, %c0_135, %c0_136] : memref<1x16x32xf32, #tpu.memory_space<vmem>>, vector<1x16x32xf32>
    %338 = vector.shape_cast %337 : vector<1x16x32xf32> to vector<16x32xf32>
    %339 = vector.shape_cast %336 : vector<16x1xi1> to vector<16x1xi1>
    %340 = vector.broadcast %339 : vector<16x1xi1> to vector<16x32xi1>
    %341 = vector.shape_cast %333 : vector<1x32xf32> to vector<1x32xf32>
    %342 = vector.broadcast %341 : vector<1x32xf32> to vector<16x32xf32>
    %343 = arith.select %340, %342, %338 : vector<16x32xi1>, vector<16x32xf32>
    %344 = tpu.iota {dimensions = array<i32: 0>} : vector<16x16xi32>
    %345 = tpu.iota {dimensions = array<i32: 1>} : vector<16x16xi32>
    %346 = arith.cmpi sle, %345, %344 : vector<16x16xi32>
    %cst_137 = arith.constant 0.000000e+00 : f32
    %cst_138 = arith.constant -1.000000e+09 : f32
    %347 = vector.broadcast %cst_137 : f32 to vector<16x16xf32>
    %348 = vector.broadcast %cst_138 : f32 to vector<16x16xf32>
    %349 = arith.select %346, %347, %348 : vector<16x16xi1>, vector<16x16xf32>
    %c0_139 = arith.constant 0 : index
    %c0_140 = arith.constant 0 : index
    %c0_141 = arith.constant 0 : index
    %350 = vector.load %arg5[%c0_139, %c0_140, %c0_141] : memref<1x1x16xf32, #tpu.memory_space<vmem>>, vector<1x1x16xf32>
    %351 = vector.shape_cast %350 : vector<1x1x16xf32> to vector<1x16xf32>
    %352 = vector.broadcast %351 : vector<1x16xf32> to vector<16x16xf32>
    %353 = arith.addf %349, %352 : vector<16x16xf32>
    %c0_142 = arith.constant 0 : index
    %c0_143 = arith.constant 0 : index
    %c0_144 = arith.constant 0 : index
    %354 = vector.load %arg6[%c0_142, %c0_143, %c0_144] : memref<2x1x32xf32, #tpu.memory_space<vmem>>, vector<1x1x32xf32>
    %355 = vector.shape_cast %354 : vector<1x1x32xf32> to vector<1x32xf32>
    %c0_145 = arith.constant 0 : index
    %c0_146 = arith.constant 0 : index
    %c0_147 = arith.constant 0 : index
    %356 = vector.load %arg8[%c0_145, %c0_146, %c0_147] : memref<2x32x96xbf16, #tpu.memory_space<vmem>>, vector<1x32x96xbf16>
    %357 = vector.shape_cast %356 : vector<1x32x96xbf16> to vector<32x96xbf16>
    %c0_148 = arith.constant 0 : index
    %c0_149 = arith.constant 0 : index
    %c0_150 = arith.constant 0 : index
    %358 = vector.load %arg9[%c0_148, %c0_149, %c0_150] : memref<2x32x32xbf16, #tpu.memory_space<vmem>>, vector<1x32x32xbf16>
    %359 = vector.shape_cast %358 : vector<1x32x32xbf16> to vector<32x32xbf16>
    %c0_151 = arith.constant 0 : index
    %c0_152 = arith.constant 0 : index
    %c0_153 = arith.constant 0 : index
    %360 = vector.load %arg10[%c0_151, %c0_152, %c0_153] : memref<2x1x32xf32, #tpu.memory_space<vmem>>, vector<1x1x32xf32>
    %361 = vector.shape_cast %360 : vector<1x1x32xf32> to vector<1x32xf32>
    %c0_154 = arith.constant 0 : index
    %c0_155 = arith.constant 0 : index
    %c0_156 = arith.constant 0 : index
    %362 = vector.load %arg11[%c0_154, %c0_155, %c0_156] : memref<2x32x128xbf16, #tpu.memory_space<vmem>>, vector<1x32x128xbf16>
    %363 = vector.shape_cast %362 : vector<1x32x128xbf16> to vector<32x128xbf16>
    %c0_157 = arith.constant 0 : index
    %c0_158 = arith.constant 0 : index
    %c0_159 = arith.constant 0 : index
    %364 = vector.load %arg12[%c0_157, %c0_158, %c0_159] : memref<2x64x32xbf16, #tpu.memory_space<vmem>>, vector<1x64x32xbf16>
    %365 = vector.shape_cast %364 : vector<1x64x32xbf16> to vector<64x32xbf16>
    %366 = arith.mulf %343, %343 : vector<16x32xf32>
    %cst_160 = arith.constant dense<0.000000e+00> : vector<16xf32>
    %367 = vector.multi_reduction <add>, %366, %cst_160 [1] : vector<16x32xf32> to vector<16xf32>
    %368 = vector.shape_cast %367 : vector<16xf32> to vector<16x1xf32>
    %cst_161 = arith.constant 3.200000e+01 : f32
    %369 = vector.broadcast %cst_161 : f32 to vector<16x1xf32>
    %370 = arith.divf %368, %369 : vector<16x1xf32>
    %cst_162 = arith.constant 9.99999997E-7 : f32
    %371 = vector.broadcast %cst_162 : f32 to vector<16x1xf32>
    %372 = arith.addf %370, %371 : vector<16x1xf32>
    %373 = math.rsqrt %372 : vector<16x1xf32>
    %374 = vector.broadcast %373 : vector<16x1xf32> to vector<16x32xf32>
    %375 = arith.mulf %343, %374 : vector<16x32xf32>
    %376 = vector.broadcast %355 : vector<1x32xf32> to vector<16x32xf32>
    %377 = arith.mulf %375, %376 : vector<16x32xf32>
    %378 = arith.truncf %377 : vector<16x32xf32> to vector<16x32xbf16>
    %cst_163 = arith.constant dense<0.000000e+00> : vector<16x96xf32>
    %379 = tpu.matmul %378, %357, %cst_163 {dimension_numbers = #tpu.dot_dimension_numbers<[1], [0], [0], [1], [0, 0, 1, 1], [], []>} : vector<16x32xbf16>, vector<32x96xbf16>, vector<16x96xf32> -> vector<16x96xf32>
    %380 = arith.truncf %379 : vector<16x96xf32> to vector<16x96xbf16>
    %381 = vector.extract_strided_slice %380 {offsets = [0, 0], sizes = [16, 8], strides = [1, 1]} : vector<16x96xbf16> to vector<16x8xbf16>
    %382 = vector.extract_strided_slice %380 {offsets = [0, 32], sizes = [16, 8], strides = [1, 1]} : vector<16x96xbf16> to vector<16x8xbf16>
    %383 = vector.extract_strided_slice %380 {offsets = [0, 64], sizes = [16, 8], strides = [1, 1]} : vector<16x96xbf16> to vector<16x8xbf16>
    %cst_164 = arith.constant dense<0.000000e+00> : vector<16x16xf32>
    %384 = tpu.matmul %381, %382, %cst_164 {dimension_numbers = #tpu.dot_dimension_numbers<[1], [1], [0], [0], [0, 0, 1, 0], [], []>} : vector<16x8xbf16>, vector<16x8xbf16>, vector<16x16xf32> -> vector<16x16xf32>
    %cst_165 = arith.constant 0.353553385 : f32
    %385 = vector.broadcast %cst_165 : f32 to vector<16x16xf32>
    %386 = arith.mulf %384, %385 : vector<16x16xf32>
    %387 = arith.addf %386, %353 : vector<16x16xf32>
    %cst_166 = arith.constant dense<0xFF800000> : vector<16xf32>
    %388 = vector.multi_reduction <maximumf>, %387, %cst_166 [1] : vector<16x16xf32> to vector<16xf32>
    %389 = vector.shape_cast %388 : vector<16xf32> to vector<16x1xf32>
    %390 = vector.broadcast %389 : vector<16x1xf32> to vector<16x16xf32>
    %391 = arith.subf %387, %390 : vector<16x16xf32>
    %392 = math.exp %391 : vector<16x16xf32>
    %cst_167 = arith.constant dense<0.000000e+00> : vector<16xf32>
    %393 = vector.multi_reduction <add>, %392, %cst_167 [1] : vector<16x16xf32> to vector<16xf32>
    %394 = vector.shape_cast %393 : vector<16xf32> to vector<16x1xf32>
    %395 = tpu.reciprocal %394 {approx = true} : vector<16x1xf32> -> vector<16x1xf32>
    %396 = vector.broadcast %395 : vector<16x1xf32> to vector<16x16xf32>
    %397 = arith.mulf %392, %396 : vector<16x16xf32>
    %398 = arith.truncf %397 : vector<16x16xf32> to vector<16x16xbf16>
    %cst_168 = arith.constant dense<0.000000e+00> : vector<16x8xf32>
    %399 = tpu.matmul %398, %383, %cst_168 {dimension_numbers = #tpu.dot_dimension_numbers<[1], [0], [0], [1], [0, 0, 1, 1], [], []>} : vector<16x16xbf16>, vector<16x8xbf16>, vector<16x8xf32> -> vector<16x8xf32>
    %400 = vector.extract_strided_slice %380 {offsets = [0, 8], sizes = [16, 8], strides = [1, 1]} : vector<16x96xbf16> to vector<16x8xbf16>
    %401 = vector.extract_strided_slice %380 {offsets = [0, 40], sizes = [16, 8], strides = [1, 1]} : vector<16x96xbf16> to vector<16x8xbf16>
    %402 = vector.extract_strided_slice %380 {offsets = [0, 72], sizes = [16, 8], strides = [1, 1]} : vector<16x96xbf16> to vector<16x8xbf16>
    %cst_169 = arith.constant dense<0.000000e+00> : vector<16x16xf32>
    %403 = tpu.matmul %400, %401, %cst_169 {dimension_numbers = #tpu.dot_dimension_numbers<[1], [1], [0], [0], [0, 0, 1, 0], [], []>} : vector<16x8xbf16>, vector<16x8xbf16>, vector<16x16xf32> -> vector<16x16xf32>
    %cst_170 = arith.constant 0.353553385 : f32
    %404 = vector.broadcast %cst_170 : f32 to vector<16x16xf32>
    %405 = arith.mulf %403, %404 : vector<16x16xf32>
    %406 = arith.addf %405, %353 : vector<16x16xf32>
    %cst_171 = arith.constant dense<0xFF800000> : vector<16xf32>
    %407 = vector.multi_reduction <maximumf>, %406, %cst_171 [1] : vector<16x16xf32> to vector<16xf32>
    %408 = vector.shape_cast %407 : vector<16xf32> to vector<16x1xf32>
    %409 = vector.broadcast %408 : vector<16x1xf32> to vector<16x16xf32>
    %410 = arith.subf %406, %409 : vector<16x16xf32>
    %411 = math.exp %410 : vector<16x16xf32>
    %cst_172 = arith.constant dense<0.000000e+00> : vector<16xf32>
    %412 = vector.multi_reduction <add>, %411, %cst_172 [1] : vector<16x16xf32> to vector<16xf32>
    %413 = vector.shape_cast %412 : vector<16xf32> to vector<16x1xf32>
    %414 = tpu.reciprocal %413 {approx = true} : vector<16x1xf32> -> vector<16x1xf32>
    %415 = vector.broadcast %414 : vector<16x1xf32> to vector<16x16xf32>
    %416 = arith.mulf %411, %415 : vector<16x16xf32>
    %417 = arith.truncf %416 : vector<16x16xf32> to vector<16x16xbf16>
    %cst_173 = arith.constant dense<0.000000e+00> : vector<16x8xf32>
    %418 = tpu.matmul %417, %402, %cst_173 {dimension_numbers = #tpu.dot_dimension_numbers<[1], [0], [0], [1], [0, 0, 1, 1], [], []>} : vector<16x16xbf16>, vector<16x8xbf16>, vector<16x8xf32> -> vector<16x8xf32>
    %419 = vector.extract_strided_slice %380 {offsets = [0, 16], sizes = [16, 8], strides = [1, 1]} : vector<16x96xbf16> to vector<16x8xbf16>
    %420 = vector.extract_strided_slice %380 {offsets = [0, 48], sizes = [16, 8], strides = [1, 1]} : vector<16x96xbf16> to vector<16x8xbf16>
    %421 = vector.extract_strided_slice %380 {offsets = [0, 80], sizes = [16, 8], strides = [1, 1]} : vector<16x96xbf16> to vector<16x8xbf16>
    %cst_174 = arith.constant dense<0.000000e+00> : vector<16x16xf32>
    %422 = tpu.matmul %419, %420, %cst_174 {dimension_numbers = #tpu.dot_dimension_numbers<[1], [1], [0], [0], [0, 0, 1, 0], [], []>} : vector<16x8xbf16>, vector<16x8xbf16>, vector<16x16xf32> -> vector<16x16xf32>
    %cst_175 = arith.constant 0.353553385 : f32
    %423 = vector.broadcast %cst_175 : f32 to vector<16x16xf32>
    %424 = arith.mulf %422, %423 : vector<16x16xf32>
    %425 = arith.addf %424, %353 : vector<16x16xf32>
    %cst_176 = arith.constant dense<0xFF800000> : vector<16xf32>
    %426 = vector.multi_reduction <maximumf>, %425, %cst_176 [1] : vector<16x16xf32> to vector<16xf32>
    %427 = vector.shape_cast %426 : vector<16xf32> to vector<16x1xf32>
    %428 = vector.broadcast %427 : vector<16x1xf32> to vector<16x16xf32>
    %429 = arith.subf %425, %428 : vector<16x16xf32>
    %430 = math.exp %429 : vector<16x16xf32>
    %cst_177 = arith.constant dense<0.000000e+00> : vector<16xf32>
    %431 = vector.multi_reduction <add>, %430, %cst_177 [1] : vector<16x16xf32> to vector<16xf32>
    %432 = vector.shape_cast %431 : vector<16xf32> to vector<16x1xf32>
    %433 = tpu.reciprocal %432 {approx = true} : vector<16x1xf32> -> vector<16x1xf32>
    %434 = vector.broadcast %433 : vector<16x1xf32> to vector<16x16xf32>
    %435 = arith.mulf %430, %434 : vector<16x16xf32>
    %436 = arith.truncf %435 : vector<16x16xf32> to vector<16x16xbf16>
    %cst_178 = arith.constant dense<0.000000e+00> : vector<16x8xf32>
    %437 = tpu.matmul %436, %421, %cst_178 {dimension_numbers = #tpu.dot_dimension_numbers<[1], [0], [0], [1], [0, 0, 1, 1], [], []>} : vector<16x16xbf16>, vector<16x8xbf16>, vector<16x8xf32> -> vector<16x8xf32>
    %438 = vector.extract_strided_slice %380 {offsets = [0, 24], sizes = [16, 8], strides = [1, 1]} : vector<16x96xbf16> to vector<16x8xbf16>
    %439 = vector.extract_strided_slice %380 {offsets = [0, 56], sizes = [16, 8], strides = [1, 1]} : vector<16x96xbf16> to vector<16x8xbf16>
    %440 = vector.extract_strided_slice %380 {offsets = [0, 88], sizes = [16, 8], strides = [1, 1]} : vector<16x96xbf16> to vector<16x8xbf16>
    %cst_179 = arith.constant dense<0.000000e+00> : vector<16x16xf32>
    %441 = tpu.matmul %438, %439, %cst_179 {dimension_numbers = #tpu.dot_dimension_numbers<[1], [1], [0], [0], [0, 0, 1, 0], [], []>} : vector<16x8xbf16>, vector<16x8xbf16>, vector<16x16xf32> -> vector<16x16xf32>
    %cst_180 = arith.constant 0.353553385 : f32
    %442 = vector.broadcast %cst_180 : f32 to vector<16x16xf32>
    %443 = arith.mulf %441, %442 : vector<16x16xf32>
    %444 = arith.addf %443, %353 : vector<16x16xf32>
    %cst_181 = arith.constant dense<0xFF800000> : vector<16xf32>
    %445 = vector.multi_reduction <maximumf>, %444, %cst_181 [1] : vector<16x16xf32> to vector<16xf32>
    %446 = vector.shape_cast %445 : vector<16xf32> to vector<16x1xf32>
    %447 = vector.broadcast %446 : vector<16x1xf32> to vector<16x16xf32>
    %448 = arith.subf %444, %447 : vector<16x16xf32>
    %449 = math.exp %448 : vector<16x16xf32>
    %cst_182 = arith.constant dense<0.000000e+00> : vector<16xf32>
    %450 = vector.multi_reduction <add>, %449, %cst_182 [1] : vector<16x16xf32> to vector<16xf32>
    %451 = vector.shape_cast %450 : vector<16xf32> to vector<16x1xf32>
    %452 = tpu.reciprocal %451 {approx = true} : vector<16x1xf32> -> vector<16x1xf32>
    %453 = vector.broadcast %452 : vector<16x1xf32> to vector<16x16xf32>
    %454 = arith.mulf %449, %453 : vector<16x16xf32>
    %455 = arith.truncf %454 : vector<16x16xf32> to vector<16x16xbf16>
    %cst_183 = arith.constant dense<0.000000e+00> : vector<16x8xf32>
    %456 = tpu.matmul %455, %440, %cst_183 {dimension_numbers = #tpu.dot_dimension_numbers<[1], [0], [0], [1], [0, 0, 1, 1], [], []>} : vector<16x16xbf16>, vector<16x8xbf16>, vector<16x8xf32> -> vector<16x8xf32>
    %457 = tpu.concatenate %399, %418, %437, %456 in 1 : vector<16x8xf32>, vector<16x8xf32>, vector<16x8xf32>, vector<16x8xf32> -> vector<16x32xf32>
    %458 = arith.truncf %457 : vector<16x32xf32> to vector<16x32xbf16>
    %cst_184 = arith.constant dense<0.000000e+00> : vector<16x32xf32>
    %459 = tpu.matmul %458, %359, %cst_184 {dimension_numbers = #tpu.dot_dimension_numbers<[1], [0], [0], [1], [0, 0, 1, 1], [], []>} : vector<16x32xbf16>, vector<32x32xbf16>, vector<16x32xf32> -> vector<16x32xf32>
    %460 = arith.addf %343, %459 : vector<16x32xf32>
    %461 = arith.mulf %460, %460 : vector<16x32xf32>
    %cst_185 = arith.constant dense<0.000000e+00> : vector<16xf32>
    %462 = vector.multi_reduction <add>, %461, %cst_185 [1] : vector<16x32xf32> to vector<16xf32>
    %463 = vector.shape_cast %462 : vector<16xf32> to vector<16x1xf32>
    %cst_186 = arith.constant 3.200000e+01 : f32
    %464 = vector.broadcast %cst_186 : f32 to vector<16x1xf32>
    %465 = arith.divf %463, %464 : vector<16x1xf32>
    %cst_187 = arith.constant 9.99999997E-7 : f32
    %466 = vector.broadcast %cst_187 : f32 to vector<16x1xf32>
    %467 = arith.addf %465, %466 : vector<16x1xf32>
    %468 = math.rsqrt %467 : vector<16x1xf32>
    %469 = vector.broadcast %468 : vector<16x1xf32> to vector<16x32xf32>
    %470 = arith.mulf %460, %469 : vector<16x32xf32>
    %471 = vector.broadcast %361 : vector<1x32xf32> to vector<16x32xf32>
    %472 = arith.mulf %470, %471 : vector<16x32xf32>
    %473 = arith.truncf %472 : vector<16x32xf32> to vector<16x32xbf16>
    %cst_188 = arith.constant dense<0.000000e+00> : vector<16x128xf32>
    %474 = tpu.matmul %473, %363, %cst_188 {dimension_numbers = #tpu.dot_dimension_numbers<[1], [0], [0], [1], [0, 0, 1, 1], [], []>} : vector<16x32xbf16>, vector<32x128xbf16>, vector<16x128xf32> -> vector<16x128xf32>
    %475 = vector.extract_strided_slice %474 {offsets = [0, 0], sizes = [16, 64], strides = [1, 1]} : vector<16x128xf32> to vector<16x64xf32>
    %476 = vector.extract_strided_slice %474 {offsets = [0, 64], sizes = [16, 64], strides = [1, 1]} : vector<16x128xf32> to vector<16x64xf32>
    %477 = arith.negf %475 : vector<16x64xf32>
    %478 = math.exp %477 : vector<16x64xf32>
    %cst_189 = arith.constant 1.000000e+00 : f32
    %479 = vector.broadcast %cst_189 : f32 to vector<16x64xf32>
    %480 = arith.addf %479, %478 : vector<16x64xf32>
    %481 = arith.divf %479, %480 : vector<16x64xf32>
    %482 = arith.mulf %475, %481 : vector<16x64xf32>
    %483 = arith.mulf %482, %476 : vector<16x64xf32>
    %484 = arith.truncf %483 : vector<16x64xf32> to vector<16x64xbf16>
    %cst_190 = arith.constant dense<0.000000e+00> : vector<16x32xf32>
    %485 = tpu.matmul %484, %365, %cst_190 {dimension_numbers = #tpu.dot_dimension_numbers<[1], [0], [0], [1], [0, 0, 1, 1], [], []>} : vector<16x64xbf16>, vector<64x32xbf16>, vector<16x32xf32> -> vector<16x32xf32>
    %486 = arith.addf %460, %485 : vector<16x32xf32>
    %c1_191 = arith.constant 1 : index
    %c0_192 = arith.constant 0 : index
    %c0_193 = arith.constant 0 : index
    %487 = vector.load %arg6[%c1_191, %c0_192, %c0_193] : memref<2x1x32xf32, #tpu.memory_space<vmem>>, vector<1x1x32xf32>
    %488 = vector.shape_cast %487 : vector<1x1x32xf32> to vector<1x32xf32>
    %c1_194 = arith.constant 1 : index
    %c0_195 = arith.constant 0 : index
    %c0_196 = arith.constant 0 : index
    %489 = vector.load %arg8[%c1_194, %c0_195, %c0_196] : memref<2x32x96xbf16, #tpu.memory_space<vmem>>, vector<1x32x96xbf16>
    %490 = vector.shape_cast %489 : vector<1x32x96xbf16> to vector<32x96xbf16>
    %c1_197 = arith.constant 1 : index
    %c0_198 = arith.constant 0 : index
    %c0_199 = arith.constant 0 : index
    %491 = vector.load %arg9[%c1_197, %c0_198, %c0_199] : memref<2x32x32xbf16, #tpu.memory_space<vmem>>, vector<1x32x32xbf16>
    %492 = vector.shape_cast %491 : vector<1x32x32xbf16> to vector<32x32xbf16>
    %c1_200 = arith.constant 1 : index
    %c0_201 = arith.constant 0 : index
    %c0_202 = arith.constant 0 : index
    %493 = vector.load %arg10[%c1_200, %c0_201, %c0_202] : memref<2x1x32xf32, #tpu.memory_space<vmem>>, vector<1x1x32xf32>
    %494 = vector.shape_cast %493 : vector<1x1x32xf32> to vector<1x32xf32>
    %c1_203 = arith.constant 1 : index
    %c0_204 = arith.constant 0 : index
    %c0_205 = arith.constant 0 : index
    %495 = vector.load %arg11[%c1_203, %c0_204, %c0_205] : memref<2x32x128xbf16, #tpu.memory_space<vmem>>, vector<1x32x128xbf16>
    %496 = vector.shape_cast %495 : vector<1x32x128xbf16> to vector<32x128xbf16>
    %c1_206 = arith.constant 1 : index
    %c0_207 = arith.constant 0 : index
    %c0_208 = arith.constant 0 : index
    %497 = vector.load %arg12[%c1_206, %c0_207, %c0_208] : memref<2x64x32xbf16, #tpu.memory_space<vmem>>, vector<1x64x32xbf16>
    %498 = vector.shape_cast %497 : vector<1x64x32xbf16> to vector<64x32xbf16>
    %499 = arith.mulf %486, %486 : vector<16x32xf32>
    %cst_209 = arith.constant dense<0.000000e+00> : vector<16xf32>
    %500 = vector.multi_reduction <add>, %499, %cst_209 [1] : vector<16x32xf32> to vector<16xf32>
    %501 = vector.shape_cast %500 : vector<16xf32> to vector<16x1xf32>
    %cst_210 = arith.constant 3.200000e+01 : f32
    %502 = vector.broadcast %cst_210 : f32 to vector<16x1xf32>
    %503 = arith.divf %501, %502 : vector<16x1xf32>
    %cst_211 = arith.constant 9.99999997E-7 : f32
    %504 = vector.broadcast %cst_211 : f32 to vector<16x1xf32>
    %505 = arith.addf %503, %504 : vector<16x1xf32>
    %506 = math.rsqrt %505 : vector<16x1xf32>
    %507 = vector.broadcast %506 : vector<16x1xf32> to vector<16x32xf32>
    %508 = arith.mulf %486, %507 : vector<16x32xf32>
    %509 = vector.broadcast %488 : vector<1x32xf32> to vector<16x32xf32>
    %510 = arith.mulf %508, %509 : vector<16x32xf32>
    %511 = arith.truncf %510 : vector<16x32xf32> to vector<16x32xbf16>
    %cst_212 = arith.constant dense<0.000000e+00> : vector<16x96xf32>
    %512 = tpu.matmul %511, %490, %cst_212 {dimension_numbers = #tpu.dot_dimension_numbers<[1], [0], [0], [1], [0, 0, 1, 1], [], []>} : vector<16x32xbf16>, vector<32x96xbf16>, vector<16x96xf32> -> vector<16x96xf32>
    %513 = arith.truncf %512 : vector<16x96xf32> to vector<16x96xbf16>
    %514 = vector.extract_strided_slice %513 {offsets = [0, 0], sizes = [16, 8], strides = [1, 1]} : vector<16x96xbf16> to vector<16x8xbf16>
    %515 = vector.extract_strided_slice %513 {offsets = [0, 32], sizes = [16, 8], strides = [1, 1]} : vector<16x96xbf16> to vector<16x8xbf16>
    %516 = vector.extract_strided_slice %513 {offsets = [0, 64], sizes = [16, 8], strides = [1, 1]} : vector<16x96xbf16> to vector<16x8xbf16>
    %cst_213 = arith.constant dense<0.000000e+00> : vector<16x16xf32>
    %517 = tpu.matmul %514, %515, %cst_213 {dimension_numbers = #tpu.dot_dimension_numbers<[1], [1], [0], [0], [0, 0, 1, 0], [], []>} : vector<16x8xbf16>, vector<16x8xbf16>, vector<16x16xf32> -> vector<16x16xf32>
    %cst_214 = arith.constant 0.353553385 : f32
    %518 = vector.broadcast %cst_214 : f32 to vector<16x16xf32>
    %519 = arith.mulf %517, %518 : vector<16x16xf32>
    %520 = arith.addf %519, %353 : vector<16x16xf32>
    %cst_215 = arith.constant dense<0xFF800000> : vector<16xf32>
    %521 = vector.multi_reduction <maximumf>, %520, %cst_215 [1] : vector<16x16xf32> to vector<16xf32>
    %522 = vector.shape_cast %521 : vector<16xf32> to vector<16x1xf32>
    %523 = vector.broadcast %522 : vector<16x1xf32> to vector<16x16xf32>
    %524 = arith.subf %520, %523 : vector<16x16xf32>
    %525 = math.exp %524 : vector<16x16xf32>
    %cst_216 = arith.constant dense<0.000000e+00> : vector<16xf32>
    %526 = vector.multi_reduction <add>, %525, %cst_216 [1] : vector<16x16xf32> to vector<16xf32>
    %527 = vector.shape_cast %526 : vector<16xf32> to vector<16x1xf32>
    %528 = tpu.reciprocal %527 {approx = true} : vector<16x1xf32> -> vector<16x1xf32>
    %529 = vector.broadcast %528 : vector<16x1xf32> to vector<16x16xf32>
    %530 = arith.mulf %525, %529 : vector<16x16xf32>
    %531 = arith.truncf %530 : vector<16x16xf32> to vector<16x16xbf16>
    %cst_217 = arith.constant dense<0.000000e+00> : vector<16x8xf32>
    %532 = tpu.matmul %531, %516, %cst_217 {dimension_numbers = #tpu.dot_dimension_numbers<[1], [0], [0], [1], [0, 0, 1, 1], [], []>} : vector<16x16xbf16>, vector<16x8xbf16>, vector<16x8xf32> -> vector<16x8xf32>
    %533 = vector.extract_strided_slice %513 {offsets = [0, 8], sizes = [16, 8], strides = [1, 1]} : vector<16x96xbf16> to vector<16x8xbf16>
    %534 = vector.extract_strided_slice %513 {offsets = [0, 40], sizes = [16, 8], strides = [1, 1]} : vector<16x96xbf16> to vector<16x8xbf16>
    %535 = vector.extract_strided_slice %513 {offsets = [0, 72], sizes = [16, 8], strides = [1, 1]} : vector<16x96xbf16> to vector<16x8xbf16>
    %cst_218 = arith.constant dense<0.000000e+00> : vector<16x16xf32>
    %536 = tpu.matmul %533, %534, %cst_218 {dimension_numbers = #tpu.dot_dimension_numbers<[1], [1], [0], [0], [0, 0, 1, 0], [], []>} : vector<16x8xbf16>, vector<16x8xbf16>, vector<16x16xf32> -> vector<16x16xf32>
    %cst_219 = arith.constant 0.353553385 : f32
    %537 = vector.broadcast %cst_219 : f32 to vector<16x16xf32>
    %538 = arith.mulf %536, %537 : vector<16x16xf32>
    %539 = arith.addf %538, %353 : vector<16x16xf32>
    %cst_220 = arith.constant dense<0xFF800000> : vector<16xf32>
    %540 = vector.multi_reduction <maximumf>, %539, %cst_220 [1] : vector<16x16xf32> to vector<16xf32>
    %541 = vector.shape_cast %540 : vector<16xf32> to vector<16x1xf32>
    %542 = vector.broadcast %541 : vector<16x1xf32> to vector<16x16xf32>
    %543 = arith.subf %539, %542 : vector<16x16xf32>
    %544 = math.exp %543 : vector<16x16xf32>
    %cst_221 = arith.constant dense<0.000000e+00> : vector<16xf32>
    %545 = vector.multi_reduction <add>, %544, %cst_221 [1] : vector<16x16xf32> to vector<16xf32>
    %546 = vector.shape_cast %545 : vector<16xf32> to vector<16x1xf32>
    %547 = tpu.reciprocal %546 {approx = true} : vector<16x1xf32> -> vector<16x1xf32>
    %548 = vector.broadcast %547 : vector<16x1xf32> to vector<16x16xf32>
    %549 = arith.mulf %544, %548 : vector<16x16xf32>
    %550 = arith.truncf %549 : vector<16x16xf32> to vector<16x16xbf16>
    %cst_222 = arith.constant dense<0.000000e+00> : vector<16x8xf32>
    %551 = tpu.matmul %550, %535, %cst_222 {dimension_numbers = #tpu.dot_dimension_numbers<[1], [0], [0], [1], [0, 0, 1, 1], [], []>} : vector<16x16xbf16>, vector<16x8xbf16>, vector<16x8xf32> -> vector<16x8xf32>
    %552 = vector.extract_strided_slice %513 {offsets = [0, 16], sizes = [16, 8], strides = [1, 1]} : vector<16x96xbf16> to vector<16x8xbf16>
    %553 = vector.extract_strided_slice %513 {offsets = [0, 48], sizes = [16, 8], strides = [1, 1]} : vector<16x96xbf16> to vector<16x8xbf16>
    %554 = vector.extract_strided_slice %513 {offsets = [0, 80], sizes = [16, 8], strides = [1, 1]} : vector<16x96xbf16> to vector<16x8xbf16>
    %cst_223 = arith.constant dense<0.000000e+00> : vector<16x16xf32>
    %555 = tpu.matmul %552, %553, %cst_223 {dimension_numbers = #tpu.dot_dimension_numbers<[1], [1], [0], [0], [0, 0, 1, 0], [], []>} : vector<16x8xbf16>, vector<16x8xbf16>, vector<16x16xf32> -> vector<16x16xf32>
    %cst_224 = arith.constant 0.353553385 : f32
    %556 = vector.broadcast %cst_224 : f32 to vector<16x16xf32>
    %557 = arith.mulf %555, %556 : vector<16x16xf32>
    %558 = arith.addf %557, %353 : vector<16x16xf32>
    %cst_225 = arith.constant dense<0xFF800000> : vector<16xf32>
    %559 = vector.multi_reduction <maximumf>, %558, %cst_225 [1] : vector<16x16xf32> to vector<16xf32>
    %560 = vector.shape_cast %559 : vector<16xf32> to vector<16x1xf32>
    %561 = vector.broadcast %560 : vector<16x1xf32> to vector<16x16xf32>
    %562 = arith.subf %558, %561 : vector<16x16xf32>
    %563 = math.exp %562 : vector<16x16xf32>
    %cst_226 = arith.constant dense<0.000000e+00> : vector<16xf32>
    %564 = vector.multi_reduction <add>, %563, %cst_226 [1] : vector<16x16xf32> to vector<16xf32>
    %565 = vector.shape_cast %564 : vector<16xf32> to vector<16x1xf32>
    %566 = tpu.reciprocal %565 {approx = true} : vector<16x1xf32> -> vector<16x1xf32>
    %567 = vector.broadcast %566 : vector<16x1xf32> to vector<16x16xf32>
    %568 = arith.mulf %563, %567 : vector<16x16xf32>
    %569 = arith.truncf %568 : vector<16x16xf32> to vector<16x16xbf16>
    %cst_227 = arith.constant dense<0.000000e+00> : vector<16x8xf32>
    %570 = tpu.matmul %569, %554, %cst_227 {dimension_numbers = #tpu.dot_dimension_numbers<[1], [0], [0], [1], [0, 0, 1, 1], [], []>} : vector<16x16xbf16>, vector<16x8xbf16>, vector<16x8xf32> -> vector<16x8xf32>
    %571 = vector.extract_strided_slice %513 {offsets = [0, 24], sizes = [16, 8], strides = [1, 1]} : vector<16x96xbf16> to vector<16x8xbf16>
    %572 = vector.extract_strided_slice %513 {offsets = [0, 56], sizes = [16, 8], strides = [1, 1]} : vector<16x96xbf16> to vector<16x8xbf16>
    %573 = vector.extract_strided_slice %513 {offsets = [0, 88], sizes = [16, 8], strides = [1, 1]} : vector<16x96xbf16> to vector<16x8xbf16>
    %cst_228 = arith.constant dense<0.000000e+00> : vector<16x16xf32>
    %574 = tpu.matmul %571, %572, %cst_228 {dimension_numbers = #tpu.dot_dimension_numbers<[1], [1], [0], [0], [0, 0, 1, 0], [], []>} : vector<16x8xbf16>, vector<16x8xbf16>, vector<16x16xf32> -> vector<16x16xf32>
    %cst_229 = arith.constant 0.353553385 : f32
    %575 = vector.broadcast %cst_229 : f32 to vector<16x16xf32>
    %576 = arith.mulf %574, %575 : vector<16x16xf32>
    %577 = arith.addf %576, %353 : vector<16x16xf32>
    %cst_230 = arith.constant dense<0xFF800000> : vector<16xf32>
    %578 = vector.multi_reduction <maximumf>, %577, %cst_230 [1] : vector<16x16xf32> to vector<16xf32>
    %579 = vector.shape_cast %578 : vector<16xf32> to vector<16x1xf32>
    %580 = vector.broadcast %579 : vector<16x1xf32> to vector<16x16xf32>
    %581 = arith.subf %577, %580 : vector<16x16xf32>
    %582 = math.exp %581 : vector<16x16xf32>
    %cst_231 = arith.constant dense<0.000000e+00> : vector<16xf32>
    %583 = vector.multi_reduction <add>, %582, %cst_231 [1] : vector<16x16xf32> to vector<16xf32>
    %584 = vector.shape_cast %583 : vector<16xf32> to vector<16x1xf32>
    %585 = tpu.reciprocal %584 {approx = true} : vector<16x1xf32> -> vector<16x1xf32>
    %586 = vector.broadcast %585 : vector<16x1xf32> to vector<16x16xf32>
    %587 = arith.mulf %582, %586 : vector<16x16xf32>
    %588 = arith.truncf %587 : vector<16x16xf32> to vector<16x16xbf16>
    %cst_232 = arith.constant dense<0.000000e+00> : vector<16x8xf32>
    %589 = tpu.matmul %588, %573, %cst_232 {dimension_numbers = #tpu.dot_dimension_numbers<[1], [0], [0], [1], [0, 0, 1, 1], [], []>} : vector<16x16xbf16>, vector<16x8xbf16>, vector<16x8xf32> -> vector<16x8xf32>
    %590 = tpu.concatenate %532, %551, %570, %589 in 1 : vector<16x8xf32>, vector<16x8xf32>, vector<16x8xf32>, vector<16x8xf32> -> vector<16x32xf32>
    %591 = arith.truncf %590 : vector<16x32xf32> to vector<16x32xbf16>
    %cst_233 = arith.constant dense<0.000000e+00> : vector<16x32xf32>
    %592 = tpu.matmul %591, %492, %cst_233 {dimension_numbers = #tpu.dot_dimension_numbers<[1], [0], [0], [1], [0, 0, 1, 1], [], []>} : vector<16x32xbf16>, vector<32x32xbf16>, vector<16x32xf32> -> vector<16x32xf32>
    %593 = arith.addf %486, %592 : vector<16x32xf32>
    %594 = arith.mulf %593, %593 : vector<16x32xf32>
    %cst_234 = arith.constant dense<0.000000e+00> : vector<16xf32>
    %595 = vector.multi_reduction <add>, %594, %cst_234 [1] : vector<16x32xf32> to vector<16xf32>
    %596 = vector.shape_cast %595 : vector<16xf32> to vector<16x1xf32>
    %cst_235 = arith.constant 3.200000e+01 : f32
    %597 = vector.broadcast %cst_235 : f32 to vector<16x1xf32>
    %598 = arith.divf %596, %597 : vector<16x1xf32>
    %cst_236 = arith.constant 9.99999997E-7 : f32
    %599 = vector.broadcast %cst_236 : f32 to vector<16x1xf32>
    %600 = arith.addf %598, %599 : vector<16x1xf32>
    %601 = math.rsqrt %600 : vector<16x1xf32>
    %602 = vector.broadcast %601 : vector<16x1xf32> to vector<16x32xf32>
    %603 = arith.mulf %593, %602 : vector<16x32xf32>
    %604 = vector.broadcast %494 : vector<1x32xf32> to vector<16x32xf32>
    %605 = arith.mulf %603, %604 : vector<16x32xf32>
    %606 = arith.truncf %605 : vector<16x32xf32> to vector<16x32xbf16>
    %cst_237 = arith.constant dense<0.000000e+00> : vector<16x128xf32>
    %607 = tpu.matmul %606, %496, %cst_237 {dimension_numbers = #tpu.dot_dimension_numbers<[1], [0], [0], [1], [0, 0, 1, 1], [], []>} : vector<16x32xbf16>, vector<32x128xbf16>, vector<16x128xf32> -> vector<16x128xf32>
    %608 = vector.extract_strided_slice %607 {offsets = [0, 0], sizes = [16, 64], strides = [1, 1]} : vector<16x128xf32> to vector<16x64xf32>
    %609 = vector.extract_strided_slice %607 {offsets = [0, 64], sizes = [16, 64], strides = [1, 1]} : vector<16x128xf32> to vector<16x64xf32>
    %610 = arith.negf %608 : vector<16x64xf32>
    %611 = math.exp %610 : vector<16x64xf32>
    %cst_238 = arith.constant 1.000000e+00 : f32
    %612 = vector.broadcast %cst_238 : f32 to vector<16x64xf32>
    %613 = arith.addf %612, %611 : vector<16x64xf32>
    %614 = arith.divf %612, %613 : vector<16x64xf32>
    %615 = arith.mulf %608, %614 : vector<16x64xf32>
    %616 = arith.mulf %615, %609 : vector<16x64xf32>
    %617 = arith.truncf %616 : vector<16x64xf32> to vector<16x64xbf16>
    %cst_239 = arith.constant dense<0.000000e+00> : vector<16x32xf32>
    %618 = tpu.matmul %617, %498, %cst_239 {dimension_numbers = #tpu.dot_dimension_numbers<[1], [0], [0], [1], [0, 0, 1, 1], [], []>} : vector<16x64xbf16>, vector<64x32xbf16>, vector<16x32xf32> -> vector<16x32xf32>
    %619 = arith.addf %593, %618 : vector<16x32xf32>
    %c0_240 = arith.constant 0 : index
    %c0_241 = arith.constant 0 : index
    %620 = vector.load %arg13[%c0_240, %c0_241] : memref<1x32xf32, #tpu.memory_space<vmem>>, vector<1x32xf32>
    %621 = arith.mulf %619, %619 : vector<16x32xf32>
    %cst_242 = arith.constant dense<0.000000e+00> : vector<16xf32>
    %622 = vector.multi_reduction <add>, %621, %cst_242 [1] : vector<16x32xf32> to vector<16xf32>
    %623 = vector.shape_cast %622 : vector<16xf32> to vector<16x1xf32>
    %cst_243 = arith.constant 3.200000e+01 : f32
    %624 = vector.broadcast %cst_243 : f32 to vector<16x1xf32>
    %625 = arith.divf %623, %624 : vector<16x1xf32>
    %cst_244 = arith.constant 9.99999997E-7 : f32
    %626 = vector.broadcast %cst_244 : f32 to vector<16x1xf32>
    %627 = arith.addf %625, %626 : vector<16x1xf32>
    %628 = math.rsqrt %627 : vector<16x1xf32>
    %629 = vector.broadcast %628 : vector<16x1xf32> to vector<16x32xf32>
    %630 = arith.mulf %619, %629 : vector<16x32xf32>
    %631 = vector.broadcast %620 : vector<1x32xf32> to vector<16x32xf32>
    %632 = arith.mulf %630, %631 : vector<16x32xf32>
    %633 = arith.truncf %632 : vector<16x32xf32> to vector<16x32xbf16>
    %c0_245 = arith.constant 0 : index
    %c0_246 = arith.constant 0 : index
    %634 = vector.load %arg20[%c0_245, %c0_246] : memref<32x64xbf16, #tpu.memory_space<vmem>>, vector<32x64xbf16>
    %cst_247 = arith.constant dense<0.000000e+00> : vector<16x64xf32>
    %635 = tpu.matmul %633, %634, %cst_247 {dimension_numbers = #tpu.dot_dimension_numbers<[1], [0], [0], [1], [0, 0, 1, 1], [], []>} : vector<16x32xbf16>, vector<32x64xbf16>, vector<16x64xf32> -> vector<16x64xf32>
    %cst_248 = arith.constant 0.000000e+00 : f32
    %636 = vector.broadcast %cst_248 : f32 to vector<16x32xf32>
    %637 = tpu.concatenate %635, %632, %636 in 1 : vector<16x64xf32>, vector<16x32xf32>, vector<16x32xf32> -> vector<16x128xf32>
    %c0_249 = arith.constant 0 : index
    %c0_250 = arith.constant 0 : index
    %c0_251 = arith.constant 0 : index
    %638 = vector.load %arg21[%c0_249, %c0_250, %c0_251] : memref<1x16x128xf32, #tpu.memory_space<vmem>>, vector<1x16x128xf32>
    %639 = vector.shape_cast %638 : vector<1x16x128xf32> to vector<16x128xf32>
    %640 = vector.shape_cast %637 : vector<16x128xf32> to vector<1x16x128xf32>
    tpu.vector_store %arg21[%c0_249, %c0_250, %c0_251], %640 {strides = array<i32>} : memref<1x16x128xf32, #tpu.memory_space<vmem>>, vector<1x16x128xf32>,
    return
  }
  func.func @transform_0(%arg0: i32) -> (i32, i32, i32) {
    %c0_i32 = arith.constant 0 : i32
    %c0_i32_0 = arith.constant 0 : i32
    %c0_i32_1 = arith.constant 0 : i32
    return %arg0, %c0_i32, %c0_i32_0 : i32, i32, i32
  }
  func.func @transform_1(%arg0: i32) -> (i32, i32, i32) {
    %c0_i32 = arith.constant 0 : i32
    %c0_i32_0 = arith.constant 0 : i32
    %c0_i32_1 = arith.constant 0 : i32
    return %arg0, %c0_i32, %c0_i32_0 : i32, i32, i32
  }
  func.func @transform_2(%arg0: i32) -> (i32, i32, i32) {
    %c0_i32 = arith.constant 0 : i32
    %c0_i32_0 = arith.constant 0 : i32
    %c0_i32_1 = arith.constant 0 : i32
    return %arg0, %c0_i32, %c0_i32_0 : i32, i32, i32
  }
  func.func @transform_3(%arg0: i32) -> (i32, i32, i32) {
    %c0_i32 = arith.constant 0 : i32
    %c0_i32_0 = arith.constant 0 : i32
    %c0_i32_1 = arith.constant 0 : i32
    return %arg0, %c0_i32, %c0_i32_0 : i32, i32, i32
  }
  func.func @transform_4(%arg0: i32) -> (i32, i32, i32) {
    %c0_i32 = arith.constant 0 : i32
    %c0_i32_0 = arith.constant 0 : i32
    %c0_i32_1 = arith.constant 0 : i32
    return %arg0, %c0_i32, %c0_i32_0 : i32, i32, i32
  }
  func.func @transform_5(%arg0: i32) -> (i32, i32, i32) {
    %c0_i32 = arith.constant 0 : i32
    %c0_i32_0 = arith.constant 0 : i32
    %c0_i32_1 = arith.constant 0 : i32
    %c0_i32_2 = arith.constant 0 : i32
    return %c0_i32, %c0_i32_0, %c0_i32_1 : i32, i32, i32
  }
  func.func @transform_6(%arg0: i32) -> (i32, i32, i32) {
    %c0_i32 = arith.constant 0 : i32
    %c0_i32_0 = arith.constant 0 : i32
    %c0_i32_1 = arith.constant 0 : i32
    %c0_i32_2 = arith.constant 0 : i32
    return %c0_i32, %c0_i32_0, %c0_i32_1 : i32, i32, i32
  }
  func.func @transform_7(%arg0: i32) -> (i32, i32, i32) {
    %c0_i32 = arith.constant 0 : i32
    %c0_i32_0 = arith.constant 0 : i32
    %c0_i32_1 = arith.constant 0 : i32
    %c0_i32_2 = arith.constant 0 : i32
    return %c0_i32, %c0_i32_0, %c0_i32_1 : i32, i32, i32
  }
  func.func @transform_8(%arg0: i32) -> (i32, i32, i32) {
    %c0_i32 = arith.constant 0 : i32
    %c0_i32_0 = arith.constant 0 : i32
    %c0_i32_1 = arith.constant 0 : i32
    %c0_i32_2 = arith.constant 0 : i32
    return %c0_i32, %c0_i32_0, %c0_i32_1 : i32, i32, i32
  }
  func.func @transform_9(%arg0: i32) -> (i32, i32, i32) {
    %c0_i32 = arith.constant 0 : i32
    %c0_i32_0 = arith.constant 0 : i32
    %c0_i32_1 = arith.constant 0 : i32
    %c0_i32_2 = arith.constant 0 : i32
    return %c0_i32, %c0_i32_0, %c0_i32_1 : i32, i32, i32
  }
  func.func @transform_10(%arg0: i32) -> (i32, i32, i32) {
    %c0_i32 = arith.constant 0 : i32
    %c0_i32_0 = arith.constant 0 : i32
    %c0_i32_1 = arith.constant 0 : i32
    %c0_i32_2 = arith.constant 0 : i32
    return %c0_i32, %c0_i32_0, %c0_i32_1 : i32, i32, i32
  }
  func.func @transform_11(%arg0: i32) -> (i32, i32, i32) {
    %c0_i32 = arith.constant 0 : i32
    %c0_i32_0 = arith.constant 0 : i32
    %c0_i32_1 = arith.constant 0 : i32
    %c0_i32_2 = arith.constant 0 : i32
    return %c0_i32, %c0_i32_0, %c0_i32_1 : i32, i32, i32
  }
  func.func @transform_12(%arg0: i32) -> (i32, i32) {
    %c0_i32 = arith.constant 0 : i32
    %c0_i32_0 = arith.constant 0 : i32
    %c0_i32_1 = arith.constant 0 : i32
    return %c0_i32, %c0_i32_0 : i32, i32
  }
  func.func @transform_13(%arg0: i32) -> (i32, i32) {
    %c0_i32 = arith.constant 0 : i32
    %c0_i32_0 = arith.constant 0 : i32
    %c0_i32_1 = arith.constant 0 : i32
    return %c0_i32, %c0_i32_0 : i32, i32
  }
  func.func @transform_14(%arg0: i32) -> (i32, i32) {
    %c0_i32 = arith.constant 0 : i32
    %c0_i32_0 = arith.constant 0 : i32
    %c0_i32_1 = arith.constant 0 : i32
    return %c0_i32, %c0_i32_0 : i32, i32
  }
  func.func @transform_15(%arg0: i32) -> (i32, i32) {
    %c0_i32 = arith.constant 0 : i32
    %c0_i32_0 = arith.constant 0 : i32
    %c0_i32_1 = arith.constant 0 : i32
    return %c0_i32, %c0_i32_0 : i32, i32
  }
  func.func @transform_16(%arg0: i32) -> (i32, i32) {
    %c0_i32 = arith.constant 0 : i32
    %c0_i32_0 = arith.constant 0 : i32
    %c0_i32_1 = arith.constant 0 : i32
    return %c0_i32, %c0_i32_0 : i32, i32
  }
  func.func @transform_17(%arg0: i32) -> (i32, i32) {
    %c0_i32 = arith.constant 0 : i32
    %c0_i32_0 = arith.constant 0 : i32
    %c0_i32_1 = arith.constant 0 : i32
    return %c0_i32, %c0_i32_0 : i32, i32
  }
  func.func @transform_18(%arg0: i32) -> (i32, i32) {
    %c0_i32 = arith.constant 0 : i32
    %c0_i32_0 = arith.constant 0 : i32
    %c0_i32_1 = arith.constant 0 : i32
    return %c0_i32, %c0_i32_0 : i32, i32
  }
  func.func @transform_19(%arg0: i32) -> (i32, i32) {
    %c0_i32 = arith.constant 0 : i32
    %c0_i32_0 = arith.constant 0 : i32
    %c0_i32_1 = arith.constant 0 : i32
    return %c0_i32, %c0_i32_0 : i32, i32
  }
  func.func @transform_20(%arg0: i32) -> (i32, i32, i32) {
    %c0_i32 = arith.constant 0 : i32
    %c0_i32_0 = arith.constant 0 : i32
    %c0_i32_1 = arith.constant 0 : i32
    return %arg0, %c0_i32, %c0_i32_0 : i32, i32, i32
  }
  func.func @transform_21(%arg0: i32) -> (i32, i32, i32) {
    %c0_i32 = arith.constant 0 : i32
    %c0_i32_0 = arith.constant 0 : i32
    %c0_i32_1 = arith.constant 0 : i32
    return %arg0, %c0_i32, %c0_i32_0 : i32, i32, i32
  }
}

</mosaic_0001>

<bundles_post_ra>
// kernel: vae_forward.1
= control target key start
LH: loop header
LB: loop body
LE: loop exit
PB: predicated region body
PF: predicated region fallthrough
CT: control target
= control target key end

     0   :  { %s6582_s0 = inlined_call_operand.vmem [shape: f32[2,8,32], index: 0, kind: input, shape index: {}]   ;;  %s6583_s1 = inlined_call_operand.vmem [shape: f32[2,1,8], index: 1, kind: input, shape index: {}]   ;;  %s6584_s2 = inlined_call_operand.vmem [shape: f32[2,1,16], index: 2, kind: input, shape index: {}]   ;;  %s6585_s3 = inlined_call_operand.vmem [shape: f32[2,16,32], index: 3, kind: input, shape index: {}]   ;;  %s6586_s4 = inlined_call_operand.vmem [shape: f32[2,1,16], index: 4, kind: input, shape index: {}]   ;;  %s6587_s5 = inlined_call_operand.vmem [shape: f32[2,1,32], index: 5, kind: input, shape index: {}]   ;;  %s6588_s6 = inlined_call_operand.vmem [shape: bf16[2,32,96], index: 6, kind: input, shape index: {}]   ;;  %s6589_s7 = inlined_call_operand.vmem [shape: bf16[2,32,96], index: 7, kind: input, shape index: {}]   ;;  %s6590_s8 = inlined_call_operand.vmem [shape: bf16[2,32,32], index: 8, kind: input, shape index: {}]   ;;  %s6591_s9 = inlined_call_operand.vmem [shape: f32[2,1,32], index: 9, kind: input, shape index: {}]   ;;  %s6592_s10 = inlined_call_operand.vmem [shape: bf16[2,32,128], index: 10, kind: input, shape index: {}]   ;;  %s6593_s11 = inlined_call_operand.vmem [shape: bf16[2,64,32], index: 11, kind: input, shape index: {}]   ;;  %s6594_s12 = inlined_call_operand.vmem [shape: f32[1,32], index: 12, kind: input, shape index: {}]   ;;  %s6595_s13 = inlined_call_operand.vmem [shape: f32[1,32], index: 13, kind: input, shape index: {}]   ;;  %s6596_s14 = inlined_call_operand.<no memory space> [shape: f32[1,1], index: 14, kind: input, shape index: {}]   ;;  %s6597_s15 = inlined_call_operand.vmem [shape: bf16[32,16], index: 15, kind: input, shape index: {}]   ;;  %s6598_s16 = inlined_call_operand.vmem [shape: f32[1,16], index: 16, kind: input, shape index: {}]   ;;  %s6599_s17 = inlined_call_operand.vmem [shape: bf16[16,32], index: 17, kind: input, shape index: {}]   ;;  %s6600_s18 = inlined_call_operand.vmem [shape: f32[1,32], index: 18, kind: input, shape index: {}]   ;;  %s6601_s19 = inlined_call_operand.vmem [shape: bf16[32,64], index: 19, kind: input, shape index: {}]   ;;  %s6602_s20 = inlined_call_operand.vmem [shape: f32[2,16,128], index: 20, kind: output, shape index: {0}]   ;;  %s6603_s21 = inlined_call_operand.hbm [shape: f32[2,1,128], index: 21, kind: output, shape index: {1}]  }
   0x1   :  { %6647 = sst [smem:[#allocation14_spill]] %s6582_s0  ;;  %v27_v0 = vstv %s6596_s14 }
   0x2   :  { %6648 = sst [smem:[#allocation15_spill]] %s6583_s1  ;;  %28 = vst [vmem:[#allocation2] sm:$0x1] %v27_v0 }
   0x3   :  { %6649 = sst [smem:[#allocation16_spill]] %s6584_s2 }
   0x4   :  { %6650 = sst [smem:[#allocation17_spill]] %s6585_s3 }
   0x5   :  { %6651 = sst [smem:[#allocation18_spill]] %s6586_s4 }
   0x6   :  { %6652 = sst [smem:[#allocation19_spill]] %s6587_s5 }
   0x7   :  { %6653 = sst [smem:[#allocation20_spill]] %s6588_s6 }
   0x8   :  { %6654 = sst [smem:[#allocation21_spill]] %s6591_s9 }
   0x9   :  { %6655 = sst [smem:[#allocation22_spill]] %s6594_s12 }
   0xa   :  { %6656 = sst [smem:[#allocation23_spill]] %s6595_s13 }
   0xb   :  { %6657 = sst [smem:[#allocation24_spill]] %s6597_s15 }
   0xc   :  { %6658 = sst [smem:[#allocation25_spill]] %s6598_s16 }
   0xd   :  { %6659 = sst [smem:[#allocation26_spill]] %s6599_s17 }
   0xe   :  { %6660 = sst [smem:[#allocation27_spill]] %s6601_s19 }
   0xf   :  { %6661 = sst [smem:[#allocation28_spill]] %s6602_s20 }
  0x10   :  { %6662 = sst [smem:[#allocation29_spill]] %s6603_s21 }
  0x11   :  { %29 = vsyncpa [#allocation4], 0 }
  0x12   :  { %31 = vsyncpa [#allocation4 + $0x1], 0  ;;  %s5705_s26 = smov 0   ;;  %s5707_s27 = smov 0  }
  0x13   :  { %s5709_s3 = smov 0   ;;  %s5711_s28 = smov 0  }
  0x14 LB: > { %6663 = sst [smem:[#allocation6_spill]] %s5558_s26  ;;  %s5726_s14 = sadd.s32 4294967295, %s5570_s28   ;;  %s5570_s28 = sphi %s5711_s28, %s6715_s28   ;;  %s5566_s3 = sphi %s5709_s3, %s6717_s3   ;;  %s5562_s27 = sphi %s5707_s27, %s6719_s27   ;;  %s5558_s26 = sphi %s5705_s26, %s6718_s26  }
  0x15   : > { %6664 = sst [smem:[#allocation7_spill]] %s5566_s3  ;;  %s4544_s29 = sadd.s32 4294967294, %s5570_s28  }
  0x16   : > { %6665 = sst [smem:[#allocation8_spill]] %s5570_s28  ;;  %s5730_s0 = sadd.s32 1, %s5570_s28  }
  0x17   : > { %6666 = sst [smem:[#allocation9_spill]] %s5726_s14  ;;  %s515_s4 = sadd.s32 1, %s5566_s3 }
  0x18   : > { %6667 = sst [smem:[#allocation10_spill]] %s5730_s0  ;;  %s512_s30 = ssub.s32 %s5570_s28, %s5730_s0 }
  0x19   : > { %p525_p0 = scmp.ne.s32.totalorder %s5566_s3, %s5562_s27  ;;  %p513_p1 = scmp.eq.s32.totalorder %s512_s30, 0 }
  0x1a   : > { %p526_p2 = scmp.eq.s32.totalorder %s5726_s14, 1  ;;  %p531_p3 = scmp.ne.s32.totalorder %s5562_s27, %s5558_s26 }
  0x1b   : > { %p532_p4 = scmp.eq.s32.totalorder %s4544_s29, 1  ;;  %p4547_p7 = scmp.ge.s32.totalorder %s5570_s28, 1 }
  0x1c   : > { %s5741_s5 = scalar_select %p513_p1, %s5566_s3, %s515_s4  }
  0x1d   : > { %p5743_p5 = por %p526_p2, %p525_p0  ;;  %p5747_p6 = por %p532_p4, %p531_p3 }
  0x1e   : > { %6668 = sst [smem:[#allocation11_spill]] %s5741_s5  ;;  %p628_p8 = scmp.lt.s32.totalorder %s5570_s28, 3 }
  0x1f   : > { %s6669_s22 = scalar_select %p5743_p5, 1, 0 }
  0x20   : > { %s6671_s23 = scalar_select %p5747_p6, 1, 0 }
  0x21   : > { %6670 = sst [smem:[#allocation12_spill]] %s6669_s22  ;;  %p629_p9 = pnand %p4547_p7, %p628_p8 }
  0x22   : > { %6672 = sst [smem:[#allocation13_spill]] %s6671_s23  ;;  %p705_p10 = scmp.lt.s32.totalorder (!%p629_p9), %s5726_s14, 1  ;;  %vm754_vm0 = vcmask (!%p629_p9), 261120   ;;  %v5572_v6 = vmov (!%p629_p9), 0.0   ;;  %vm5573_vm1 = vmmov (!%p629_p9), 0   ;;  %vm830_vm2 = vcmask (!%p629_p9), 64512  }
  0x23   : > { %632 = sbr.rel (%p629_p9) target bundleno = 11168 (0x2ba0), region = 100  ;;  %s6673_s29 = sld [smem:[#allocation14_spill]] (!%p629_p9)  ;;  %4849 = vmatprep.subr.bf16.mxu0 (!%p629_p9), %v5572_v6  ;;  %4853 = vmatprep.mubr.msk.bf16.mxu0 (!%p629_p9), %vm5573_vm1, %v5572_v6  ;;  %v879_v31 = vlaneseq (!%p629_p9)  ;;  %vm902_vm3 = vcmask (!%p629_p9), 1043456   ;;  %vm1295_vm4 = vcmask (!%p629_p9), 130048   ;;  %vm1297_vm5 = vcmask (!%p629_p9), 195584  }
  0x24   : > { %s6674_s6 = sld [smem:[#allocation20_spill]] (!%p629_p9)  ;;  %4857 = vmatprep.subr.bf16.mxu1 (!%p629_p9), %v5572_v6  ;;  %4859 = vmatprep.mubr.msk.bf16.mxu1 (!%p629_p9), %vm5573_vm1, %v5572_v6  ;;  %s6675_s5 = sld [smem:[#allocation19_spill]] (!%p629_p9)  ;;  %vm1464_vm6 = vcmask (!%p629_p9), 523264   ;;  %vm2358_vm8 = vcmask (!%p629_p9), 57344  }
  0x25   : > { %s6624_s2 = smov (!%p629_p9), 96   ;;  %s6620_s25 = smov (!%p629_p9), 120   ;;  %v5825_v32 = vshrl.u32 (!%p629_p9), %v879_v31, 7 }
  0x26   : > { %s6608_s30 = smov (!%p629_p9), 72   ;;  %s6612_s3 = smov (!%p629_p9), 104  }
  0x27   : > { %v5832_v33 = vsub.s32 (!%p629_p9), 0, %v5825_v32  ;;  %s6616_s0 = smov (!%p629_p9), 48   ;;  %s6677_s9 = sld [smem:[#allocation21_spill]] (!%p629_p9)  ;;  %vm2537_vm9 = vcmp.eq.s32.totalorder (!%p629_p9), %v5825_v32, 4 }
  0x28   : > { %s6686_s23 = smov (!%p629_p9), 48   ;;  %s6687_s26 = smov (!%p629_p9), 40  }
  0x29   : > { %s6690_s19 = smov (!%p629_p9), 24   ;;  %s6691_s21 = smov (!%p629_p9), 64  }
  0x2a   : > { %s5755_s1 = scalar_select %p705_p10, %s5726_s14, 1  ;;  %v5309_v4 = vld [vmem:[%s6674_s6] sm:$0xff]   ;;  %v5310_v5 = vld [vmem:[%s6674_s6 + $0x8] sm:$0xff]  }
  0x2b   : > { %4850 = vmatpush3.bf16.msra.mxu0 %v5309_v4  ;;  %v4553_v11 = vld [vmem:[%s6675_s5] ss:$0 sm:$0xff]  ;;  %s6689_s14 = smov 16   ;;  %s6692_s12 = sld [smem:[#allocation22_spill]] }
  0x2c   : > { %s4548_s24 = sshll.u32 %s5755_s1, 3  ;;  %4851 = vmatprep.subr.bf16.mxu0 %v5572_v6  ;;  %s6693_s13 = sld [smem:[#allocation23_spill]] }
  0x2d   : > { %s708_s4 = scalar_lea.vmem %s6673_s29, %s4548_s24  ;;  %s6632_s24 = smov 88  }
  0x2e   : > { %v5761_v1 = vld [vmem:[%s708_s4] sm:$0xff]  ;;  %s6610_s29 = smov 80   ;;  %s6622_s4 = smov 112  }
  0x2f   : > { %v753_v2 = vmul.f32 %v5761_v1, %v5761_v1  ;;  %4852 = vmatpush3.bf16.msra.mxu0 %v5310_v5  ;;  %s6694_s15 = sld [smem:[#allocation24_spill]]  ;;  %s6695_s17 = sld [smem:[#allocation26_spill]] }
  0x30   : > { %4863 = vmatprep.subr.bf16.mxu0 %v5572_v6  ;;  %s6697_s16 = sld [smem:[#allocation25_spill]] }
  0x31   : > { %v755_v3 = vsel %vm754_vm0, %v753_v2, 0.0 }
  0x32   : > { %756 = vadd.xlane.f32.xlu0 %v755_v3 }
  0xbf   : > { %v757_v7 = vpop.xlane.xlu0 %756 }
  0xc0   : > { %v759_v8 = vmul.f32 0.03125, %v757_v7 }
  0xc2   : > { %v760_v9 = vadd.f32 1e-06, %v759_v8 }
  0xc4   : > { %5354 = vrsqrt.f32 %v760_v9 }
  0xce   : > { %v5355_v10 = vpop.eup %5354 }
  0xcf   : > { %v762_v12 = vmul.f32 %v5355_v10, %v5761_v1 }
  0xd1   : > { %v769_v13 = vmul.f32 %v4553_v11, %v762_v12 }
  0xd3   : > { %v770_v14 = vpack.c.bf16 %v769_v13, %v769_v13 }
  0xd5   : > { %4854 = vmatmul.mubr.msk.bf16.vlgmr.msra.gmra.mrb[0].mxu0 %vm754_vm0, %v770_v14 }
  0xd6   : > { %4865 = vmatprep.mubr.msk.bf16.mxu0 %vm5573_vm1, %v5572_v6 }
 0x1a8   : > { %v820_v15 = vpop.f32.mrb[0].mxu0 }
 0x1a9   : > { %v5787_v16 = vpack.c.bf16 %v820_v15, %v820_v15  ;;  %v4855_v17 = vpop.f32.mrb[1].mxu0 }
 0x1aa   : > { %v823_v18 = vpop.f32.mrb[2].mxu0 }
 0x1ab   : > { %948 = vrot.lane.b32.xlu1 %v5787_v16, %s6632_s24  ;;  %828 = vrot.lane.b32.xlu0 %v5787_v16, %s6624_s2  ;;  %v4856_v19 = vpop.f32.mrb[3].mxu0  ;;  %s6628_s2 = smov 16   ;;  %s6679_s24 = smov 96  }
 0x1af   : > { %946 = vrot.lane.b32.xlu1 %v5787_v16, %s6620_s25  ;;  %s6680_s25 = smov 112  }
 0x1b3   : > { %1060 = vrot.lane.b32.xlu1 %v5787_v16, %s6610_s29  ;;  %s6676_s29 = sld [smem:[#allocation15_spill]] }
 0x1b7   : > { %1058 = vrot.lane.b32.xlu1 %v5787_v16, %s6622_s4  ;;  %s6681_s4 = smov 120  }
 0x1bb   : > { %1172 = vrot.lane.b32.xlu1 %v5787_v16, %s6608_s30  ;;  %s6636_s30 = smov 64  }
 0x1bf   : > { %1170 = vrot.lane.b32.xlu1 %v5787_v16, %s6612_s3  ;;  %s711_s3 = scalar_lea.vmem %s6676_s29, %s5755_s1  ;;  %s6618_s29 = smov 56  }
 0x1c0   : > { %v5834_v34 = vld [vmem:[%s711_s3] sm:$0x1]  ;;  %s6614_s3 = smov 40  }
 0x1c1   : > { %v5838_v35 = vrot.slane %v5834_v34, %v5832_v33  ;;  %vm2355_vm7 = vcmp.ge.f32.partialorder %v5834_v34, -0.5  ;;  %v5329_v34 = vld [vmem:[%s6694_s15] sm:$0xff]  }
 0x21d   : > { %v949_v20 = vpop.permute.xlu1 %948  ;;  %v829_v21 = vpop.permute.xlu0 %828 }
 0x21e   : > { %v835_v22 = vsel %vm830_vm2, %v829_v21, 0  ;;  %v954_v24 = vsel %vm830_vm2, %v949_v20, 0 }
 0x21f   : > { %4858 = vmatpush3.bf16.xpose.msra.mxu1 %v835_v22 }
 0x220   : > { %4869 = vmatprep.subr.bf16.mxu1 %v5572_v6 }
 0x221   : > { %v947_v23 = vpop.permute.xlu1 %946 }
 0x225   : > { %v1061_v25 = vpop.permute.xlu1 %1060 }
 0x226   : > { %4860 = vmatmul.mubr.msk.bf16.vlgmr.msra.gmra.mrb[0].mxu1 %vm830_vm2, %v5787_v16  ;;  %v1066_v27 = vsel %vm830_vm2, %v1061_v25, 0 }
 0x227   : > { %4870 = vmatpush3.bf16.xpose.msra.mxu1 %v954_v24  ;;  %4871 = vmatprep.mubr.msk.bf16.mxu1 %vm5573_vm1, %v5572_v6 }
 0x228   : > { %4881 = vmatprep.subr.bf16.mxu1 %v5572_v6 }
 0x229   : > { %v1059_v26 = vpop.permute.xlu1 %1058 }
 0x22d   : > { %v1173_v28 = vpop.permute.xlu1 %1172 }
 0x22e   : > { %4872 = vmatmul.mubr.msk.bf16.vlgmr.msra.gmra.mrb[4].mxu1 %vm830_vm2, %v947_v23  ;;  %v1178_v29 = vsel %vm830_vm2, %v1173_v28, 0 }
 0x22f   : > { %4882 = vmatpush3.bf16.xpose.msra.mxu1 %v1066_v27  ;;  %4883 = vmatprep.mubr.msk.bf16.mxu1 %vm5573_vm1, %v5572_v6 }
 0x230   : > { %4893 = vmatprep.subr.bf16.mxu1 %v5572_v6 }
 0x231   : > { %v1171_v30 = vpop.permute.xlu1 %1170 }
 0x236   : > { %4884 = vmatmul.mubr.msk.bf16.vlgmr.msra.gmra.mrb[8].mxu1 %vm830_vm2, %v1059_v26 }
 0x237   : > { %4894 = vmatpush3.bf16.xpose.msra.mxu1 %v1178_v29  ;;  %4895 = vmatprep.mubr.msk.bf16.mxu1 %vm5573_vm1, %v5572_v6 }
 0x238   : > { %4905 = vmatprep.subr.bf16.mxu1 %v5572_v6 }
 0x23e   : > { %4896 = vmatmul.mubr.msk.bf16.vlgmr.msra.gmra.mrb[12].mxu1 %vm830_vm2, %v1171_v30 }
 0x23f   : > { %4909 = vmatprep.mubr.msk.bf16.mxu1 %vm5573_vm1, %v5572_v6 }
 0x2f9   : > { %v871_v36 = vpop.f32.mrb[0].mxu1 }
 0x2fa   : > { %v877_v37 = vmul.f32 0.35355338, %v871_v36  ;;  %v4861_v38 = vpop.f32.mrb[1].mxu1 }
 0x2fb   : > { %v874_v39 = vpop.f32.mrb[2].mxu1 }
 0x2fc   : > { %v4862_v40 = vpop.f32.mrb[3].mxu1  ;;  %v884_v41 = vadd.f32 %v5838_v35, %v877_v37 }
 0x2fe   : > { %v885_v42 = vsel %vm830_vm2, %v884_v41, -inf }
 0x2ff   : > { %886 = vmax.xlane.f32.xlu1 %v885_v42 }
 0x301   : > { %v990_v43 = vpop.f32.mrb[4].mxu1 }
 0x302   : > { %v996_v44 = vmul.f32 0.35355338, %v990_v43  ;;  %v4873_v45 = vpop.f32.mrb[5].mxu1 }
 0x303   : > { %v993_v46 = vpop.f32.mrb[6].mxu1 }
 0x304   : > { %v4874_v47 = vpop.f32.mrb[7].mxu1  ;;  %v997_v48 = vadd.f32 %v996_v44, %v5838_v35 }
 0x306   : > { %v998_v49 = vsel %vm830_vm2, %v997_v48, -inf }
 0x307   : > { %999 = vmax.xlane.f32.xlu0 %v998_v49 }
 0x309   : > { %v1102_v50 = vpop.f32.mrb[8].mxu1 }
 0x30a   : > { %v1108_v51 = vmul.f32 0.35355338, %v1102_v50  ;;  %v4885_v52 = vpop.f32.mrb[9].mxu1 }
 0x30b   : > { %v1105_v53 = vpop.f32.mrb[10].mxu1 }
 0x30c   : > { %v4886_v54 = vpop.f32.mrb[11].mxu1  ;;  %v1109_v55 = vadd.f32 %v1108_v51, %v5838_v35 }
 0x30e   : > { %v1110_v56 = vsel %vm830_vm2, %v1109_v55, -inf }
 0x30f   : > { %1111 = vmax.xlane.f32.xlu0 %v1110_v56 }
 0x311   : > { %v1214_v57 = vpop.f32.mrb[12].mxu1 }
 0x312   : > { %v1220_v58 = vmul.f32 0.35355338, %v1214_v57  ;;  %v4897_v59 = vpop.f32.mrb[13].mxu1 }
 0x313   : > { %v1217_v60 = vpop.f32.mrb[14].mxu1  ;;  %v5311_v59 = vld [vmem:[%s6590_s8] sm:$0xff]  }
 0x314   : > { %v4898_v61 = vpop.f32.mrb[15].mxu1  ;;  %v1221_v62 = vadd.f32 %v1220_v58, %v5838_v35  ;;  %4906 = vmatpush3.bf16.msra.mxu1 %v5311_v59  ;;  %v5312_v60 = vld [vmem:[%s6590_s8 + $0x8] sm:$0xff]   ;;  %v5320_v59 = vld [vmem:[%s6674_s6 + $0x18] sm:$0xff]  }
 0x315   : > { %4907 = vmatprep.subr.bf16.mxu1 %v5572_v6 }
 0x316   : > { %v1222_v63 = vsel %vm830_vm2, %v1221_v62, -inf }
 0x317   : > { %1223 = vmax.xlane.f32.xlu1 %v1222_v63 }
 0x318   : > { %4908 = vmatpush3.bf16.msra.mxu1 %v5312_v60 }
 0x319   : > { %4921 = vmatprep.subr.bf16.mxu1 %v5572_v6 }
 0x38c   : > { %v887_v0 = vpop.xlane.xlu1 %886 }
 0x38d   : > { %v888_v2 = vsub.f32 %v884_v41, %v887_v0 }
 0x38f   : > { %v889_v3 = vmul.f32 1.442695, %v888_v2 }
 0x391   : > { %5356 = vpow2.f32 %v889_v3 }
 0x394   : > { %v1000_v4 = vpop.xlane.xlu0 %999 }
 0x395   : > { %v1001_v5 = vsub.f32 %v997_v48, %v1000_v4 }
 0x397   : > { %v1002_v7 = vmul.f32 1.442695, %v1001_v5 }
 0x399   : > { %5358 = vpow2.f32 %v1002_v7 }
 0x39b   : > { %v5357_v8 = vpop.eup %5356 }
 0x39c   : > { %v1112_v9 = vpop.xlane.xlu0 %1111  ;;  %v891_v10 = vsel %vm830_vm2, %v5357_v8, 0.0 }
 0x39d   : > { %v1113_v11 = vsub.f32 %v1109_v55, %v1112_v9  ;;  %892 = vadd.xlane.f32.xlu0 %v891_v10 }
 0x39f   : > { %v1114_v12 = vmul.f32 1.442695, %v1113_v11 }
 0x3a1   : > { %5360 = vpow2.f32 %v1114_v12 }
 0x3a3   : > { %v5359_v13 = vpop.eup %5358 }
 0x3a4   : > { %v1004_v14 = vsel %vm830_vm2, %v5359_v13, 0.0  ;;  %v1224_v18 = vpop.xlane.xlu1 %1223 }
 0x3a5   : > { %1005 = vadd.xlane.f32.xlu1 %v1004_v14  ;;  %v1225_v19 = vsub.f32 %v1221_v62, %v1224_v18 }
 0x3a7   : > { %v1226_v20 = vmul.f32 1.442695, %v1225_v19 }
 0x3a9   : > { %5362 = vpow2.f32 %v1226_v20 }
 0x3ab   : > { %v5361_v15 = vpop.eup %5360 }
 0x3ac   : > { %v1116_v17 = vsel %vm830_vm2, %v5361_v15, 0.0 }
 0x3ad   : > { %1117 = vadd.xlane.f32.xlu0 %v1116_v17 }
 0x3b3   : > { %v5363_v21 = vpop.eup %5362 }
 0x3b4   : > { %v1228_v22 = vsel %vm830_vm2, %v5363_v21, 0.0 }
 0x3b6   : > { %1010 = vrot.lane.b32.xlu1 %v5787_v16, %s6618_s29  ;;  %s6626_s29 = smov 24  }
 0x3c3   : > { %897 = vrot.lane.b32.xlu0 %v5787_v16, %s6636_s30 }
 0x3c7   : > { %1234 = vrot.lane.b32.xlu0 %v5787_v16, %s6614_s3  ;;  %s6630_s3 = smov 8  }
 0x3da   : > { %1229 = vadd.xlane.f32.xlu1 %v1228_v22  ;;  %v5313_v22 = vld [vmem:[%s6592_s10] sm:$0xff]  }
 0x3eb   : > { %1122 = vrot.lane.b32.xlu1 %v5787_v16, %s6616_s0  ;;  %s6682_s0 = smov 104  }
 0x42a   : > { %v893_v23 = vpop.xlane.xlu0 %892 }
 0x42b   : > { %5364 = vrcp.f32 %v893_v23  ;;  %v5314_v23 = vld [vmem:[%s6592_s10 + $0x8] sm:$0xff]  }
 0x432   : > { %v1006_v24 = vpop.xlane.xlu1 %1005 }
 0x433   : > { %5366 = vrcp.f32 %v1006_v24 }
 0x435   : > { %v5365_v25 = vpop.eup %5364 }
 0x436   : > { %v895_v27 = vmul.f32 %v5365_v25, %v5357_v8  ;;  %v1011_v30 = vpop.permute.xlu1 %1010 }
 0x437   : > { %v1016_v38 = vsel %vm902_vm3, %v1011_v30, 0 }
 0x438   : > { %v896_v36 = vpack.c.bf16 %v895_v27, %v895_v27  ;;  %v4568_v27 = vld [vmem:[%s6677_s9] ss:$0 sm:$0xff] }
 0x43a   : > { %v1118_v26 = vpop.xlane.xlu0 %1117 }
 0x43b   : > { %5368 = vrcp.f32 %v1118_v26 }
 0x43d   : > { %v5367_v37 = vpop.eup %5366 }
 0x43e   : > { %v898_v28 = vpop.permute.xlu0 %897  ;;  %v1008_v16 = vmul.f32 %v5367_v37, %v5359_v13  ;;  %v5316_v37 = vld [vmem:[%s6593_s11 + $0x8] sm:$0xff]  }
 0x43f   : > { %v904_v29 = vsel %vm902_vm3, %v898_v28, 0 }
 0x440   : > { %4864 = vmatpush3.bf16.msra.mxu0 %v904_v29  ;;  %v1009_v39 = vpack.c.bf16 %v1008_v16, %v1008_v16  ;;  %v5318_v16 = vld [vmem:[%s6593_s11 + $0x18] sm:$0xff]  }
 0x441   : > { %4875 = vmatprep.subr.bf16.mxu0 %v5572_v6 }
 0x442   : > { %v1235_v45 = vpop.permute.xlu0 %1234 }
 0x443   : > { %4866 = vmatmul.mubr.msk.bf16.vlgmr.msra.gmra.mrb[4].mxu0 %vm830_vm2, %v896_v36  ;;  %v1240_v47 = vsel %vm902_vm3, %v1235_v45, 0  ;;  %v5315_v36 = vld [vmem:[%s6593_s11] sm:$0xff]  }
 0x444   : > { %4876 = vmatpush3.bf16.msra.mxu0 %v1016_v38  ;;  %4877 = vmatprep.mubr.msk.bf16.mxu0 %vm5573_vm1, %v5572_v6  ;;  %v5317_v38 = vld [vmem:[%s6593_s11 + $0x10] sm:$0xff]  }
 0x445   : > { %4887 = vmatprep.subr.bf16.mxu0 %v5572_v6  ;;  %v5369_v40 = vpop.eup %5368 }
 0x446   : > { %v1120_v42 = vmul.f32 %v5369_v40, %v5361_v15 }
 0x448   : > { %v1121_v46 = vpack.c.bf16 %v1120_v42, %v1120_v42 }
 0x44b   : > { %4878 = vmatmul.mubr.msk.bf16.vlgmr.msra.gmra.mrb[8].mxu0 %vm830_vm2, %v1009_v39 }
 0x44c   : > { %4889 = vmatprep.mubr.msk.bf16.mxu0 %vm5573_vm1, %v5572_v6 }
 0x467   : > { %v1230_v41 = vpop.xlane.xlu1 %1229 }
 0x468   : > { %5370 = vrcp.f32 %v1230_v41 }
 0x46b   : > { %v1123_v43 = vpop.permute.xlu1 %1122 }
 0x46c   : > { %v1128_v44 = vsel %vm902_vm3, %v1123_v43, 0 }
 0x46d   : > { %4888 = vmatpush3.bf16.msra.mxu0 %v1128_v44 }
 0x46e   : > { %4899 = vmatprep.subr.bf16.mxu0 %v5572_v6 }
 0x470   : > { %4890 = vmatmul.mubr.msk.bf16.vlgmr.msra.gmra.mrb[12].mxu0 %vm830_vm2, %v1121_v46 }
 0x471   : > { %4900 = vmatpush3.bf16.msra.mxu0 %v1240_v47  ;;  %4901 = vmatprep.mubr.msk.bf16.mxu0 %vm5573_vm1, %v5572_v6 }
 0x472   : > { %v5371_v48 = vpop.eup %5370  ;;  %4913 = vmatprep.subr.bf16.mxu0 %v5572_v6 }
 0x473   : > { %v1232_v49 = vmul.f32 %v5371_v48, %v5363_v21 }
 0x475   : > { %v1233_v50 = vpack.c.bf16 %v1232_v49, %v1232_v49 }
 0x478   : > { %4902 = vmatmul.mubr.msk.bf16.vlgmr.msra.gmra.mrb[16].mxu0 %vm830_vm2, %v1233_v50 }
 0x479   : > { %4917 = vmatprep.mubr.msk.bf16.mxu0 %vm5573_vm1, %v5572_v6  ;;  %4914 = vmatpush3.bf16.msra.mxu0 %v5313_v22 }
 0x47a   : > { %4915 = vmatprep.subr.bf16.mxu0 %v5572_v6 }
 0x47d   : > { %4916 = vmatpush3.bf16.msra.mxu0 %v5314_v23 }
 0x47e   : > { %4933 = vmatprep.subr.bf16.mxu0 %v5572_v6 }
 0x516   : > { %v940_v51 = vpop.f32.mrb[4].mxu0 }
 0x517   : > { %v4867_v52 = vpop.f32.mrb[5].mxu0 }
 0x518   : > { %v943_v53 = vpop.f32.mrb[6].mxu0 }
 0x519   : > { %v4868_v54 = vpop.f32.mrb[7].mxu0 }
 0x51e   : > { %v1052_v55 = vpop.f32.mrb[8].mxu0 }
 0x51f   : > { %1283 = vrot.lane.b32.xlu1 %v1052_v55, %s6630_s3  ;;  %v4879_v56 = vpop.f32.mrb[9].mxu0  ;;  %s6684_s3 = smov 72  }
 0x520   : > { %v1055_v57 = vpop.f32.mrb[10].mxu0 }
 0x521   : > { %v4880_v58 = vpop.f32.mrb[11].mxu0 }
 0x522   : > { %v5319_v58 = vld [vmem:[%s6674_s6 + $0x10] sm:$0xff]   ;;  %s6685_s6 = smov 56  }
 0x543   : > { %v1164_v61 = vpop.f32.mrb[12].mxu0 }
 0x544   : > { %1287 = vrot.lane.b32.xlu0 %v1164_v61, %s6628_s2  ;;  %v4891_v62 = vpop.f32.mrb[13].mxu0  ;;  %s6683_s2 = smov 80  }
 0x545   : > { %v1167_v63 = vpop.f32.mrb[14].mxu0 }
 0x546   : > { %v4892_v0 = vpop.f32.mrb[15].mxu0 }
 0x547   : > { %v4600_v0 = vld [vmem:[%s6675_s5 + $0x1] ss:$0 sm:$0xff] }
 0x54b   : > { %v1276_v2 = vpop.f32.mrb[16].mxu0 }
 0x54c   : > { %1291 = vrot.lane.b32.xlu1 %v1276_v2, %s6626_s29  ;;  %v4903_v3 = vpop.f32.mrb[17].mxu0  ;;  %s6678_s29 = smov 88  }
 0x54d   : > { %v1279_v4 = vpop.f32.mrb[18].mxu0 }
 0x54e   : > { %v4904_v5 = vpop.f32.mrb[19].mxu0 }
 0x591   : > { %v1284_v7 = vpop.permute.xlu1 %1283 }
 0x592   : > { %v1294_v9 = vsel %vm830_vm2, %v940_v51, %v1284_v7 }
 0x5b6   : > { %v1288_v8 = vpop.permute.xlu0 %1287 }
 0x5b7   : > { %v1296_v10 = vsel %vm1295_vm4, %v1294_v9, %v1288_v8 }
 0x5be   : > { %v1292_v11 = vpop.permute.xlu1 %1291 }
 0x5bf   : > { %v1298_v12 = vsel %vm1297_vm5, %v1296_v10, %v1292_v11 }
 0x5c0   : > { %v1299_v13 = vpack.c.bf16 %v1298_v12, %v1298_v12 }
 0x5c2   : > { %4910 = vmatmul.mubr.msk.bf16.vlgmr.msra.gmra.mrb[16].mxu1 %vm754_vm0, %v1299_v13 }
 0x5c3   : > { %4929 = vmatprep.mubr.msk.bf16.mxu1 %vm5573_vm1, %v5572_v6  ;;  %4922 = vmatpush3.bf16.msra.mxu1 %v5315_v36 }
 0x5c4   : > { %4923 = vmatprep.subr.bf16.mxu1 %v5572_v6 }
 0x5c7   : > { %4924 = vmatpush3.bf16.msra.mxu1 %v5316_v37 }
 0x5c8   : > { %4925 = vmatprep.subr.bf16.mxu1 %v5572_v6 }
 0x5cb   : > { %4926 = vmatpush3.bf16.msra.mxu1 %v5317_v38 }
 0x5cc   : > { %4927 = vmatprep.subr.bf16.mxu1 %v5572_v6 }
 0x5cf   : > { %4928 = vmatpush3.bf16.msra.mxu1 %v5318_v16 }
 0x5d0   : > { %4947 = vmatprep.subr.bf16.mxu1 %v5572_v6 }
 0x695   : > { %v1349_v14 = vpop.f32.mrb[16].mxu1 }
 0x696   : > { %v1355_v15 = vadd.f32 %v1349_v14, %v5761_v1  ;;  %v4911_v17 = vpop.f32.mrb[17].mxu1 }
 0x697   : > { %v1352_v18 = vpop.f32.mrb[18].mxu1 }
 0x698   : > { %v4912_v19 = vpop.f32.mrb[19].mxu1  ;;  %v1356_v20 = vmul.f32 %v1355_v15, %v1355_v15 }
 0x69a   : > { %v1357_v21 = vsel %vm754_vm0, %v1356_v20, 0.0 }
 0x69b   : > { %1358 = vadd.xlane.f32.xlu0 %v1357_v21 }
 0x728   : > { %v1359_v1 = vpop.xlane.xlu0 %1358 }
 0x729   : > { %v1360_v24 = vmul.f32 0.03125, %v1359_v1 }
 0x72b   : > { %v1361_v25 = vadd.f32 1e-06, %v1360_v24 }
 0x72d   : > { %5372 = vrsqrt.f32 %v1361_v25 }
 0x737   : > { %v5373_v26 = vpop.eup %5372 }
 0x738   : > { %v1363_v28 = vmul.f32 %v5373_v26, %v1355_v15 }
 0x73a   : > { %v1370_v29 = vmul.f32 %v4568_v27, %v1363_v28 }
 0x73c   : > { %v1371_v30 = vpack.c.bf16 %v1370_v29, %v1370_v29 }
 0x73e   : > { %4918 = vmatmul.mubr.msk.bf16.vlgmr.msra.gmra.mrb[20].mxu0 %vm754_vm0, %v1371_v30 }
 0x73f   : > { %4937 = vmatprep.mubr.msk.bf16.mxu0 %vm5573_vm1, %v5572_v6  ;;  %4934 = vmatpush3.bf16.msra.mxu0 %v5319_v58 }
 0x740   : > { %4935 = vmatprep.subr.bf16.mxu0 %v5572_v6 }
 0x743   : > { %4936 = vmatpush3.bf16.msra.mxu0 %v5320_v59 }
 0x744   : > { %4941 = vmatprep.subr.bf16.mxu0 %v5572_v6 }
 0x811   : > { %v1421_v39 = vpop.f32.mrb[20].mxu0 }
 0x812   : > { %1435 = vrot.lane.b32.xlu1 %v1421_v39, %s6636_s30  ;;  %v4919_v40 = vpop.f32.mrb[21].mxu0  ;;  %v4572_v43 = vmul.f32 -1.442695, %v1421_v39 }
 0x813   : > { %v1424_v41 = vpop.f32.mrb[22].mxu0 }
 0x814   : > { %v4920_v42 = vpop.f32.mrb[23].mxu0  ;;  %5374 = vpow2.f32 %v4572_v43 }
 0x81e   : > { %v5375_v44 = vpop.eup %5374 }
 0x81f   : > { %v1430_v45 = vadd.f32 1.0, %v5375_v44 }
 0x821   : > { %5376 = vrcp.f32 %v1430_v45 }
 0x82b   : > { %v5377_v46 = vpop.eup %5376 }
 0x82c   : > { %v1433_v47 = vmul.f32 %v5377_v46, %v1421_v39 }
 0x884   : > { %v1436_v48 = vpop.permute.xlu1 %1435 }
 0x885   : > { %v1438_v49 = vmul.f32 %v1436_v48, %v1433_v47 }
 0x887   : > { %v1439_v50 = vpack.c.bf16 %v1438_v49, %v1438_v49 }
 0x889   : > { %4930 = vmatmul.mubr.msk.bf16.vlgmr.msra.gmra.mrb[20].mxu1 %vm1464_vm6, %v1439_v50 }
 0x88a   : > { %4949 = vmatprep.mubr.msk.bf16.mxu1 %vm5573_vm1, %v5572_v6 }
 0x95c   : > { %v1502_v51 = vpop.f32.mrb[20].mxu1 }
 0x95d   : > { %v5933_v52 = vadd.f32 %v1502_v51, %v1355_v15  ;;  %v4931_v53 = vpop.f32.mrb[21].mxu1 }
 0x95e   : > { %v1505_v54 = vpop.f32.mrb[22].mxu1 }
 0x95f   : > { %v4932_v55 = vpop.f32.mrb[23].mxu1  ;;  %v1537_v56 = vmul.f32 %v5933_v52, %v5933_v52 }
 0x961   : > { %v1538_v57 = vsel %vm754_vm0, %v1537_v56, 0.0 }
 0x962   : > { %1539 = vadd.xlane.f32.xlu1 %v1538_v57 }
 0x9ef   : > { %v1540_v60 = vpop.xlane.xlu1 %1539 }
 0x9f0   : > { %v1541_v61 = vmul.f32 0.03125, %v1540_v60 }
 0x9f2   : > { %v1542_v62 = vadd.f32 1e-06, %v1541_v61 }
 0x9f4   : > { %5378 = vrsqrt.f32 %v1542_v62 }
 0x9fe   : > { %v5379_v63 = vpop.eup %5378 }
 0x9ff   : > { %v1544_v2 = vmul.f32 %v5379_v63, %v5933_v52 }
 0xa01   : > { %v1551_v3 = vmul.f32 %v4600_v0, %v1544_v2 }
 0xa03   : > { %v1552_v4 = vpack.c.bf16 %v1551_v3, %v1551_v3 }
 0xa05   : > { %4938 = vmatmul.mubr.msk.bf16.vlgmr.msra.gmra.mrb[24].mxu0 %vm754_vm0, %v1552_v4 }
 0xa06   : > { %4943 = vmatprep.mubr.msk.bf16.mxu0 %vm5573_vm1, %v5572_v6 }
 0xad8   : > { %v1602_v5 = vpop.f32.mrb[24].mxu0 }
 0xad9   : > { %v5953_v7 = vpack.c.bf16 %v1602_v5, %v1602_v5  ;;  %v4939_v8 = vpop.f32.mrb[25].mxu0 }
 0xada   : > { %v1605_v9 = vpop.f32.mrb[26].mxu0 }
 0xadb   : > { %1722 = vrot.lane.b32.xlu1 %v5953_v7, %s6678_s29  ;;  %1610 = vrot.lane.b32.xlu0 %v5953_v7, %s6679_s24  ;;  %v4940_v10 = vpop.f32.mrb[27].mxu0 }
 0xadf   : > { %1832 = vrot.lane.b32.xlu1 %v5953_v7, %s6680_s25  ;;  %1720 = vrot.lane.b32.xlu0 %v5953_v7, %s6681_s4 }
 0xae3   : > { %1944 = vrot.lane.b32.xlu1 %v5953_v7, %s6682_s0  ;;  %1834 = vrot.lane.b32.xlu0 %v5953_v7, %s6683_s2 }
 0xae7   : > { %1946 = vrot.lane.b32.xlu0 %v5953_v7, %s6684_s3 }
 0xb4d   : > { %v1611_v11 = vpop.permute.xlu0 %1610  ;;  %v1723_v13 = vpop.permute.xlu1 %1722 }
 0xb4e   : > { %v1616_v12 = vsel %vm830_vm2, %v1611_v11, 0  ;;  %v1728_v15 = vsel %vm830_vm2, %v1723_v13, 0 }
 0xb4f   : > { %4942 = vmatpush3.bf16.xpose.msra.mxu0 %v1616_v12 }
 0xb50   : > { %4953 = vmatprep.subr.bf16.mxu0 %v5572_v6 }
 0xb51   : > { %v1721_v14 = vpop.permute.xlu0 %1720  ;;  %v1833_v20 = vpop.permute.xlu1 %1832 }
 0xb55   : > { %v1835_v17 = vpop.permute.xlu0 %1834  ;;  %v1945_v22 = vpop.permute.xlu1 %1944 }
 0xb56   : > { %4944 = vmatmul.mubr.msk.bf16.vlgmr.msra.gmra.mrb[28].mxu0 %vm830_vm2, %v5953_v7  ;;  %v1840_v18 = vsel %vm830_vm2, %v1835_v17, 0 }
 0xb57   : > { %4954 = vmatpush3.bf16.xpose.msra.mxu0 %v1728_v15  ;;  %4955 = vmatprep.mubr.msk.bf16.mxu0 %vm5573_vm1, %v5572_v6 }
 0xb58   : > { %4965 = vmatprep.subr.bf16.mxu0 %v5572_v6 }
 0xb59   : > { %v1947_v19 = vpop.permute.xlu0 %1946 }
 0xb5a   : > { %v1952_v21 = vsel %vm830_vm2, %v1947_v19, 0 }
 0xb5e   : > { %4956 = vmatmul.mubr.msk.bf16.vlgmr.msra.gmra.mrb[32].mxu0 %vm830_vm2, %v1721_v14 }
 0xb5f   : > { %4966 = vmatpush3.bf16.xpose.msra.mxu0 %v1840_v18  ;;  %4967 = vmatprep.mubr.msk.bf16.mxu0 %vm5573_vm1, %v5572_v6 }
 0xb60   : > { %4977 = vmatprep.subr.bf16.mxu0 %v5572_v6 }
 0xb66   : > { %4968 = vmatmul.mubr.msk.bf16.vlgmr.msra.gmra.mrb[36].mxu0 %vm830_vm2, %v1833_v20 }
 0xb67   : > { %4978 = vmatpush3.bf16.xpose.msra.mxu0 %v1952_v21  ;;  %4979 = vmatprep.mubr.msk.bf16.mxu0 %vm5573_vm1, %v5572_v6 }
 0xb68   : > { %4989 = vmatprep.subr.bf16.mxu0 %v5572_v6 }
 0xb6e   : > { %4980 = vmatmul.mubr.msk.bf16.vlgmr.msra.gmra.mrb[40].mxu0 %vm830_vm2, %v1945_v22 }
 0xb6f   : > { %4993 = vmatprep.mubr.msk.bf16.mxu0 %vm5573_vm1, %v5572_v6 }
 0xc29   : > { %v1652_v23 = vpop.f32.mrb[28].mxu0 }
 0xc2a   : > { %v1658_v1 = vmul.f32 0.35355338, %v1652_v23  ;;  %v4945_v24 = vpop.f32.mrb[29].mxu0 }
 0xc2b   : > { %v1655_v25 = vpop.f32.mrb[30].mxu0 }
 0xc2c   : > { %v4946_v26 = vpop.f32.mrb[31].mxu0  ;;  %v1659_v27 = vadd.f32 %v1658_v1, %v5838_v35 }
 0xc2e   : > { %v1660_v28 = vsel %vm830_vm2, %v1659_v27, -inf }
 0xc2f   : > { %1661 = vmax.xlane.f32.xlu0 %v1660_v28 }
 0xc31   : > { %v1764_v29 = vpop.f32.mrb[32].mxu0 }
 0xc32   : > { %v1770_v30 = vmul.f32 0.35355338, %v1764_v29  ;;  %v4957_v36 = vpop.f32.mrb[33].mxu0 }
 0xc33   : > { %v1767_v37 = vpop.f32.mrb[34].mxu0 }
 0xc34   : > { %v4958_v38 = vpop.f32.mrb[35].mxu0  ;;  %v1771_v16 = vadd.f32 %v1770_v30, %v5838_v35 }
 0xc36   : > { %v1772_v39 = vsel %vm830_vm2, %v1771_v16, -inf }
 0xc37   : > { %1773 = vmax.xlane.f32.xlu1 %v1772_v39 }
 0xc39   : > { %v1876_v40 = vpop.f32.mrb[36].mxu0 }
 0xc3a   : > { %v1882_v41 = vmul.f32 0.35355338, %v1876_v40  ;;  %v4969_v42 = vpop.f32.mrb[37].mxu0 }
 0xc3b   : > { %v1879_v43 = vpop.f32.mrb[38].mxu0 }
 0xc3c   : > { %v4970_v44 = vpop.f32.mrb[39].mxu0  ;;  %v1883_v45 = vadd.f32 %v1882_v41, %v5838_v35 }
 0xc3e   : > { %v1884_v46 = vsel %vm830_vm2, %v1883_v45, -inf }
 0xc3f   : > { %1885 = vmax.xlane.f32.xlu0 %v1884_v46 }
 0xc41   : > { %v1988_v47 = vpop.f32.mrb[40].mxu0 }
 0xc42   : > { %v1994_v48 = vmul.f32 0.35355338, %v1988_v47  ;;  %v4981_v49 = vpop.f32.mrb[41].mxu0 }
 0xc43   : > { %v1991_v50 = vpop.f32.mrb[42].mxu0  ;;  %v5322_v49 = vld [vmem:[%s6590_s8 + $0x18] sm:$0xff]  }
 0xc44   : > { %v4982_v51 = vpop.f32.mrb[43].mxu0  ;;  %v1995_v53 = vadd.f32 %v1994_v48, %v5838_v35  ;;  %v5321_v48 = vld [vmem:[%s6590_s8 + $0x10] sm:$0xff]  }
 0xc45   : > { %4990 = vmatpush3.bf16.msra.mxu0 %v5321_v48 }
 0xc46   : > { %v1996_v54 = vsel %vm830_vm2, %v1995_v53, -inf  ;;  %4991 = vmatprep.subr.bf16.mxu0 %v5572_v6 }
 0xc47   : > { %1997 = vmax.xlane.f32.xlu0 %v1996_v54 }
 0xc49   : > { %4992 = vmatpush3.bf16.msra.mxu0 %v5322_v49 }
 0xc4a   : > { %5005 = vmatprep.subr.bf16.mxu0 %v5572_v6 }
 0xcbc   : > { %v1662_v55 = vpop.xlane.xlu0 %1661 }
 0xcbd   : > { %v1663_v56 = vsub.f32 %v1659_v27, %v1662_v55 }
 0xcbf   : > { %v1664_v57 = vmul.f32 1.442695, %v1663_v56 }
 0xcc1   : > { %5380 = vpow2.f32 %v1664_v57 }
 0xcc4   : > { %v1774_v58 = vpop.xlane.xlu1 %1773 }
 0xcc5   : > { %v1775_v59 = vsub.f32 %v1771_v16, %v1774_v58 }
 0xcc7   : > { %v1776_v60 = vmul.f32 1.442695, %v1775_v59 }
 0xcc9   : > { %5382 = vpow2.f32 %v1776_v60 }
 0xccb   : > { %v5381_v61 = vpop.eup %5380 }
 0xccc   : > { %v1666_v62 = vsel %vm830_vm2, %v5381_v61, 0.0  ;;  %v1886_v63 = vpop.xlane.xlu0 %1885 }
 0xccd   : > { %1667 = vadd.xlane.f32.xlu1 %v1666_v62  ;;  %v1887_v9 = vsub.f32 %v1883_v45, %v1886_v63 }
 0xccf   : > { %v1888_v10 = vmul.f32 1.442695, %v1887_v9 }
 0xcd3   : > { %v5383_v0 = vpop.eup %5382 }
 0xcd4   : > { %v1998_v2 = vpop.xlane.xlu0 %1997  ;;  %v1778_v35 = vsel %vm830_vm2, %v5383_v0, 0.0 }
 0xcd5   : > { %v1999_v3 = vsub.f32 %v1995_v53, %v1998_v2  ;;  %1779 = vadd.xlane.f32.xlu0 %v1778_v35 }
 0xcd7   : > { %v2000_v4 = vmul.f32 1.442695, %v1999_v3 }
 0xcd9   : > { %5384 = vpow2.f32 %v2000_v4 }
 0xcda   : > { %5386 = vpow2.f32 %v1888_v10 }
 0xcde   : > { %1672 = vrot.lane.b32.xlu1 %v5953_v7, %s6636_s30  ;;  %s6688_s30 = smov 8  }
 0xce3   : > { %v5385_v5 = vpop.eup %5384 }
 0xce4   : > { %v2002_v8 = vsel %vm830_vm2, %v5385_v5, 0.0  ;;  %v5387_v11 = vpop.eup %5386 }
 0xce5   : > { %2003 = vadd.xlane.f32.xlu0 %v2002_v8  ;;  %v1890_v12 = vsel %vm830_vm2, %v5387_v11, 0.0 }
 0xcfb   : > { %1784 = vrot.lane.b32.xlu0 %v5953_v7, %s6685_s6 }
 0xd02   : > { %1891 = vadd.xlane.f32.xlu1 %v1890_v12  ;;  %v5324_v12 = vld [vmem:[%s6592_s10 + $0x18] sm:$0xff]  }
 0xd13   : > { %1896 = vrot.lane.b32.xlu1 %v5953_v7, %s6686_s23 }
 0xd17   : > { %2008 = vrot.lane.b32.xlu1 %v5953_v7, %s6687_s26 }
 0xd5a   : > { %v1668_v13 = vpop.xlane.xlu1 %1667 }
 0xd5b   : > { %5388 = vrcp.f32 %v1668_v13 }
 0xd5e   : > { %v1673_v14 = vpop.permute.xlu1 %1672 }
 0xd5f   : > { %v1678_v15 = vsel %vm902_vm3, %v1673_v14, 0 }
 0xd60   : > { %4948 = vmatpush3.bf16.msra.mxu1 %v1678_v15 }
 0xd61   : > { %4959 = vmatprep.subr.bf16.mxu1 %v5572_v6 }
 0xd62   : > { %v1780_v18 = vpop.xlane.xlu0 %1779 }
 0xd63   : > { %5390 = vrcp.f32 %v1780_v18 }
 0xd65   : > { %v5389_v17 = vpop.eup %5388 }
 0xd66   : > { %v1670_v19 = vmul.f32 %v5389_v17, %v5381_v61  ;;  %v4615_v17 = vld [vmem:[%s6677_s9 + $0x1] ss:$0 sm:$0xff]  ;;  %s6696_s9 = sld [smem:[#allocation16_spill]] }
 0xd68   : > { %v1671_v20 = vpack.c.bf16 %v1670_v19, %v1670_v19 }
 0xd6a   : > { %4950 = vmatmul.mubr.msk.bf16.vlgmr.msra.gmra.mrb[24].mxu1 %vm830_vm2, %v1671_v20 }
 0xd6b   : > { %4961 = vmatprep.mubr.msk.bf16.mxu1 %vm5573_vm1, %v5572_v6 }
 0xd6c   : > { %s714_s28 = scalar_lea.vmem %s6696_s9, %s5755_s1  ;;  %s6698_s9 = sld [smem:[#allocation17_spill]] }
 0xd6d   : > { %v5391_v21 = vpop.eup %5390 }
 0xd6e   : > { %v1782_v22 = vmul.f32 %v5391_v21, %v5383_v0  ;;  %v5325_v21 = vld [vmem:[%s6593_s11 + $0x20] sm:$0xff]  }
 0xd70   : > { %v1783_v24 = vpack.c.bf16 %v1782_v22, %v1782_v22  ;;  %v5327_v22 = vld [vmem:[%s6593_s11 + $0x30] sm:$0xff]  }
 0xd72   : > { %v2004_v7 = vpop.xlane.xlu0 %2003 }
 0xd76   : > { %v1785_v23 = vpop.permute.xlu0 %1784 }
 0xd77   : > { %v1790_v1 = vsel %vm902_vm3, %v1785_v23, 0  ;;  %v5328_v23 = vld [vmem:[%s6593_s11 + $0x38] sm:$0xff]  }
 0xd78   : > { %4960 = vmatpush3.bf16.msra.mxu1 %v1790_v1 }
 0xd79   : > { %4971 = vmatprep.subr.bf16.mxu1 %v5572_v6 }
 0xd7b   : > { %4962 = vmatmul.mubr.msk.bf16.vlgmr.msra.gmra.mrb[28].mxu1 %vm830_vm2, %v1783_v24 }
 0xd7c   : > { %4973 = vmatprep.mubr.msk.bf16.mxu1 %vm5573_vm1, %v5572_v6 }
 0xd8f   : > { %v1892_v25 = vpop.xlane.xlu1 %1891 }
 0xd90   : > { %5392 = vrcp.f32 %v1892_v25 }
 0xd91   : > { %5394 = vrcp.f32 %v2004_v7  ;;  %v5326_v7 = vld [vmem:[%s6593_s11 + $0x28] sm:$0xff]  }
 0xd93   : > { %v1897_v26 = vpop.permute.xlu1 %1896 }
 0xd94   : > { %v1902_v27 = vsel %vm902_vm3, %v1897_v26, 0 }
 0xd95   : > { %4972 = vmatpush3.bf16.msra.mxu1 %v1902_v27 }
 0xd96   : > { %4983 = vmatprep.subr.bf16.mxu1 %v5572_v6 }
 0xd97   : > { %v2009_v30 = vpop.permute.xlu1 %2008 }
 0xd98   : > { %v2014_v38 = vsel %vm902_vm3, %v2009_v30, 0 }
 0xd9a   : > { %v5393_v28 = vpop.eup %5392 }
 0xd9b   : > { %v1894_v29 = vmul.f32 %v5393_v28, %v5387_v11  ;;  %v5395_v37 = vpop.eup %5394  ;;  %v5323_v11 = vld [vmem:[%s6592_s10 + $0x10] sm:$0xff]  }
 0xd9c   : > { %v2006_v16 = vmul.f32 %v5395_v37, %v5385_v5 }
 0xd9d   : > { %v1895_v36 = vpack.c.bf16 %v1894_v29, %v1894_v29 }
 0xd9e   : > { %v2007_v39 = vpack.c.bf16 %v2006_v16, %v2006_v16 }
 0xd9f   : > { %4974 = vmatmul.mubr.msk.bf16.vlgmr.msra.gmra.mrb[32].mxu1 %vm830_vm2, %v1895_v36 }
 0xda0   : > { %4984 = vmatpush3.bf16.msra.mxu1 %v2014_v38  ;;  %4985 = vmatprep.mubr.msk.bf16.mxu1 %vm5573_vm1, %v5572_v6 }
 0xda1   : > { %4997 = vmatprep.subr.bf16.mxu1 %v5572_v6 }
 0xda7   : > { %4986 = vmatmul.mubr.msk.bf16.vlgmr.msra.gmra.mrb[36].mxu1 %vm830_vm2, %v2007_v39 }
 0xda8   : > { %5001 = vmatprep.mubr.msk.bf16.mxu1 %vm5573_vm1, %v5572_v6  ;;  %4998 = vmatpush3.bf16.msra.mxu1 %v5323_v11 }
 0xda9   : > { %4999 = vmatprep.subr.bf16.mxu1 %v5572_v6 }
 0xdac   : > { %5000 = vmatpush3.bf16.msra.mxu1 %v5324_v12 }
 0xdad   : > { %5017 = vmatprep.subr.bf16.mxu1 %v5572_v6 }
 0xe3d   : > { %v1714_v40 = vpop.f32.mrb[24].mxu1 }
 0xe3e   : > { %v4951_v41 = vpop.f32.mrb[25].mxu1 }
 0xe3f   : > { %v1717_v42 = vpop.f32.mrb[26].mxu1 }
 0xe40   : > { %v4952_v43 = vpop.f32.mrb[27].mxu1 }
 0xe4e   : > { %v1826_v44 = vpop.f32.mrb[28].mxu1 }
 0xe4f   : > { %2057 = vrot.lane.b32.xlu0 %v1826_v44, %s6688_s30  ;;  %v4963_v45 = vpop.f32.mrb[29].mxu1 }
 0xe50   : > { %v1829_v46 = vpop.f32.mrb[30].mxu1 }
 0xe51   : > { %v4964_v47 = vpop.f32.mrb[31].mxu1  ;;  %v2299_v46 = vld [vmem:[#allocation2] sm:$0x1] }
 0xe52   : > { %v5588_v47 = vmov 0  }
 0xe53   : > { %5277 = vset.pattern.permute.xlu1 %v5588_v47  ;;  %5308 = vset.pattern.permute.xlu0 %v5588_v47 }
 0xe72   : > { %v1938_v50 = vpop.f32.mrb[32].mxu1 }
 0xe73   : > { %2061 = vrot.lane.b32.xlu1 %v1938_v50, %s6689_s14  ;;  %v4975_v51 = vpop.f32.mrb[33].mxu1  ;;  %s6699_s14 = sld [smem:[#allocation18_spill]] }
 0xe74   : > { %v1941_v53 = vpop.f32.mrb[34].mxu1 }
 0xe75   : > { %v4976_v54 = vpop.f32.mrb[35].mxu1  ;;  %v4625_v53 = vld [vmem:[%s6692_s12] ss:$0 sm:$0xff]  ;;  %s6646_s12 = sand.u32 1, %s5562_s27  }
 0xe76   : > { %s6128_s22 = scalar_lea.vmem [#allocation3], %s6646_s12 }
 0xe79   : > { %s722_s20 = scalar_lea.vmem %s6699_s14, %s5755_s1  ;;  %s6700_s14 = smov 16  }
 0xe7a   : > { %v2050_v55 = vpop.f32.mrb[36].mxu1 }
 0xe7b   : > { %2065 = vrot.lane.b32.xlu0 %v2050_v55, %s6690_s19  ;;  %v4987_v56 = vpop.f32.mrb[37].mxu1 }
 0xe7c   : > { %v2053_v57 = vpop.f32.mrb[38].mxu1 }
 0xe7d   : > { %v4988_v58 = vpop.f32.mrb[39].mxu1 }
 0xe7e   : > { %v2297_v58 = vld [vmem:[%s6693_s13] sm:$0x1]  ;;  %s6645_s13 = sshll.u32 %s5755_s1, 4 }
 0xec1   : > { %v2058_v59 = vpop.permute.xlu0 %2057 }
 0xec2   : > { %v2068_v61 = vsel %vm830_vm2, %v1714_v40, %v2058_v59  ;;  %v2298_v59 = vpack.c.bf16 %v2297_v58, %v2297_v58 }
 0xee5   : > { %v2062_v60 = vpop.permute.xlu1 %2061 }
 0xee6   : > { %v2069_v62 = vsel %vm1295_vm4, %v2068_v61, %v2062_v60 }
 0xeed   : > { %v2066_v63 = vpop.permute.xlu0 %2065 }
 0xeee   : > { %v2070_v0 = vsel %vm1297_vm5, %v2069_v62, %v2066_v63 }
 0xeef   : > { %v2071_v2 = vpack.c.bf16 %v2070_v0, %v2070_v0  ;;  %v5589_v0 = vmov -1e+30  }
 0xef1   : > { %4994 = vmatmul.mubr.msk.bf16.vlgmr.msra.gmra.mrb[44].mxu0 %vm754_vm0, %v2071_v2  ;;  %v2356_v2 = vsel %vm2355_vm7, 0.0, %v5589_v0 }
 0xef2   : > { %5013 = vmatprep.mubr.msk.bf16.mxu0 %vm5573_vm1, %v5572_v6  ;;  %5006 = vmatpush3.bf16.msra.mxu0 %v5325_v21 }
 0xef3   : > { %5007 = vmatprep.subr.bf16.mxu0 %v5572_v6 }
 0xef6   : > { %5008 = vmatpush3.bf16.msra.mxu0 %v5326_v7 }
 0xef7   : > { %5009 = vmatprep.subr.bf16.mxu0 %v5572_v6 }
 0xefa   : > { %5010 = vmatpush3.bf16.msra.mxu0 %v5327_v22 }
 0xefb   : > { %5011 = vmatprep.subr.bf16.mxu0 %v5572_v6 }
 0xefe   : > { %5012 = vmatpush3.bf16.msra.mxu0 %v5328_v23 }
 0xeff   : > { %5029 = vmatprep.subr.bf16.mxu0 %v5572_v6 }
 0xfc4   : > { %v2121_v35 = vpop.f32.mrb[44].mxu0 }
 0xfc5   : > { %v2127_v3 = vadd.f32 %v2121_v35, %v5933_v52  ;;  %v4995_v4 = vpop.f32.mrb[45].mxu0 }
 0xfc6   : > { %v2124_v5 = vpop.f32.mrb[46].mxu0 }
 0xfc7   : > { %v4996_v8 = vpop.f32.mrb[47].mxu0  ;;  %v2128_v9 = vmul.f32 %v2127_v3, %v2127_v3 }
 0xfc9   : > { %v2129_v10 = vsel %vm754_vm0, %v2128_v9, 0.0 }
 0xfca   : > { %2130 = vadd.xlane.f32.xlu1 %v2129_v10 }
 0xfdb   : > { %2302 = vperm.xlu1 %5277, %v2299_v46  }
0x1057   : > { %v2131_v52 = vpop.xlane.xlu1 %2130 }
0x1058   : > { %v2132_v13 = vmul.f32 0.03125, %v2131_v52 }
0x105a   : > { %v2133_v14 = vadd.f32 1e-06, %v2132_v13 }
0x105b   : > { %v2303_v61 = vpop.permute.xlu1 %2302 }
0x105c   : > { %5396 = vrsqrt.f32 %v2133_v14  ;;  %v2308_v62 = vrot.slane %v2303_v61, %v5832_v33 }
0x1066   : > { %v5397_v15 = vpop.eup %5396 }
0x1067   : > { %v2135_v18 = vmul.f32 %v5397_v15, %v2127_v3 }
0x1069   : > { %v2142_v19 = vmul.f32 %v4615_v17, %v2135_v18 }
0x106b   : > { %v2143_v20 = vpack.c.bf16 %v2142_v19, %v2142_v19  ;;  %v5330_v19 = vld [vmem:[%s6694_s15 + $0x8] sm:$0xff]   ;;  %s6702_s15 = sld [smem:[#allocation21_spill]] }
0x106d   : > { %5002 = vmatmul.mubr.msk.bf16.vlgmr.msra.gmra.mrb[40].mxu1 %vm754_vm0, %v2143_v20 }
0x106e   : > { %5019 = vmatprep.mubr.msk.bf16.mxu1 %vm5573_vm1, %v5572_v6 }
0x1140   : > { %v2193_v1 = vpop.f32.mrb[40].mxu1 }
0x1141   : > { %2207 = vrot.lane.b32.xlu0 %v2193_v1, %s6691_s21  ;;  %v5003_v24 = vpop.f32.mrb[41].mxu1  ;;  %v4619_v27 = vmul.f32 -1.442695, %v2193_v1 }
0x1142   : > { %v2196_v25 = vpop.f32.mrb[42].mxu1  ;;  %v2421_v24 = vld [vmem:[%s6697_s16] sm:$0x1] }
0x1143   : > { %v5004_v26 = vpop.f32.mrb[43].mxu1  ;;  %5398 = vpow2.f32 %v4619_v27 }
0x1144   : > { %v2479_v26 = vld [vmem:[%s714_s28] sm:$0x1]  ;;  %s719_s28 = scalar_lea.vmem %s6698_s9, %s6645_s13 }
0x1145   : > { %v6145_v46 = vld [vmem:[%s719_s28 + $0x8] sm:$0xff] }
0x114d   : > { %v5399_v28 = vpop.eup %5398 }
0x114e   : > { %v2202_v29 = vadd.f32 1.0, %v5399_v28 }
0x1150   : > { %5400 = vrcp.f32 %v2202_v29 }
0x115a   : > { %v5401_v30 = vpop.eup %5400 }
0x115b   : > { %v2205_v36 = vmul.f32 %v5401_v30, %v2193_v1  ;;  %v5331_v1 = vld [vmem:[%s6695_s17] sm:$0xff]   ;;  %s5591_s17 = smov [#allocation3]  }
0x11b3   : > { %v2208_v37 = vpop.permute.xlu0 %2207 }
0x11b4   : > { %v2210_v38 = vmul.f32 %v2208_v37, %v2205_v36 }
0x11b6   : > { %v2211_v16 = vpack.c.bf16 %v2210_v38, %v2210_v38 }
0x11b8   : > { %5014 = vmatmul.mubr.msk.bf16.vlgmr.msra.gmra.mrb[48].mxu0 %vm1464_vm6, %v2211_v16  ;;  %v2484_v16 = vld [vmem:[%s6600_s18] sm:$0x1] }
0x11b9   : > { %5033 = vmatprep.mubr.msk.bf16.mxu0 %vm5573_vm1, %v5572_v6  ;;  %5030 = vmatpush3.bf16.msra.mxu0 %v5329_v34 }
0x11ba   : > { %5031 = vmatprep.subr.bf16.mxu0 %v5572_v6 }
0x11bd   : > { %5032 = vmatpush3.bf16.msra.mxu0 %v5330_v19 }
0x11be   : > { %5043 = vmatprep.subr.bf16.mxu0 %v5572_v6 }
0x128b   : > { %v2273_v39 = vpop.f32.mrb[48].mxu0 }
0x128c   : > { %v2279_v40 = vadd.f32 %v2273_v39, %v2127_v3  ;;  %v5015_v41 = vpop.f32.mrb[49].mxu0 }
0x128d   : > { %v2276_v42 = vpop.f32.mrb[50].mxu0 }
0x128e   : > { %v5016_v43 = vpop.f32.mrb[51].mxu0  ;;  %v2281_v44 = vmul.f32 %v2279_v40, %v2279_v40 }
0x128f   : > { %v2539_v43 = vld [vmem:[%s719_s28] sm:$0xff]  ;;  %s6703_s28 = sld [smem:[#allocation27_spill]] }
0x1290   : > { %v2282_v45 = vsel %vm754_vm0, %v2281_v44, 0.0 }
0x1291   : > { %2283 = vadd.xlane.f32.xlu0 %v2282_v45 }
0x131e   : > { %v2284_v48 = vpop.xlane.xlu0 %2283 }
0x131f   : > { %v2285_v49 = vmul.f32 0.03125, %v2284_v48 }
0x1321   : > { %v2286_v50 = vadd.f32 1e-06, %v2285_v49  ;;  %v2589_v49 = vmul.f32 %v6145_v46, %v6145_v46 }
0x1323   : > { %5402 = vrsqrt.f32 %v2286_v50 }
0x132d   : > { %v5403_v51 = vpop.eup %5402 }
0x132e   : > { %v2288_v54 = vmul.f32 %v5403_v51, %v2279_v40  ;;  %v2593_v51 = vsel %vm754_vm0, %v2589_v49, 0.0 }
0x1330   : > { %v2295_v55 = vmul.f32 %v4625_v53, %v2288_v54  ;;  %v5333_v53 = vld [vmem:[%s6589_s7 + $0x8] sm:$0xff]  }
0x1332   : > { %v2296_v56 = vpack.c.bf16 %v2295_v55, %v2295_v55 }
0x1334   : > { %v2313_v57 = vsel %vm754_vm0, %v2296_v56, 0  ;;  %v2374_v60 = vsel %vm902_vm3, %v2296_v56, 0 }
0x1335   : > { %5018 = vmatpush3.bf16.xpose.msra.mxu1 %v2313_v57 }
0x1336   : > { %5023 = vmatprep.subr.bf16.mxu1 %v5572_v6 }
0x133c   : > { %5020 = vmatmul.mubr.msk.bf16.vlgmr.msra.gmra.mrb[44].mxu1 %vm754_vm0, %v2298_v59 }
0x133d   : > { %5024 = vmatpush3.bf16.msra.mxu1 %v2374_v60  ;;  %5025 = vmatprep.mubr.msk.bf16.mxu1 %vm5573_vm1, %v5572_v6 }
0x133e   : > { %5037 = vmatprep.subr.bf16.mxu1 %v5572_v6 }
0x140f   : > { %v2349_v63 = vpop.f32.mrb[44].mxu1 }
0x1410   : > { %v2350_v35 = vadd.f32 %v2349_v63, %v2308_v62  ;;  %v5021_v3 = vpop.f32.mrb[45].mxu1  ;;  %v4634_v63 = vld [vmem:[%s6675_s5] ss:$0 sm:$0xff] }
0x1411   : > { %v2352_v4 = vpop.f32.mrb[46].mxu1 }
0x1412   : > { %v5022_v5 = vpop.f32.mrb[47].mxu1  ;;  %v2357_v8 = vadd.f32 %v2356_v2, %v2350_v35 }
0x1414   : > { %v2359_v9 = vsel %vm2358_vm8, %v2357_v8, -inf }
0x1415   : > { %2360 = vmax.xlane.f32.xlu0 %v2359_v9 }
0x14a2   : > { %v2361_v10 = vpop.xlane.xlu0 %2360 }
0x14a3   : > { %v2362_v11 = vsub.f32 %v2357_v8, %v2361_v10 }
0x14a5   : > { %v2363_v12 = vmul.f32 1.442695, %v2362_v11 }
0x14a7   : > { %5404 = vpow2.f32 %v2363_v12 }
0x14b1   : > { %v5405_v52 = vpop.eup %5404 }
0x14b2   : > { %v2365_v13 = vsel %vm2358_vm8, %v5405_v52, 0.0 }
0x14b3   : > { %2366 = vadd.xlane.f32.xlu0 %v2365_v13 }
0x1540   : > { %v2367_v14 = vpop.xlane.xlu0 %2366 }
0x1541   : > { %5406 = vrcp.f32 %v2367_v14 }
0x154b   : > { %v5407_v15 = vpop.eup %5406 }
0x154c   : > { %v2369_v17 = vmul.f32 %v5407_v15, %v5405_v52 }
0x154e   : > { %v2370_v18 = vpack.c.bf16 %v2369_v17, %v2369_v17 }
0x1550   : > { %5026 = vmatmul.mubr.msk.bf16.vlgmr.msra.gmra.mrb[48].mxu1 %vm830_vm2, %v2370_v18 }
0x1551   : > { %5039 = vmatprep.mubr.msk.bf16.mxu1 %vm5573_vm1, %v5572_v6  ;;  %5038 = vmatpush3.bf16.msra.mxu1 %v5331_v1  ;;  %v4633_v1 = vld [vmem:[%s722_s20] ss:$0 sm:$0xff]  ;;  %s6701_s20 = smov 24  }
0x1552   : > { %5051 = vmatprep.subr.bf16.mxu1 %v5572_v6 }
0x1623   : > { %v2410_v20 = vpop.f32.mrb[48].mxu1 }
0x1624   : > { %v2416_v21 = vpack.c.bf16 %v2410_v20, %v2410_v20  ;;  %v5027_v7 = vpop.f32.mrb[49].mxu1 }
0x1625   : > { %v2413_v22 = vpop.f32.mrb[50].mxu1  ;;  %v2536_v7 = vadd.s32 8, %v5825_v32 }
0x1626   : > { %v5028_v23 = vpop.f32.mrb[51].mxu1  ;;  %5034 = vmatmul.mubr.msk.bf16.vlgmr.msra.gmra.mrb[52].mxu0 %vm754_vm0, %v2416_v21  ;;  %v2552_v21 = vand.u32 127, %v879_v31  ;;  %v5590_v22 = vmov -1e+09  }
0x1627   : > { %5047 = vmatprep.mubr.msk.bf16.mxu0 %vm5573_vm1, %v5572_v6 }
0x1628   : > { %vm2553_vm10 = vcmp.le.s32.totalorder %v2552_v21, %v5825_v32  ;;  %vm2554_vm11 = vcmp.le.s32.totalorder %v2552_v21, %v2536_v7 }
0x1629   : > { %v2555_v23 = vsel %vm2553_vm10, 0.0, %v5590_v22 }
0x16f9   : > { %v2471_v25 = vpop.f32.mrb[52].mxu0 }
0x16fa   : > { %v2472_v27 = vadd.f32 %v2471_v25, %v2421_v24  ;;  %v5035_v28 = vpop.f32.mrb[53].mxu0  ;;  %v2556_v24 = vsel %vm2554_vm11, 0.0, %v5590_v22  ;;  %v6215_v25 = vadd.f32 %v4633_v1, %v2555_v23 }
0x16fb   : > { %v2474_v29 = vpop.f32.mrb[54].mxu0 }
0x16fc   : > { %v2477_v30 = vsel %vm1295_vm4, %v2472_v27, 0.0  ;;  %v2480_v36 = vadd.f32 %v2479_v26, %v2472_v27  ;;  %v5036_v37 = vpop.f32.mrb[55].mxu0  ;;  %v6217_v27 = vadd.f32 %v4633_v1, %v2556_v24 }
0x16fd   : > { %2478 = vst [vmem:[%s6128_s22] sm:$0x1] %v2477_v30 }
0x16fe   : > { %v2481_v38 = vpack.c.bf16 %v2480_v36, %v2480_v36 }
0x1700   : > { %5040 = vmatmul.mubr.msk.bf16.vlgmr.msra.gmra.mrb[52].mxu1 %vm1295_vm4, %v2481_v38 }
0x1701   : > { %5053 = vmatprep.mubr.msk.bf16.mxu1 %vm5573_vm1, %v5572_v6 }
0x17d3   : > { %v2528_v39 = vpop.f32.mrb[52].mxu1 }
0x17d4   : > { %v2529_v40 = vadd.f32 %v2528_v39, %v2484_v16  ;;  %v5041_v41 = vpop.f32.mrb[53].mxu1 }
0x17d5   : > { %v2531_v42 = vpop.f32.mrb[54].mxu1 }
0x17d6   : > { %v2548_v44 = vrot.slane %v2529_v40, %v5832_v33  ;;  %v5042_v45 = vpop.f32.mrb[55].mxu1  ;;  %v5332_v33 = vld [vmem:[%s6589_s7] sm:$0xff]  }
0x17d7   : > { %5044 = vmatpush3.bf16.msra.mxu0 %v5332_v33 }
0x17d8   : > { %v6147_v47 = vsel %vm2537_vm9, %v2548_v44, %v2539_v43  ;;  %5045 = vmatprep.subr.bf16.mxu0 %v5572_v6 }
0x17d9   : > { %v2588_v48 = vmul.f32 %v6147_v47, %v6147_v47 }
0x17db   : > { %v2590_v50 = vsel %vm754_vm0, %v2588_v48, 0.0  ;;  %5046 = vmatpush3.bf16.msra.mxu0 %v5333_v53 }
0x17dc   : > { %2591 = vadd.xlane.f32.xlu0 %v2590_v50  ;;  %5057 = vmatprep.subr.bf16.mxu0 %v5572_v6 }
0x17e0   : > { %2594 = vadd.xlane.f32.xlu0 %v2593_v51 }
0x1869   : > { %v2592_v54 = vpop.xlane.xlu0 %2591 }
0x186a   : > { %v2596_v55 = vmul.f32 0.03125, %v2592_v54 }
0x186c   : > { %v2598_v56 = vadd.f32 1e-06, %v2596_v55 }
0x186d   : > { %v2595_v57 = vpop.xlane.xlu0 %2594 }
0x186e   : > { %5408 = vrsqrt.f32 %v2598_v56  ;;  %v2597_v58 = vmul.f32 0.03125, %v2595_v57 }
0x1870   : > { %v2599_v59 = vadd.f32 1e-06, %v2597_v58 }
0x1872   : > { %5410 = vrsqrt.f32 %v2599_v59 }
0x1878   : > { %v5409_v60 = vpop.eup %5408 }
0x1879   : > { %v2602_v61 = vmul.f32 %v5409_v60, %v6147_v47 }
0x187b   : > { %v2610_v2 = vmul.f32 %v4634_v63, %v2602_v61 }
0x187c   : > { %v5411_v62 = vpop.eup %5410 }
0x187d   : > { %v2603_v0 = vmul.f32 %v5411_v62, %v6145_v46 }
0x187f   : > { %v2611_v35 = vmul.f32 %v4634_v63, %v2603_v0 }
0x1881   : > { %v2612_v3 = vpack.c.bf16 %v2611_v35, %v2610_v2 }
0x1883   : > { %5048 = vmatmul.mubr.msk.bf16.vlgmr.msra.gmra.mrb[56].mxu0 %vm754_vm0, %v2612_v3 }
0x1884   : > { %5059 = vmatprep.mubr.msk.bf16.mxu0 %vm5573_vm1, %v5572_v6 }
0x1956   : > { %v2662_v4 = vpop.f32.mrb[56].mxu0 }
0x1957   : > { %v5049_v5 = vpop.f32.mrb[57].mxu0 }
0x1958   : > { %v2665_v8 = vpop.f32.mrb[58].mxu0 }
0x1959   : > { %v6171_v9 = vpack.c.bf16 %v2665_v8, %v2662_v4  ;;  %v5050_v10 = vpop.f32.mrb[59].mxu0 }
0x195b   : > { %2796 = vrot.lane.b32.xlu1 %v6171_v9, %s6678_s29  ;;  %2671 = vrot.lane.b32.xlu0 %v6171_v9, %s6679_s24 }
0x195f   : > { %2794 = vrot.lane.b32.xlu1 %v6171_v9, %s6681_s4 }
0x1963   : > { %2921 = vrot.lane.b32.xlu1 %v6171_v9, %s6683_s2 }
0x1967   : > { %2919 = vrot.lane.b32.xlu1 %v6171_v9, %s6680_s25 }
0x196b   : > { %3046 = vrot.lane.b32.xlu1 %v6171_v9, %s6684_s3 }
0x196f   : > { %3044 = vrot.lane.b32.xlu1 %v6171_v9, %s6682_s0 }
0x19cd   : > { %v2797_v11 = vpop.permute.xlu1 %2796  ;;  %v2672_v12 = vpop.permute.xlu0 %2671 }
0x19ce   : > { %v2677_v52 = vsel %vm830_vm2, %v2672_v12, 0  ;;  %v2802_v34 = vsel %vm830_vm2, %v2797_v11, 0 }
0x19cf   : > { %5052 = vmatpush3.bf16.xpose.msra.mxu1 %v2677_v52 }
0x19d0   : > { %5063 = vmatprep.subr.bf16.mxu1 %v5572_v6 }
0x19d1   : > { %v2795_v13 = vpop.permute.xlu1 %2794 }
0x19d5   : > { %v2922_v14 = vpop.permute.xlu1 %2921 }
0x19d6   : > { %5054 = vmatmul.mubr.msk.bf16.vlgmr.msra.gmra.mrb[56].mxu1 %vm830_vm2, %v6171_v9  ;;  %v2927_v17 = vsel %vm830_vm2, %v2922_v14, 0 }
0x19d7   : > { %5064 = vmatpush3.bf16.xpose.msra.mxu1 %v2802_v34  ;;  %5065 = vmatprep.mubr.msk.bf16.mxu1 %vm5573_vm1, %v5572_v6 }
0x19d8   : > { %5075 = vmatprep.subr.bf16.mxu1 %v5572_v6 }
0x19d9   : > { %v2920_v15 = vpop.permute.xlu1 %2919 }
0x19dd   : > { %v3047_v18 = vpop.permute.xlu1 %3046 }
0x19de   : > { %5066 = vmatmul.mubr.msk.bf16.vlgmr.msra.gmra.mrb[60].mxu1 %vm830_vm2, %v2795_v13  ;;  %v3052_v19 = vsel %vm830_vm2, %v3047_v18, 0 }
0x19df   : > { %5076 = vmatpush3.bf16.xpose.msra.mxu1 %v2927_v17  ;;  %5077 = vmatprep.mubr.msk.bf16.mxu1 %vm5573_vm1, %v5572_v6 }
0x19e0   : > { %5087 = vmatprep.subr.bf16.mxu1 %v5572_v6 }
0x19e1   : > { %v3045_v20 = vpop.permute.xlu1 %3044 }
0x19e6   : > { %5078 = vmatmul.mubr.msk.bf16.vlgmr.msra.gmra.mrb[64].mxu1 %vm830_vm2, %v2920_v15 }
0x19e7   : > { %5088 = vmatpush3.bf16.xpose.msra.mxu1 %v3052_v19  ;;  %5089 = vmatprep.mubr.msk.bf16.mxu1 %vm5573_vm1, %v5572_v6 }
0x19e8   : > { %5099 = vmatprep.subr.bf16.mxu1 %v5572_v6 }
0x19ee   : > { %5090 = vmatmul.mubr.msk.bf16.vlgmr.msra.gmra.mrb[68].mxu1 %vm830_vm2, %v3045_v20 }
0x19ef   : > { %5103 = vmatprep.mubr.msk.bf16.mxu1 %vm5573_vm1, %v5572_v6 }
0x1aa9   : > { %v2713_v26 = vpop.f32.mrb[56].mxu1 }
0x1aaa   : > { %v2720_v28 = vmul.f32 0.35355338, %v2713_v26  ;;  %v5055_v31 = vpop.f32.mrb[57].mxu1 }
0x1aab   : > { %v2716_v29 = vpop.f32.mrb[58].mxu1 }
0x1aac   : > { %v2721_v30 = vmul.f32 0.35355338, %v2716_v29  ;;  %v5056_v36 = vpop.f32.mrb[59].mxu1  ;;  %v2722_v37 = vadd.f32 %v2720_v28, %v6215_v25 }
0x1aae   : > { %v2724_v38 = vsel %vm1295_vm4, %v2722_v37, -inf  ;;  %v2723_v32 = vadd.f32 %v2721_v30, %v6217_v27 }
0x1aaf   : > { %2725 = vmax.xlane.f32.xlu0 %v2724_v38 }
0x1ab0   : > { %v2727_v16 = vsel %vm1295_vm4, %v2723_v32, -inf }
0x1ab1   : > { %2728 = vmax.xlane.f32.xlu1 %v2727_v16  ;;  %v2838_v39 = vpop.f32.mrb[60].mxu1 }
0x1ab2   : > { %v2845_v40 = vmul.f32 0.35355338, %v2838_v39  ;;  %v5067_v41 = vpop.f32.mrb[61].mxu1 }
0x1ab3   : > { %v2841_v42 = vpop.f32.mrb[62].mxu1 }
0x1ab4   : > { %v2846_v43 = vmul.f32 0.35355338, %v2841_v42  ;;  %v5068_v44 = vpop.f32.mrb[63].mxu1  ;;  %v2847_v45 = vadd.f32 %v2845_v40, %v6215_v25 }
0x1ab6   : > { %v2849_v48 = vsel %vm1295_vm4, %v2847_v45, -inf  ;;  %v2848_v49 = vadd.f32 %v2846_v43, %v6217_v27 }
0x1ab7   : > { %2850 = vmax.xlane.f32.xlu0 %v2849_v48 }
0x1ab8   : > { %v2852_v53 = vsel %vm1295_vm4, %v2848_v49, -inf }
0x1ab9   : > { %v2963_v50 = vpop.f32.mrb[64].mxu1 }
0x1aba   : > { %v2970_v51 = vmul.f32 0.35355338, %v2963_v50  ;;  %v5079_v33 = vpop.f32.mrb[65].mxu1 }
0x1abb   : > { %2853 = vmax.xlane.f32.xlu0 %v2852_v53  ;;  %v2966_v54 = vpop.f32.mrb[66].mxu1 }
0x1abc   : > { %v2971_v55 = vmul.f32 0.35355338, %v2966_v54  ;;  %v5080_v56 = vpop.f32.mrb[67].mxu1  ;;  %v2972_v57 = vadd.f32 %v2970_v51, %v6215_v25 }
0x1abe   : > { %v2974_v58 = vsel %vm1295_vm4, %v2972_v57, -inf  ;;  %v2973_v59 = vadd.f32 %v2971_v55, %v6217_v27 }
0x1abf   : > { %2975 = vmax.xlane.f32.xlu1 %v2974_v58 }
0x1ac0   : > { %v2977_v60 = vsel %vm1295_vm4, %v2973_v59, -inf }
0x1ac1   : > { %2978 = vmax.xlane.f32.xlu0 %v2977_v60  ;;  %v3088_v61 = vpop.f32.mrb[68].mxu1 }
0x1ac2   : > { %v3095_v62 = vmul.f32 0.35355338, %v3088_v61  ;;  %v5091_v63 = vpop.f32.mrb[69].mxu1 }
0x1ac3   : > { %v3091_v0 = vpop.f32.mrb[70].mxu1 }
0x1ac4   : > { %v3096_v2 = vmul.f32 0.35355338, %v3091_v0  ;;  %v5092_v35 = vpop.f32.mrb[71].mxu1  ;;  %v3097_v3 = vadd.f32 %v3095_v62, %v6215_v25 }
0x1ac6   : > { %v3099_v4 = vsel %vm1295_vm4, %v3097_v3, -inf  ;;  %v3098_v5 = vadd.f32 %v3096_v2, %v6217_v27 }
0x1ac7   : > { %3100 = vmax.xlane.f32.xlu1 %v3099_v4 }
0x1ac8   : > { %v3102_v8 = vsel %vm1295_vm4, %v3098_v5, -inf }
0x1ac9   : > { %3103 = vmax.xlane.f32.xlu0 %v3102_v8 }
0x1ad8   : > { %2747 = vrot.lane.b32.xlu1 %v6171_v9, %s6691_s21 }
0x1b3c   : > { %v2726_v10 = vpop.xlane.xlu0 %2725 }
0x1b3d   : > { %v2730_v11 = vsub.f32 %v2722_v37, %v2726_v10 }
0x1b3e   : > { %v2729_v12 = vpop.xlane.xlu1 %2728 }
0x1b3f   : > { %v2732_v52 = vmul.f32 1.442695, %v2730_v11  ;;  %v2731_v13 = vsub.f32 %v2723_v32, %v2729_v12 }
0x1b41   : > { %5412 = vpow2.f32 %v2732_v52  ;;  %v2734_v34 = vmul.f32 1.442695, %v2731_v13 }
0x1b43   : > { %5414 = vpow2.f32 %v2734_v34 }
0x1b44   : > { %v2851_v14 = vpop.xlane.xlu0 %2850 }
0x1b45   : > { %v2855_v15 = vsub.f32 %v2847_v45, %v2851_v14 }
0x1b47   : > { %v2857_v17 = vmul.f32 1.442695, %v2855_v15 }
0x1b48   : > { %v2854_v18 = vpop.xlane.xlu0 %2853 }
0x1b49   : > { %5416 = vpow2.f32 %v2857_v17  ;;  %v2856_v19 = vsub.f32 %v2848_v49, %v2854_v18 }
0x1b4b   : > { %v5413_v20 = vpop.eup %5412  ;;  %v2859_v21 = vmul.f32 1.442695, %v2856_v19 }
0x1b4c   : > { %v2976_v7 = vpop.xlane.xlu1 %2975  ;;  %v2736_v22 = vsel %vm1295_vm4, %v5413_v20, 0.0 }
0x1b4d   : > { %v5415_v23 = vpop.eup %5414  ;;  %5418 = vpow2.f32 %v2859_v21  ;;  %v2980_v1 = vsub.f32 %v2972_v57, %v2976_v7  ;;  %2737 = vadd.xlane.f32.xlu1 %v2736_v22 }
0x1b4e   : > { %v2979_v24 = vpop.xlane.xlu0 %2978  ;;  %v2739_v26 = vsel %vm1295_vm4, %v5415_v23, 0.0 }
0x1b4f   : > { %v2982_v28 = vmul.f32 1.442695, %v2980_v1  ;;  %v2981_v31 = vsub.f32 %v2973_v59, %v2979_v24  ;;  %2740 = vadd.xlane.f32.xlu0 %v2739_v26 }
0x1b51   : > { %5420 = vpow2.f32 %v2982_v28  ;;  %v2984_v29 = vmul.f32 1.442695, %v2981_v31  ;;  %v5334_v31 = vld [vmem:[%s6590_s8] sm:$0xff]  }
0x1b52   : > { %5100 = vmatpush3.bf16.msra.mxu1 %v5334_v31 }
0x1b53   : > { %v5417_v30 = vpop.eup %5416  ;;  %5422 = vpow2.f32 %v2984_v29  ;;  %5101 = vmatprep.subr.bf16.mxu1 %v5572_v6 }
0x1b54   : > { %v3101_v36 = vpop.xlane.xlu1 %3100  ;;  %v2861_v37 = vsel %vm1295_vm4, %v5417_v30, 0.0 }
0x1b55   : > { %v3105_v38 = vsub.f32 %v3097_v3, %v3101_v36  ;;  %2862 = vadd.xlane.f32.xlu1 %v2861_v37 }
0x1b56   : > { %v3104_v32 = vpop.xlane.xlu0 %3103 }
0x1b57   : > { %v5419_v16 = vpop.eup %5418  ;;  %v3107_v39 = vmul.f32 1.442695, %v3105_v38  ;;  %v3106_v40 = vsub.f32 %v3098_v5, %v3104_v32  ;;  %v5335_v38 = vld [vmem:[%s6590_s8 + $0x8] sm:$0xff]  }
0x1b58   : > { %v2748_v41 = vpop.permute.xlu1 %2747  ;;  %v2864_v42 = vsel %vm1295_vm4, %v5419_v16, 0.0  ;;  %5102 = vmatpush3.bf16.msra.mxu1 %v5335_v38 }
0x1b59   : > { %5424 = vpow2.f32 %v3107_v39  ;;  %v3109_v43 = vmul.f32 1.442695, %v3106_v40  ;;  %5058 = vmatpush3.bf16.msra.mxu0 %v2748_v41  ;;  %2865 = vadd.xlane.f32.xlu0 %v2864_v42 }
0x1b5a   : > { %5069 = vmatprep.subr.bf16.mxu0 %v5572_v6  ;;  %5115 = vmatprep.subr.bf16.mxu1 %v5572_v6 }
0x1b5b   : > { %v5421_v44 = vpop.eup %5420  ;;  %5426 = vpow2.f32 %v3109_v43 }
0x1b5c   : > { %v2986_v45 = vsel %vm1295_vm4, %v5421_v44, 0.0 }
0x1b5d   : > { %v5423_v48 = vpop.eup %5422  ;;  %2987 = vadd.xlane.f32.xlu1 %v2986_v45 }
0x1b5e   : > { %v2989_v49 = vsel %vm1295_vm4, %v5423_v48, 0.0 }
0x1b5f   : > { %2990 = vadd.xlane.f32.xlu0 %v2989_v49 }
0x1b63   : > { %v5425_v50 = vpop.eup %5424 }
0x1b64   : > { %v3111_v51 = vsel %vm1295_vm4, %v5425_v50, 0.0 }
0x1b65   : > { %v5427_v33 = vpop.eup %5426  ;;  %3112 = vadd.xlane.f32.xlu1 %v3111_v51 }
0x1b66   : > { %v3114_v53 = vsel %vm1295_vm4, %v5427_v33, 0.0 }
0x1b67   : > { %3115 = vadd.xlane.f32.xlu0 %v3114_v53 }
0x1b76   : > { %2997 = vrot.lane.b32.xlu1 %v6171_v9, %s6686_s23 }
0x1b7a   : > { %3122 = vrot.lane.b32.xlu1 %v6171_v9, %s6687_s26 }
0x1b7d   : > { %2872 = vrot.lane.b32.xlu0 %v6171_v9, %s6685_s6 }
0x1bda   : > { %v2738_v54 = vpop.xlane.xlu1 %2737 }
0x1bdb   : > { %5428 = vrcp.f32 %v2738_v54 }
0x1bdc   : > { %v2741_v55 = vpop.xlane.xlu0 %2740 }
0x1bdd   : > { %5430 = vrcp.f32 %v2741_v55 }
0x1be2   : > { %v2863_v61 = vpop.xlane.xlu1 %2862 }
0x1be5   : > { %v5429_v56 = vpop.eup %5428 }
0x1be6   : > { %v2866_v57 = vpop.xlane.xlu0 %2865  ;;  %v2744_v59 = vmul.f32 %v5429_v56, %v5413_v20 }
0x1be7   : > { %v5431_v58 = vpop.eup %5430  ;;  %5432 = vrcp.f32 %v2866_v57 }
0x1be8   : > { %v2745_v60 = vmul.f32 %v5431_v58, %v5415_v23  ;;  %5434 = vrcp.f32 %v2863_v61 }
0x1bea   : > { %v2746_v62 = vpack.c.bf16 %v2745_v60, %v2744_v59  ;;  %v2988_v9 = vpop.xlane.xlu1 %2987 }
0x1bec   : > { %5060 = vmatmul.mubr.msk.bf16.vlgmr.msra.gmra.mrb[60].mxu0 %vm1295_vm4, %v2746_v62  ;;  %v2991_v63 = vpop.xlane.xlu0 %2990 }
0x1bed   : > { %5071 = vmatprep.mubr.msk.bf16.mxu0 %vm5573_vm1, %v5572_v6  ;;  %5436 = vrcp.f32 %v2991_v63 }
0x1bee   : > { %5438 = vrcp.f32 %v2988_v9 }
0x1bf1   : > { %v5433_v0 = vpop.eup %5432 }
0x1bf2   : > { %v5435_v35 = vpop.eup %5434  ;;  %v2870_v3 = vmul.f32 %v5433_v0, %v5419_v16  ;;  %v3113_v4 = vpop.xlane.xlu1 %3112 }
0x1bf3   : > { %v2869_v5 = vmul.f32 %v5435_v35, %v5417_v30 }
0x1bf4   : > { %v3116_v2 = vpop.xlane.xlu0 %3115 }
0x1bf5   : > { %5440 = vrcp.f32 %v3116_v2  ;;  %v2871_v10 = vpack.c.bf16 %v2870_v3, %v2869_v5 }
0x1bf6   : > { %5442 = vrcp.f32 %v3113_v4  ;;  %v2998_v12 = vpop.permute.xlu1 %2997 }
0x1bf7   : > { %v5437_v11 = vpop.eup %5436 }
0x1bf8   : > { %v2873_v8 = vpop.permute.xlu0 %2872  ;;  %v5439_v52 = vpop.eup %5438  ;;  %v2995_v13 = vmul.f32 %v5437_v11, %v5423_v48 }
0x1bf9   : > { %5070 = vmatpush3.bf16.msra.mxu0 %v2873_v8  ;;  %v2994_v34 = vmul.f32 %v5439_v52, %v5421_v44 }
0x1bfa   : > { %5081 = vmatprep.subr.bf16.mxu0 %v5572_v6  ;;  %v3123_v17 = vpop.permute.xlu1 %3122 }
0x1bfb   : > { %v2996_v14 = vpack.c.bf16 %v2995_v13, %v2994_v34 }
0x1bfc   : > { %5072 = vmatmul.mubr.msk.bf16.vlgmr.msra.gmra.mrb[64].mxu0 %vm1295_vm4, %v2871_v10 }
0x1bfd   : > { %5082 = vmatpush3.bf16.msra.mxu0 %v2998_v12  ;;  %5083 = vmatprep.mubr.msk.bf16.mxu0 %vm5573_vm1, %v5572_v6 }
0x1bfe   : > { %5093 = vmatprep.subr.bf16.mxu0 %v5572_v6 }
0x1bff   : > { %v5441_v15 = vpop.eup %5440 }
0x1c00   : > { %v5443_v18 = vpop.eup %5442  ;;  %v3120_v19 = vmul.f32 %v5441_v15, %v5427_v33 }
0x1c01   : > { %v3119_v20 = vmul.f32 %v5443_v18, %v5425_v50 }
0x1c03   : > { %v3121_v21 = vpack.c.bf16 %v3120_v19, %v3119_v20  ;;  %v4649_v19 = vld [vmem:[%s6702_s15] ss:$0 sm:$0xff] }
0x1c04   : > { %5084 = vmatmul.mubr.msk.bf16.vlgmr.msra.gmra.mrb[68].mxu0 %vm1295_vm4, %v2996_v14 }
0x1c05   : > { %5094 = vmatpush3.bf16.msra.mxu0 %v3123_v17  ;;  %5095 = vmatprep.mubr.msk.bf16.mxu0 %vm5573_vm1, %v5572_v6 }
0x1c06   : > { %5107 = vmatprep.subr.bf16.mxu0 %v5572_v6 }
0x1c0c   : > { %5096 = vmatmul.mubr.msk.bf16.vlgmr.msra.gmra.mrb[72].mxu0 %vm1295_vm4, %v3121_v21 }
0x1c0d   : > { %5111 = vmatprep.mubr.msk.bf16.mxu0 %vm5573_vm1, %v5572_v6 }
0x1cbf   : > { %v2787_v7 = vpop.f32.mrb[60].mxu0 }
0x1cc0   : > { %v5061_v22 = vpop.f32.mrb[61].mxu0 }
0x1cc1   : > { %v2790_v23 = vpop.f32.mrb[62].mxu0 }
0x1cc2   : > { %v5062_v1 = vpop.f32.mrb[63].mxu0 }
0x1cc3   : > { %v5339_v1 = vld [vmem:[%s6593_s11 + $0x8] sm:$0xff]  }
0x1ccf   : > { %v2912_v24 = vpop.f32.mrb[64].mxu0 }
0x1cd0   : > { %v5073_v26 = vpop.f32.mrb[65].mxu0 }
0x1cd1   : > { %v2915_v28 = vpop.f32.mrb[66].mxu0  ;;  %v5341_v26 = vld [vmem:[%s6593_s11 + $0x18] sm:$0xff]  }
0x1cd2   : > { %v5278_v29 = vpack.i.bf16 %v2915_v28, %v2912_v24  ;;  %v5074_v30 = vpop.f32.mrb[67].mxu0  ;;  %v5340_v24 = vld [vmem:[%s6593_s11 + $0x10] sm:$0xff]  }
0x1cd4   : > { %5279 = vrot.lane.b32.xlu0 %v5278_v29, %s6688_s30 }
0x1cd7   : > { %v3037_v36 = vpop.f32.mrb[68].mxu0 }
0x1cd8   : > { %v5085_v37 = vpop.f32.mrb[69].mxu0 }
0x1cd9   : > { %v3040_v32 = vpop.f32.mrb[70].mxu0 }
0x1cda   : > { %v5283_v16 = vpack.i.bf16 %v3040_v32, %v3037_v36  ;;  %v5086_v39 = vpop.f32.mrb[71].mxu0 }
0x1cdc   : > { %5284 = vrot.lane.b32.xlu1 %v5283_v16, %s6700_s14 }
0x1cdf   : > { %v3162_v40 = vpop.f32.mrb[72].mxu0 }
0x1ce0   : > { %v5097_v41 = vpop.f32.mrb[73].mxu0 }
0x1ce1   : > { %v3165_v42 = vpop.f32.mrb[74].mxu0 }
0x1ce2   : > { %v5288_v43 = vpack.i.bf16 %v3165_v42, %v3162_v40  ;;  %v5098_v44 = vpop.f32.mrb[75].mxu0 }
0x1ce4   : > { %5289 = vrot.lane.b32.xlu0 %v5288_v43, %s6701_s20 }
0x1d46   : > { %v5280_v45 = vpop.permute.xlu0 %5279 }
0x1d47   : > { %v5282_v49 = vunpack.i.h.bf16 %v5280_v45  ;;  %v5281_v50 = vunpack.i.l.bf16 %v5280_v45 }
0x1d49   : > { %v3194_v54 = vsel %vm830_vm2, %v2790_v23, %v5282_v49  ;;  %v3193_v55 = vsel %vm830_vm2, %v2787_v7, %v5281_v50  ;;  %v5338_v23 = vld [vmem:[%s6593_s11] sm:$0xff]  }
0x1d4e   : > { %v5285_v48 = vpop.permute.xlu1 %5284 }
0x1d4f   : > { %v5287_v51 = vunpack.i.h.bf16 %v5285_v48  ;;  %v5286_v33 = vunpack.i.l.bf16 %v5285_v48 }
0x1d51   : > { %v3196_v58 = vsel %vm1295_vm4, %v3194_v54, %v5287_v51  ;;  %v3195_v59 = vsel %vm1295_vm4, %v3193_v55, %v5286_v33 }
0x1d56   : > { %v5290_v53 = vpop.permute.xlu0 %5289 }
0x1d57   : > { %v5292_v56 = vunpack.i.h.bf16 %v5290_v53  ;;  %v5291_v57 = vunpack.i.l.bf16 %v5290_v53 }
0x1d59   : > { %v3198_v60 = vsel %vm1297_vm5, %v3196_v58, %v5292_v56  ;;  %v3197_v61 = vsel %vm1297_vm5, %v3195_v59, %v5291_v57 }
0x1d5a   : > { %v3199_v62 = vpack.c.bf16 %v3198_v60, %v3197_v61  ;;  %v5342_v61 = vld [vmem:[%s6589_s7 + $0x10] sm:$0xff]  }
0x1d5c   : > { %5104 = vmatmul.mubr.msk.bf16.vlgmr.msra.gmra.mrb[72].mxu1 %vm754_vm0, %v3199_v62  ;;  %v5343_v62 = vld [vmem:[%s6589_s7 + $0x18] sm:$0xff]  }
0x1d5d   : > { %5123 = vmatprep.mubr.msk.bf16.mxu1 %vm5573_vm1, %v5572_v6  ;;  %5116 = vmatpush3.bf16.msra.mxu1 %v5338_v23 }
0x1d5e   : > { %5117 = vmatprep.subr.bf16.mxu1 %v5572_v6 }
0x1d61   : > { %5118 = vmatpush3.bf16.msra.mxu1 %v5339_v1 }
0x1d62   : > { %5119 = vmatprep.subr.bf16.mxu1 %v5572_v6 }
0x1d65   : > { %5120 = vmatpush3.bf16.msra.mxu1 %v5340_v24 }
0x1d66   : > { %5121 = vmatprep.subr.bf16.mxu1 %v5572_v6 }
0x1d69   : > { %5122 = vmatpush3.bf16.msra.mxu1 %v5341_v26 }
0x1d6a   : > { %5141 = vmatprep.subr.bf16.mxu1 %v5572_v6 }
0x1e2f   : > { %v3249_v63 = vpop.f32.mrb[72].mxu1 }
0x1e30   : > { %v6288_v9 = vadd.f32 %v3249_v63, %v6147_v47  ;;  %v5105_v0 = vpop.f32.mrb[73].mxu1  ;;  %v5336_v47 = vld [vmem:[%s6592_s10] sm:$0xff]  }
0x1e31   : > { %v3252_v2 = vpop.f32.mrb[74].mxu1  ;;  %5108 = vmatpush3.bf16.msra.mxu0 %v5336_v47 }
0x1e32   : > { %v6291_v35 = vadd.f32 %v3252_v2, %v6145_v46  ;;  %v5106_v3 = vpop.f32.mrb[75].mxu1  ;;  %v3258_v4 = vmul.f32 %v6288_v9, %v6288_v9  ;;  %v5337_v46 = vld [vmem:[%s6592_s10 + $0x8] sm:$0xff]   ;;  %5109 = vmatprep.subr.bf16.mxu0 %v5572_v6 }
0x1e34   : > { %v3260_v5 = vsel %vm754_vm0, %v3258_v4, 0.0  ;;  %v3259_v8 = vmul.f32 %v6291_v35, %v6291_v35 }
0x1e35   : > { %3261 = vadd.xlane.f32.xlu1 %v3260_v5  ;;  %5110 = vmatpush3.bf16.msra.mxu0 %v5337_v46 }
0x1e36   : > { %v3263_v10 = vsel %vm754_vm0, %v3259_v8, 0.0  ;;  %5127 = vmatprep.subr.bf16.mxu0 %v5572_v6 }
0x1e37   : > { %3264 = vadd.xlane.f32.xlu0 %v3263_v10  ;;  %v4682_v10 = vld [vmem:[%s6675_s5 + $0x1] ss:$0 sm:$0xff] }
0x1ec2   : > { %v3262_v11 = vpop.xlane.xlu1 %3261 }
0x1ec3   : > { %v3266_v12 = vmul.f32 0.03125, %v3262_v11 }
0x1ec4   : > { %v3265_v52 = vpop.xlane.xlu0 %3264 }
0x1ec5   : > { %v3268_v13 = vadd.f32 1e-06, %v3266_v12  ;;  %v3267_v34 = vmul.f32 0.03125, %v3265_v52 }
0x1ec7   : > { %5444 = vrsqrt.f32 %v3268_v13  ;;  %v3269_v14 = vadd.f32 1e-06, %v3267_v34 }
0x1ec9   : > { %5446 = vrsqrt.f32 %v3269_v14 }
0x1ed1   : > { %v5445_v15 = vpop.eup %5444 }
0x1ed2   : > { %v3272_v17 = vmul.f32 %v5445_v15, %v6288_v9 }
0x1ed3   : > { %v5447_v18 = vpop.eup %5446 }
0x1ed4   : > { %v3273_v20 = vmul.f32 %v5447_v18, %v6291_v35  ;;  %v3280_v21 = vmul.f32 %v4649_v19, %v3272_v17 }
0x1ed6   : > { %v3281_v7 = vmul.f32 %v4649_v19, %v3273_v20 }
0x1ed8   : > { %v3282_v22 = vpack.c.bf16 %v3281_v7, %v3280_v21 }
0x1eda   : > { %5112 = vmatmul.mubr.msk.bf16.vlgmr.msra.gmra.mrb[76].mxu0 %vm754_vm0, %v3282_v22 }
0x1edb   : > { %5131 = vmatprep.mubr.msk.bf16.mxu0 %vm5573_vm1, %v5572_v6  ;;  %5128 = vmatpush3.bf16.msra.mxu0 %v5342_v61 }
0x1edc   : > { %5129 = vmatprep.subr.bf16.mxu0 %v5572_v6 }
0x1edf   : > { %5130 = vmatpush3.bf16.msra.mxu0 %v5343_v62 }
0x1ee0   : > { %5135 = vmatprep.subr.bf16.mxu0 %v5572_v6 }
0x1fad   : > { %v3332_v28 = vpop.f32.mrb[76].mxu0 }
0x1fae   : > { %3355 = vrot.lane.b32.xlu0 %v3332_v28, %s6691_s21  ;;  %v5113_v31 = vpop.f32.mrb[77].mxu0  ;;  %v4653_v36 = vmul.f32 -1.442695, %v3332_v28 }
0x1faf   : > { %v3335_v29 = vpop.f32.mrb[78].mxu0 }
0x1fb0   : > { %3357 = vrot.lane.b32.xlu1 %v3335_v29, %s6691_s21  ;;  %v5114_v30 = vpop.f32.mrb[79].mxu0  ;;  %v4654_v37 = vmul.f32 -1.442695, %v3335_v29  ;;  %5448 = vpow2.f32 %v4653_v36 }
0x1fb2   : > { %5450 = vpow2.f32 %v4654_v37 }
0x1fba   : > { %v5449_v38 = vpop.eup %5448 }
0x1fbb   : > { %v3345_v16 = vadd.f32 1.0, %v5449_v38 }
0x1fbc   : > { %v5451_v32 = vpop.eup %5450 }
0x1fbd   : > { %v3346_v39 = vadd.f32 1.0, %v5451_v32  ;;  %5452 = vrcp.f32 %v3345_v16 }
0x1fbf   : > { %5454 = vrcp.f32 %v3346_v39 }
0x1fc7   : > { %v5453_v40 = vpop.eup %5452 }
0x1fc8   : > { %v3351_v43 = vmul.f32 %v5453_v40, %v3332_v28 }
0x1fc9   : > { %v5455_v41 = vpop.eup %5454 }
0x1fca   : > { %v3352_v44 = vmul.f32 %v5455_v41, %v3335_v29 }
0x2020   : > { %v3356_v42 = vpop.permute.xlu0 %3355 }
0x2021   : > { %v3361_v48 = vmul.f32 %v3356_v42, %v3351_v43 }
0x2022   : > { %v3358_v45 = vpop.permute.xlu1 %3357 }
0x2023   : > { %v3362_v49 = vmul.f32 %v3358_v45, %v3352_v44 }
0x2025   : > { %v3363_v50 = vpack.c.bf16 %v3362_v49, %v3361_v48 }
0x2027   : > { %5124 = vmatmul.mubr.msk.bf16.vlgmr.msra.gmra.mrb[76].mxu1 %vm1464_vm6, %v3363_v50 }
0x2028   : > { %5143 = vmatprep.mubr.msk.bf16.mxu1 %vm5573_vm1, %v5572_v6 }
0x20fa   : > { %v3425_v51 = vpop.f32.mrb[76].mxu1 }
0x20fb   : > { %v6337_v33 = vadd.f32 %v3425_v51, %v6288_v9  ;;  %v5125_v53 = vpop.f32.mrb[77].mxu1 }
0x20fc   : > { %v3428_v54 = vpop.f32.mrb[78].mxu1 }
0x20fd   : > { %v6340_v55 = vadd.f32 %v3428_v54, %v6291_v35  ;;  %v5126_v56 = vpop.f32.mrb[79].mxu1  ;;  %v3457_v57 = vmul.f32 %v6337_v33, %v6337_v33 }
0x20ff   : > { %v3459_v58 = vsel %vm754_vm0, %v3457_v57, 0.0  ;;  %v3458_v59 = vmul.f32 %v6340_v55, %v6340_v55 }
0x2100   : > { %3460 = vadd.xlane.f32.xlu1 %v3459_v58 }
0x2101   : > { %v3462_v60 = vsel %vm754_vm0, %v3458_v59, 0.0 }
0x2102   : > { %3463 = vadd.xlane.f32.xlu0 %v3462_v60 }
0x218d   : > { %v3461_v63 = vpop.xlane.xlu1 %3460 }
0x218e   : > { %v3465_v9 = vmul.f32 0.03125, %v3461_v63 }
0x218f   : > { %v3464_v0 = vpop.xlane.xlu0 %3463 }
0x2190   : > { %v3467_v2 = vadd.f32 1e-06, %v3465_v9  ;;  %v3466_v35 = vmul.f32 0.03125, %v3464_v0 }
0x2192   : > { %5456 = vrsqrt.f32 %v3467_v2  ;;  %v3468_v3 = vadd.f32 1e-06, %v3466_v35 }
0x2194   : > { %5458 = vrsqrt.f32 %v3468_v3 }
0x219c   : > { %v5457_v4 = vpop.eup %5456 }
0x219d   : > { %v3471_v5 = vmul.f32 %v5457_v4, %v6337_v33 }
0x219e   : > { %v5459_v8 = vpop.eup %5458 }
0x219f   : > { %v3472_v47 = vmul.f32 %v5459_v8, %v6340_v55  ;;  %v3479_v46 = vmul.f32 %v4682_v10, %v3471_v5 }
0x21a1   : > { %v3480_v11 = vmul.f32 %v4682_v10, %v3472_v47 }
0x21a3   : > { %v3481_v12 = vpack.c.bf16 %v3480_v11, %v3479_v46 }
0x21a5   : > { %5132 = vmatmul.mubr.msk.bf16.vlgmr.msra.gmra.mrb[80].mxu0 %vm754_vm0, %v3481_v12 }
0x21a6   : > { %5137 = vmatprep.mubr.msk.bf16.mxu0 %vm5573_vm1, %v5572_v6 }
0x2278   : > { %v3531_v52 = vpop.f32.mrb[80].mxu0 }
0x2279   : > { %v5133_v13 = vpop.f32.mrb[81].mxu0 }
0x227a   : > { %v3534_v34 = vpop.f32.mrb[82].mxu0 }
0x227b   : > { %v6364_v14 = vpack.c.bf16 %v3534_v34, %v3531_v52  ;;  %v5134_v15 = vpop.f32.mrb[83].mxu0 }
0x227d   : > { %3665 = vrot.lane.b32.xlu1 %v6364_v14, %s6678_s29  ;;  %3540 = vrot.lane.b32.xlu0 %v6364_v14, %s6679_s24  ;;  %s6705_s29 = sld [smem:[#allocation9_spill]] }
0x2281   : > { %3663 = vrot.lane.b32.xlu1 %v6364_v14, %s6681_s4  ;;  %3790 = vrot.lane.b32.xlu0 %v6364_v14, %s6683_s2  ;;  %s4425_s2 = sshll.u32 %s6128_s22, 4  ;;  %s4426_s2 = int_to_ptr.vmem [resolvable:$true] %s4425_s2 }
0x2282   : > { %s5508_s16 = scalar_lea.vmem %s4426_s2, 16 }
0x2283   : > { %p5509_p11 = scmp.ne.s32.totalorder %s4426_s2, %s5508_s16 }
0x2285   : > { %3788 = vrot.lane.b32.xlu1 %v6364_v14, %s6680_s25  ;;  %3915 = vrot.lane.b32.xlu0 %v6364_v14, %s6684_s3  ;;  %s6706_s25 = sld [smem:[#allocation22_spill]]  ;;  %p5510_p12 = pnand %p5509_p11, %p5743_p5 }
0x2287   : > { %p5511_p13 = pneg %p5510_p12 }
0x2289   : > { %3913 = vrot.lane.b32.xlu1 %v6364_v14, %s6682_s0  ;;  %s4712_s0 = sshll.u32 %s6705_s29, 4 }
0x22ef   : > { %v3541_v17 = vpop.permute.xlu0 %3540  ;;  %v3666_v19 = vpop.permute.xlu1 %3665 }
0x22f0   : > { %v3546_v18 = vsel %vm830_vm2, %v3541_v17, 0  ;;  %v3671_v20 = vsel %vm830_vm2, %v3666_v19, 0 }
0x22f1   : > { %5136 = vmatpush3.bf16.xpose.msra.mxu0 %v3546_v18 }
0x22f2   : > { %5147 = vmatprep.subr.bf16.mxu0 %v5572_v6 }
0x22f3   : > { %v3791_v21 = vpop.permute.xlu0 %3790  ;;  %v3664_v7 = vpop.permute.xlu1 %3663 }
0x22f4   : > { %v3796_v22 = vsel %vm830_vm2, %v3791_v21, 0 }
0x22f7   : > { %v3916_v23 = vpop.permute.xlu0 %3915  ;;  %v3789_v1 = vpop.permute.xlu1 %3788 }
0x22f8   : > { %5138 = vmatmul.mubr.msk.bf16.vlgmr.msra.gmra.mrb[84].mxu0 %vm830_vm2, %v6364_v14  ;;  %v3921_v24 = vsel %vm830_vm2, %v3916_v23, 0 }
0x22f9   : > { %5148 = vmatpush3.bf16.xpose.msra.mxu0 %v3671_v20  ;;  %5149 = vmatprep.mubr.msk.bf16.mxu0 %vm5573_vm1, %v5572_v6 }
0x22fa   : > { %5159 = vmatprep.subr.bf16.mxu0 %v5572_v6 }
0x22fb   : > { %v3914_v26 = vpop.permute.xlu1 %3913 }
0x2300   : > { %5150 = vmatmul.mubr.msk.bf16.vlgmr.msra.gmra.mrb[88].mxu0 %vm830_vm2, %v3664_v7 }
0x2301   : > { %5160 = vmatpush3.bf16.xpose.msra.mxu0 %v3796_v22  ;;  %5161 = vmatprep.mubr.msk.bf16.mxu0 %vm5573_vm1, %v5572_v6 }
0x2302   : > { %5171 = vmatprep.subr.bf16.mxu0 %v5572_v6 }
0x2308   : > { %5162 = vmatmul.mubr.msk.bf16.vlgmr.msra.gmra.mrb[92].mxu0 %vm830_vm2, %v3789_v1 }
0x2309   : > { %5172 = vmatpush3.bf16.xpose.msra.mxu0 %v3921_v24  ;;  %5173 = vmatprep.mubr.msk.bf16.mxu0 %vm5573_vm1, %v5572_v6 }
0x230a   : > { %5183 = vmatprep.subr.bf16.mxu0 %v5572_v6 }
0x2310   : > { %5174 = vmatmul.mubr.msk.bf16.vlgmr.msra.gmra.mrb[96].mxu0 %vm830_vm2, %v3914_v26 }
0x2311   : > { %5187 = vmatprep.mubr.msk.bf16.mxu0 %vm5573_vm1, %v5572_v6 }
0x23cb   : > { %v3582_v28 = vpop.f32.mrb[84].mxu0 }
0x23cc   : > { %v3589_v31 = vmul.f32 0.35355338, %v3582_v28  ;;  %v5139_v29 = vpop.f32.mrb[85].mxu0 }
0x23cd   : > { %v3585_v30 = vpop.f32.mrb[86].mxu0 }
0x23ce   : > { %v3590_v36 = vmul.f32 0.35355338, %v3585_v30  ;;  %v5140_v37 = vpop.f32.mrb[87].mxu0  ;;  %v3591_v38 = vadd.f32 %v3589_v31, %v6215_v25 }
0x23d0   : > { %v3592_v32 = vadd.f32 %v3590_v36, %v6217_v27  ;;  %v3593_v16 = vsel %vm1295_vm4, %v3591_v38, -inf }
0x23d1   : > { %3594 = vmax.xlane.f32.xlu0 %v3593_v16 }
0x23d2   : > { %v3596_v39 = vsel %vm1295_vm4, %v3592_v32, -inf }
0x23d3   : > { %3597 = vmax.xlane.f32.xlu1 %v3596_v39  ;;  %v3707_v40 = vpop.f32.mrb[88].mxu0 }
0x23d4   : > { %v3714_v41 = vmul.f32 0.35355338, %v3707_v40  ;;  %v5151_v42 = vpop.f32.mrb[89].mxu0 }
0x23d5   : > { %v3710_v43 = vpop.f32.mrb[90].mxu0 }
0x23d6   : > { %v3715_v44 = vmul.f32 0.35355338, %v3710_v43  ;;  %v5152_v45 = vpop.f32.mrb[91].mxu0  ;;  %v3716_v48 = vadd.f32 %v3714_v41, %v6215_v25 }
0x23d8   : > { %v3717_v49 = vadd.f32 %v3715_v44, %v6217_v27  ;;  %v3718_v50 = vsel %vm1295_vm4, %v3716_v48, -inf }
0x23d9   : > { %3719 = vmax.xlane.f32.xlu0 %v3718_v50 }
0x23da   : > { %v3721_v56 = vsel %vm1295_vm4, %v3717_v49, -inf }
0x23db   : > { %v3832_v51 = vpop.f32.mrb[92].mxu0 }
0x23dc   : > { %v3839_v53 = vmul.f32 0.35355338, %v3832_v51  ;;  %v5163_v54 = vpop.f32.mrb[93].mxu0 }
0x23dd   : > { %3722 = vmax.xlane.f32.xlu0 %v3721_v56  ;;  %v3835_v57 = vpop.f32.mrb[94].mxu0 }
0x23de   : > { %v3841_v58 = vadd.f32 %v3839_v53, %v6215_v25  ;;  %v3840_v59 = vmul.f32 0.35355338, %v3835_v57  ;;  %v5164_v60 = vpop.f32.mrb[95].mxu0 }
0x23e0   : > { %v3842_v61 = vadd.f32 %v3840_v59, %v6217_v27  ;;  %v3843_v62 = vsel %vm1295_vm4, %v3841_v58, -inf }
0x23e1   : > { %3844 = vmax.xlane.f32.xlu1 %v3843_v62 }
0x23e2   : > { %v3846_v63 = vsel %vm1295_vm4, %v3842_v61, -inf }
0x23e3   : > { %3847 = vmax.xlane.f32.xlu0 %v3846_v63  ;;  %v3957_v9 = vpop.f32.mrb[96].mxu0 }
0x23e4   : > { %v3964_v0 = vmul.f32 0.35355338, %v3957_v9  ;;  %v5175_v2 = vpop.f32.mrb[97].mxu0 }
0x23e5   : > { %v3960_v35 = vpop.f32.mrb[98].mxu0 }
0x23e6   : > { %v3966_v3 = vadd.f32 %v3964_v0, %v6215_v25  ;;  %v3965_v4 = vmul.f32 0.35355338, %v3960_v35  ;;  %v5176_v5 = vpop.f32.mrb[99].mxu0 }
0x23e8   : > { %v3967_v8 = vadd.f32 %v3965_v4, %v6217_v27  ;;  %v3968_v10 = vsel %vm1295_vm4, %v3966_v3, -inf }
0x23e9   : > { %3969 = vmax.xlane.f32.xlu1 %v3968_v10 }
0x23ea   : > { %v3971_v47 = vsel %vm1295_vm4, %v3967_v8, -inf }
0x23eb   : > { %3972 = vmax.xlane.f32.xlu0 %v3971_v47 }
0x23fa   : > { %3616 = vrot.lane.b32.xlu1 %v6364_v14, %s6691_s21 }
0x245e   : > { %v3595_v46 = vpop.xlane.xlu0 %3594 }
0x245f   : > { %v3599_v11 = vsub.f32 %v3591_v38, %v3595_v46 }
0x2460   : > { %v3598_v12 = vpop.xlane.xlu1 %3597 }
0x2461   : > { %v3601_v52 = vmul.f32 1.442695, %v3599_v11  ;;  %v3600_v13 = vsub.f32 %v3592_v32, %v3598_v12 }
0x2463   : > { %5460 = vpow2.f32 %v3601_v52  ;;  %v3603_v25 = vmul.f32 1.442695, %v3600_v13 }
0x2465   : > { %5462 = vpow2.f32 %v3603_v25 }
0x2466   : > { %v3720_v34 = vpop.xlane.xlu0 %3719 }
0x2467   : > { %v3724_v15 = vsub.f32 %v3716_v48, %v3720_v34 }
0x2469   : > { %v3726_v27 = vmul.f32 1.442695, %v3724_v15 }
0x246a   : > { %v3723_v17 = vpop.xlane.xlu0 %3722 }
0x246b   : > { %5464 = vpow2.f32 %v3726_v27  ;;  %v3725_v18 = vsub.f32 %v3717_v49, %v3723_v17 }
0x246d   : > { %v5461_v19 = vpop.eup %5460  ;;  %v3728_v20 = vmul.f32 1.442695, %v3725_v18 }
0x246e   : > { %v3845_v21 = vpop.xlane.xlu1 %3844  ;;  %v3605_v7 = vsel %vm1295_vm4, %v5461_v19, 0.0 }
0x246f   : > { %v5463_v22 = vpop.eup %5462  ;;  %5466 = vpow2.f32 %v3728_v20  ;;  %v3849_v23 = vsub.f32 %v3841_v58, %v3845_v21  ;;  %3606 = vadd.xlane.f32.xlu1 %v3605_v7 }
0x2470   : > { %v3848_v1 = vpop.xlane.xlu0 %3847  ;;  %v3608_v24 = vsel %vm1295_vm4, %v5463_v22, 0.0 }
0x2471   : > { %v3851_v26 = vmul.f32 1.442695, %v3849_v23  ;;  %v3850_v28 = vsub.f32 %v3842_v61, %v3848_v1  ;;  %3609 = vadd.xlane.f32.xlu0 %v3608_v24  ;;  %v5344_v24 = vld [vmem:[%s6590_s8 + $0x10] sm:$0xff]  }
0x2472   : > { %5184 = vmatpush3.bf16.msra.mxu0 %v5344_v24 }
0x2473   : > { %5468 = vpow2.f32 %v3851_v26  ;;  %v3853_v31 = vmul.f32 1.442695, %v3850_v28  ;;  %5185 = vmatprep.subr.bf16.mxu0 %v5572_v6 }
0x2475   : > { %v5465_v29 = vpop.eup %5464  ;;  %5470 = vpow2.f32 %v3853_v31 }
0x2476   : > { %v3970_v30 = vpop.xlane.xlu1 %3969  ;;  %v3730_v36 = vsel %vm1295_vm4, %v5465_v29, 0.0 }
0x2477   : > { %v3974_v37 = vsub.f32 %v3966_v3, %v3970_v30  ;;  %3731 = vadd.xlane.f32.xlu1 %v3730_v36  ;;  %v5345_v30 = vld [vmem:[%s6590_s8 + $0x18] sm:$0xff]  }
0x2478   : > { %v3973_v38 = vpop.xlane.xlu0 %3972  ;;  %5186 = vmatpush3.bf16.msra.mxu0 %v5345_v30 }
0x2479   : > { %v5467_v32 = vpop.eup %5466  ;;  %v3976_v16 = vmul.f32 1.442695, %v3974_v37  ;;  %v3975_v39 = vsub.f32 %v3967_v8, %v3973_v38  ;;  %5199 = vmatprep.subr.bf16.mxu0 %v5572_v6 }
0x247a   : > { %v3617_v40 = vpop.permute.xlu1 %3616  ;;  %v3733_v41 = vsel %vm1295_vm4, %v5467_v32, 0.0 }
0x247b   : > { %5472 = vpow2.f32 %v3976_v16  ;;  %v3978_v42 = vmul.f32 1.442695, %v3975_v39  ;;  %5142 = vmatpush3.bf16.msra.mxu1 %v3617_v40  ;;  %3734 = vadd.xlane.f32.xlu0 %v3733_v41 }
0x247c   : > { %5153 = vmatprep.subr.bf16.mxu1 %v5572_v6 }
0x247d   : > { %v5469_v43 = vpop.eup %5468  ;;  %5474 = vpow2.f32 %v3978_v42 }
0x247e   : > { %v3855_v44 = vsel %vm1295_vm4, %v5469_v43, 0.0 }
0x247f   : > { %v5471_v45 = vpop.eup %5470  ;;  %3856 = vadd.xlane.f32.xlu1 %v3855_v44 }
0x2480   : > { %v3858_v48 = vsel %vm1295_vm4, %v5471_v45, 0.0 }
0x2481   : > { %3859 = vadd.xlane.f32.xlu0 %v3858_v48 }
0x2485   : > { %v5473_v49 = vpop.eup %5472 }
0x2486   : > { %v3980_v50 = vsel %vm1295_vm4, %v5473_v49, 0.0 }
0x2487   : > { %v5475_v51 = vpop.eup %5474  ;;  %3981 = vadd.xlane.f32.xlu1 %v3980_v50 }
0x2488   : > { %v3983_v53 = vsel %vm1295_vm4, %v5475_v51, 0.0 }
0x2489   : > { %3984 = vadd.xlane.f32.xlu0 %v3983_v53 }
0x2498   : > { %3866 = vrot.lane.b32.xlu1 %v6364_v14, %s6686_s23 }
0x249c   : > { %3991 = vrot.lane.b32.xlu1 %v6364_v14, %s6687_s26 }
0x249f   : > { %3741 = vrot.lane.b32.xlu0 %v6364_v14, %s6685_s6  ;;  %s6704_s6 = smov %s6703_s28 }
0x24fc   : > { %v3607_v54 = vpop.xlane.xlu1 %3606 }
0x24fd   : > { %5476 = vrcp.f32 %v3607_v54 }
0x24fe   : > { %v3610_v56 = vpop.xlane.xlu0 %3609 }
0x24ff   : > { %5478 = vrcp.f32 %v3610_v56 }
0x2504   : > { %v3732_v62 = vpop.xlane.xlu1 %3731 }
0x2507   : > { %v5477_v57 = vpop.eup %5476 }
0x2508   : > { %v3735_v58 = vpop.xlane.xlu0 %3734  ;;  %v3613_v60 = vmul.f32 %v5477_v57, %v5461_v19 }
0x2509   : > { %v5479_v59 = vpop.eup %5478  ;;  %5480 = vrcp.f32 %v3735_v58 }
0x250a   : > { %v3614_v61 = vmul.f32 %v5479_v59, %v5463_v22  ;;  %5482 = vrcp.f32 %v3732_v62 }
0x250c   : > { %v3615_v63 = vpack.c.bf16 %v3614_v61, %v3613_v60  ;;  %v3857_v14 = vpop.xlane.xlu1 %3856 }
0x250e   : > { %5144 = vmatmul.mubr.msk.bf16.vlgmr.msra.gmra.mrb[80].mxu1 %vm1295_vm4, %v3615_v63  ;;  %v3860_v9 = vpop.xlane.xlu0 %3859 }
0x250f   : > { %5155 = vmatprep.mubr.msk.bf16.mxu1 %vm5573_vm1, %v5572_v6  ;;  %5484 = vrcp.f32 %v3860_v9 }
0x2510   : > { %5486 = vrcp.f32 %v3857_v14 }
0x2513   : > { %v5481_v0 = vpop.eup %5480 }
0x2514   : > { %v5483_v35 = vpop.eup %5482  ;;  %v3739_v3 = vmul.f32 %v5481_v0, %v5467_v32  ;;  %v3982_v4 = vpop.xlane.xlu1 %3981 }
0x2515   : > { %v3738_v5 = vmul.f32 %v5483_v35, %v5465_v29 }
0x2516   : > { %v3985_v2 = vpop.xlane.xlu0 %3984 }
0x2517   : > { %5488 = vrcp.f32 %v3985_v2  ;;  %v3740_v10 = vpack.c.bf16 %v3739_v3, %v3738_v5 }
0x2518   : > { %5490 = vrcp.f32 %v3982_v4  ;;  %v3867_v46 = vpop.permute.xlu1 %3866 }
0x2519   : > { %v5485_v47 = vpop.eup %5484 }
0x251a   : > { %v3742_v8 = vpop.permute.xlu0 %3741  ;;  %v5487_v11 = vpop.eup %5486  ;;  %v3864_v12 = vmul.f32 %v5485_v47, %v5471_v45 }
0x251b   : > { %5154 = vmatpush3.bf16.msra.mxu1 %v3742_v8  ;;  %v3863_v52 = vmul.f32 %v5487_v11, %v5469_v43 }
0x251c   : > { %5165 = vmatprep.subr.bf16.mxu1 %v5572_v6  ;;  %v3992_v34 = vpop.permute.xlu1 %3991 }
0x251d   : > { %v3865_v13 = vpack.c.bf16 %v3864_v12, %v3863_v52 }
0x251e   : > { %5156 = vmatmul.mubr.msk.bf16.vlgmr.msra.gmra.mrb[84].mxu1 %vm1295_vm4, %v3740_v10 }
0x251f   : > { %5166 = vmatpush3.bf16.msra.mxu1 %v3867_v46  ;;  %5167 = vmatprep.mubr.msk.bf16.mxu1 %vm5573_vm1, %v5572_v6 }
0x2520   : > { %5177 = vmatprep.subr.bf16.mxu1 %v5572_v6 }
0x2521   : > { %v5489_v25 = vpop.eup %5488 }
0x2522   : > { %v5491_v15 = vpop.eup %5490  ;;  %v3989_v27 = vmul.f32 %v5489_v25, %v5475_v51 }
0x2523   : > { %v3988_v17 = vmul.f32 %v5491_v15, %v5473_v49 }
0x2525   : > { %v3990_v18 = vpack.c.bf16 %v3989_v27, %v3988_v17 }
0x2526   : > { %5168 = vmatmul.mubr.msk.bf16.vlgmr.msra.gmra.mrb[88].mxu1 %vm1295_vm4, %v3865_v13 }
0x2527   : > { %5178 = vmatpush3.bf16.msra.mxu1 %v3992_v34  ;;  %5179 = vmatprep.mubr.msk.bf16.mxu1 %vm5573_vm1, %v5572_v6  ;;  %v4697_v34 = vld [vmem:[%s6702_s15 + $0x1] ss:$0 sm:$0xff]  ;;  %s6709_s15 = sand.u32 1, %s5562_s27  }
0x2528   : > { %5191 = vmatprep.subr.bf16.mxu1 %v5572_v6  ;;  %s4410_s12 = scalar_lea.sflag [#allocation4], %s6709_s15 }
0x252e   : > { %5180 = vmatmul.mubr.msk.bf16.vlgmr.msra.gmra.mrb[92].mxu1 %vm1295_vm4, %v3990_v18 }
0x252f   : > { %5195 = vmatprep.mubr.msk.bf16.mxu1 %vm5573_vm1, %v5572_v6 }
0x25e1   : > { %v3656_v19 = vpop.f32.mrb[80].mxu1 }
0x25e2   : > { %v5145_v20 = vpop.f32.mrb[81].mxu1 }
0x25e3   : > { %v3659_v21 = vpop.f32.mrb[82].mxu1  ;;  %v5349_v20 = vld [vmem:[%s6593_s11 + $0x28] sm:$0xff]  }
0x25e4   : > { %v5146_v7 = vpop.f32.mrb[83].mxu1 }
0x25e5   : > { %v5351_v7 = vld [vmem:[%s6593_s11 + $0x38] sm:$0xff]  }
0x25f1   : > { %v3781_v22 = vpop.f32.mrb[84].mxu1 }
0x25f2   : > { %v5157_v23 = vpop.f32.mrb[85].mxu1 }
0x25f3   : > { %v3784_v1 = vpop.f32.mrb[86].mxu1 }
0x25f4   : > { %v5293_v26 = vpack.i.bf16 %v3784_v1, %v3781_v22  ;;  %v5158_v28 = vpop.f32.mrb[87].mxu1 }
0x25f6   : > { %5294 = vrot.lane.b32.xlu0 %v5293_v26, %s6688_s30 }
0x25f9   : > { %v3906_v31 = vpop.f32.mrb[88].mxu1 }
0x25fa   : > { %v5169_v29 = vpop.f32.mrb[89].mxu1 }
0x25fb   : > { %v3909_v36 = vpop.f32.mrb[90].mxu1 }
0x25fc   : > { %v5298_v37 = vpack.i.bf16 %v3909_v36, %v3906_v31  ;;  %v5170_v38 = vpop.f32.mrb[91].mxu1 }
0x25fe   : > { %5299 = vrot.lane.b32.xlu1 %v5298_v37, %s6700_s14 }
0x2601   : > { %v4031_v32 = vpop.f32.mrb[92].mxu1 }
0x2602   : > { %v5181_v16 = vpop.f32.mrb[93].mxu1 }
0x2603   : > { %v4034_v39 = vpop.f32.mrb[94].mxu1 }
0x2604   : > { %v5303_v40 = vpack.i.bf16 %v4034_v39, %v4031_v32  ;;  %v5182_v41 = vpop.f32.mrb[95].mxu1 }
0x2606   : > { %5304 = vrot.lane.b32.xlu0 %v5303_v40, %s6701_s20  ;;  %s6708_s20 = sld [smem:[#allocation29_spill]] }
0x260c   : > { %s6537_s13 = scalar_lea.hbm %s6708_s20, %s4712_s0 }
0x2668   : > { %v5295_v42 = vpop.permute.xlu0 %5294 }
0x2669   : > { %v5297_v44 = vunpack.i.h.bf16 %v5295_v42  ;;  %v5296_v45 = vunpack.i.l.bf16 %v5295_v42 }
0x266b   : > { %v4063_v51 = vsel %vm830_vm2, %v3659_v21, %v5297_v44  ;;  %v4062_v53 = vsel %vm830_vm2, %v3656_v19, %v5296_v45  ;;  %v5348_v19 = vld [vmem:[%s6593_s11 + $0x20] sm:$0xff]   ;;  %v5350_v21 = vld [vmem:[%s6593_s11 + $0x30] sm:$0xff]  }
0x2670   : > { %v5300_v43 = vpop.permute.xlu1 %5299 }
0x2671   : > { %v5302_v48 = vunpack.i.h.bf16 %v5300_v43  ;;  %v5301_v49 = vunpack.i.l.bf16 %v5300_v43 }
0x2673   : > { %v4065_v57 = vsel %vm1295_vm4, %v4063_v51, %v5302_v48  ;;  %v4064_v58 = vsel %vm1295_vm4, %v4062_v53, %v5301_v49 }
0x2678   : > { %v5305_v50 = vpop.permute.xlu0 %5304 }
0x2679   : > { %v5307_v54 = vunpack.i.h.bf16 %v5305_v50  ;;  %v5306_v56 = vunpack.i.l.bf16 %v5305_v50 }
0x267b   : > { %v4067_v59 = vsel %vm1297_vm5, %v4065_v57, %v5307_v54  ;;  %v4066_v60 = vsel %vm1297_vm5, %v4064_v58, %v5306_v56  ;;  %v5352_v58 = vld [vmem:[%s6703_s28] sm:$0xff]  }
0x267c   : > { %v4068_v61 = vpack.c.bf16 %v4067_v59, %v4066_v60  ;;  %v5353_v59 = vld [vmem:[%s6704_s6 + $0x8] sm:$0xff]  }
0x267e   : > { %5188 = vmatmul.mubr.msk.bf16.vlgmr.msra.gmra.mrb[100].mxu0 %vm754_vm0, %v4068_v61 }
0x267f   : > { %5207 = vmatprep.mubr.msk.bf16.mxu0 %vm5573_vm1, %v5572_v6  ;;  %5200 = vmatpush3.bf16.msra.mxu0 %v5348_v19 }
0x2680   : > { %5201 = vmatprep.subr.bf16.mxu0 %v5572_v6 }
0x2683   : > { %5202 = vmatpush3.bf16.msra.mxu0 %v5349_v20 }
0x2684   : > { %5203 = vmatprep.subr.bf16.mxu0 %v5572_v6 }
0x2687   : > { %5204 = vmatpush3.bf16.msra.mxu0 %v5350_v21 }
0x2688   : > { %5205 = vmatprep.subr.bf16.mxu0 %v5572_v6 }
0x268b   : > { %5206 = vmatpush3.bf16.msra.mxu0 %v5351_v7 }
0x2751   : > { %v4118_v62 = vpop.f32.mrb[100].mxu0 }
0x2752   : > { %v6470_v63 = vadd.f32 %v4118_v62, %v6337_v33  ;;  %v5189_v9 = vpop.f32.mrb[101].mxu0  ;;  %v5346_v33 = vld [vmem:[%s6592_s10 + $0x10] sm:$0xff]  }
0x2753   : > { %v4121_v14 = vpop.f32.mrb[102].mxu0  ;;  %5192 = vmatpush3.bf16.msra.mxu1 %v5346_v33 }
0x2754   : > { %v6473_v0 = vadd.f32 %v4121_v14, %v6340_v55  ;;  %v5190_v2 = vpop.f32.mrb[103].mxu0  ;;  %v4127_v35 = vmul.f32 %v6470_v63, %v6470_v63  ;;  %v5347_v55 = vld [vmem:[%s6592_s10 + $0x18] sm:$0xff]   ;;  %5193 = vmatprep.subr.bf16.mxu1 %v5572_v6 }
0x2756   : > { %v4129_v3 = vsel %vm754_vm0, %v4127_v35, 0.0  ;;  %v4128_v4 = vmul.f32 %v6473_v0, %v6473_v0 }
0x2757   : > { %4130 = vadd.xlane.f32.xlu1 %v4129_v3  ;;  %5194 = vmatpush3.bf16.msra.mxu1 %v5347_v55 }
0x2758   : > { %v4132_v5 = vsel %vm754_vm0, %v4128_v4, 0.0  ;;  %5211 = vmatprep.subr.bf16.mxu1 %v5572_v6 }
0x2759   : > { %4133 = vadd.xlane.f32.xlu0 %v4132_v5 }
0x27e4   : > { %v4131_v8 = vpop.xlane.xlu1 %4130 }
0x27e5   : > { %v4135_v10 = vmul.f32 0.03125, %v4131_v8 }
0x27e6   : > { %v4134_v47 = vpop.xlane.xlu0 %4133 }
0x27e7   : > { %v4137_v46 = vadd.f32 1e-06, %v4135_v10  ;;  %v4136_v11 = vmul.f32 0.03125, %v4134_v47 }
0x27e9   : > { %5492 = vrsqrt.f32 %v4137_v46  ;;  %v4138_v12 = vadd.f32 1e-06, %v4136_v11 }
0x27eb   : > { %5494 = vrsqrt.f32 %v4138_v12 }
0x27f3   : > { %v5493_v52 = vpop.eup %5492 }
0x27f4   : > { %v4141_v13 = vmul.f32 %v5493_v52, %v6470_v63 }
0x27f5   : > { %v5495_v25 = vpop.eup %5494 }
0x27f6   : > { %v4142_v15 = vmul.f32 %v5495_v25, %v6473_v0  ;;  %v4149_v27 = vmul.f32 %v4697_v34, %v4141_v13 }
0x27f8   : > { %v4150_v17 = vmul.f32 %v4697_v34, %v4142_v15 }
0x27fa   : > { %v4151_v18 = vpack.c.bf16 %v4150_v17, %v4149_v27 }
0x27fc   : > { %5196 = vmatmul.mubr.msk.bf16.vlgmr.msra.gmra.mrb[96].mxu1 %vm754_vm0, %v4151_v18 }
0x27fd   : > { %5215 = vmatprep.mubr.msk.bf16.mxu1 %vm5573_vm1, %v5572_v6  ;;  %5212 = vmatpush3.bf16.msra.mxu1 %v5352_v58 }
0x27fe   : > { %5213 = vmatprep.subr.bf16.mxu1 %v5572_v6  ;;  %v4708_v6 = vld [vmem:[%s6706_s25] ss:$0 sm:$0xff] }
0x2801   : > { %5214 = vmatpush3.bf16.msra.mxu1 %v5353_v59 }
0x28cf   : > { %v4201_v22 = vpop.f32.mrb[96].mxu1 }
0x28d0   : > { %4224 = vrot.lane.b32.xlu0 %v4201_v22, %s6691_s21  ;;  %v5197_v23 = vpop.f32.mrb[97].mxu1  ;;  %v4701_v26 = vmul.f32 -1.442695, %v4201_v22 }
0x28d1   : > { %v4204_v1 = vpop.f32.mrb[98].mxu1 }
0x28d2   : > { %4226 = vrot.lane.b32.xlu1 %v4204_v1, %s6691_s21  ;;  %v5198_v24 = vpop.f32.mrb[99].mxu1  ;;  %v4702_v28 = vmul.f32 -1.442695, %v4204_v1  ;;  %5496 = vpow2.f32 %v4701_v26 }
0x28d4   : > { %5498 = vpow2.f32 %v4702_v28 }
0x28dc   : > { %v5497_v31 = vpop.eup %5496 }
0x28dd   : > { %v4214_v30 = vadd.f32 1.0, %v5497_v31 }
0x28de   : > { %v5499_v29 = vpop.eup %5498 }
0x28df   : > { %v4215_v36 = vadd.f32 1.0, %v5499_v29  ;;  %5500 = vrcp.f32 %v4214_v30 }
0x28e1   : > { %5502 = vrcp.f32 %v4215_v36 }
0x28e9   : > { %v5501_v37 = vpop.eup %5500 }
0x28ea   : > { %v4220_v16 = vmul.f32 %v5501_v37, %v4201_v22 }
0x28eb   : > { %v5503_v38 = vpop.eup %5502 }
0x28ec   : > { %v4221_v39 = vmul.f32 %v5503_v38, %v4204_v1 }
0x2942   : > { %v4225_v32 = vpop.permute.xlu0 %4224 }
0x2943   : > { %v4230_v41 = vmul.f32 %v4225_v32, %v4220_v16 }
0x2944   : > { %v4227_v40 = vpop.permute.xlu1 %4226 }
0x2945   : > { %v4231_v42 = vmul.f32 %v4227_v40, %v4221_v39 }
0x2947   : > { %v4232_v43 = vpack.c.bf16 %v4231_v42, %v4230_v41 }
0x2949   : > { %5208 = vmatmul.mubr.msk.bf16.vlgmr.msra.gmra.mrb[104].mxu0 %vm1464_vm6, %v4232_v43 }
0x2a1c   : > { %v4294_v44 = vpop.f32.mrb[104].mxu0 }
0x2a1d   : > { %v4301_v45 = vadd.f32 %v4294_v44, %v6470_v63  ;;  %v5209_v48 = vpop.f32.mrb[105].mxu0 }
0x2a1e   : > { %v4297_v49 = vpop.f32.mrb[106].mxu0 }
0x2a1f   : > { %v4304_v50 = vmul.f32 %v4301_v45, %v4301_v45  ;;  %v4302_v51 = vadd.f32 %v4297_v49, %v6473_v0  ;;  %v5210_v53 = vpop.f32.mrb[107].mxu0 }
0x2a21   : > { %v4305_v54 = vmul.f32 %v4302_v51, %v4302_v51  ;;  %v4306_v56 = vsel %vm754_vm0, %v4304_v50, 0.0 }
0x2a22   : > { %4307 = vadd.xlane.f32.xlu1 %v4306_v56 }
0x2a23   : > { %v4309_v57 = vsel %vm754_vm0, %v4305_v54, 0.0 }
0x2a24   : > { %4310 = vadd.xlane.f32.xlu0 %v4309_v57 }
0x2aaf   : > { %v4308_v60 = vpop.xlane.xlu1 %4307 }
0x2ab0   : > { %v4312_v61 = vmul.f32 0.03125, %v4308_v60 }
0x2ab1   : > { %v4311_v62 = vpop.xlane.xlu0 %4310 }
0x2ab2   : > { %v4314_v63 = vadd.f32 1e-06, %v4312_v61  ;;  %v4313_v9 = vmul.f32 0.03125, %v4311_v62 }
0x2ab4   : > { %5504 = vrsqrt.f32 %v4314_v63  ;;  %v4315_v14 = vadd.f32 1e-06, %v4313_v9 }
0x2ab6   : > { %5506 = vrsqrt.f32 %v4315_v14 }
0x2abe   : > { %v5505_v0 = vpop.eup %5504 }
0x2abf   : > { %v4318_v2 = vmul.f32 %v5505_v0, %v4301_v45 }
0x2ac0   : > { %v5507_v35 = vpop.eup %5506 }
0x2ac1   : > { %v4326_v3 = vmul.f32 %v4708_v6, %v4318_v2  ;;  %v4319_v4 = vmul.f32 %v5507_v35, %v4302_v51 }
0x2ac3   : > { %4391 = vrot.lane.b32.xlu0 %v4326_v3, %s6691_s21  ;;  %v4327_v5 = vmul.f32 %v4708_v6, %v4319_v4 }
0x2ac5   : > { %4393 = vrot.lane.b32.xlu1 %v4327_v5, %s6691_s21  ;;  %v4328_v33 = vpack.c.bf16 %v4327_v5, %v4326_v3  ;;  %s5512_s21 = sshll.u32 %s5591_s17, 4  ;;  %s5513_s21 = int_to_ptr.vmem [resolvable:$false] %s5512_s21 }
0x2ac6   : > { %s5514_s19 = scalar_lea.vmem %s5513_s21, 32  ;;  %p5515_p0 = scmp.lt.s32.totalorder %s4426_s2, %s5513_s21 }
0x2ac7   : > { %5216 = vmatmul.mubr.msk.bf16.vlgmr.msra.gmra.mrb[100].mxu1 %vm754_vm0, %v4328_v33  ;;  %p5516_p1 = scmp.lt.s32.totalorder %s5514_s19, %s5508_s16 }
0x2ac9   : > { %p5517_p2 = por %p5516_p1, %p5515_p0 }
0x2acb   : > { %p5518_p3 = pnand %p5517_p2, %p5511_p13 }
0x2acd   : > { %5521 = shalt.err (!%p5518_p3)
}
0x2ace   : > { %s5522_s22 = scalar_lea.hbm %s6537_s13, 16  ;;  %s5526_s26 = scalar_lea.hbm %s6708_s20, 32 }
0x2acf   : > { %p5523_p4 = scmp.ne.s32.totalorder %s6537_s13, %s5522_s22  ;;  %p5527_p9 = scmp.lt.u32.totalorder %s6537_s13, %s6708_s20 }
0x2ad0   : > { %p5528_p10 = scmp.lt.u32.totalorder %s5526_s26, %s5522_s22  ;;  %p5530_p12 = scmp.lt.u32.totalorder %s5522_s22, %s6537_s13 }
0x2ad1   : > { %p5524_p7 = pnand %p5523_p4, %p5743_p5 }
0x2ad2   : > { %p5529_p11 = por %p5528_p10, %p5527_p9 }
0x2ad3   : > { %p5525_p8 = pneg %p5524_p7 }
0x2ad4   : > { %p5531_p13 = por %p5530_p12, %p5529_p11 }
0x2ad6   : > { %p5532_p0 = pnand %p5531_p13, %p5525_p8 }
0x2ad8   : > { %5535 = shalt.err (!%p5532_p0)
}
0x2ad9   : > { %5219 = dma.vmem_to_hbm [thread:$0]  (%p5743_p5), %s4426_s2, 16, %s6537_s13, %s4410_s12   ;;  %vm4399_vm12 = vcmask 785408  }
0x2ada   : > { %s6710_s30 = sshll.u32 %s5755_s1, 4  ;;  %s6711_s0 = sld [smem:[#allocation28_spill]] }
0x2ae0   : > { %s727_s3 = scalar_lea.vmem %s6711_s0, %s6710_s30 }
0x2b35   : > { %v4392_v55 = vpop.permute.xlu0 %4391 }
0x2b37   : > { %v4394_v46 = vpop.permute.xlu1 %4393 }
0x2b9a   : > { %v4382_v8 = vpop.f32.mrb[100].mxu1 }
0x2b9b   : > { %v4397_v10 = vsel %vm1464_vm6, %v4382_v8, %v4392_v55  ;;  %v5217_v47 = vpop.f32.mrb[101].mxu1 }
0x2b9c   : > { %v4400_v11 = vsel %vm4399_vm12, %v4397_v10, 0.0  ;;  %v4385_v12 = vpop.f32.mrb[102].mxu1 }
0x2b9d   : > { %4402 = vst [vmem:[%s727_s3] sm:$0xff] %v4400_v11  ;;  %v4398_v52 = vsel %vm1464_vm6, %v4385_v12, %v4394_v46  ;;  %v5218_v13 = vpop.f32.mrb[103].mxu1 }
0x2b9e   : > { %v4401_v25 = vsel %vm4399_vm12, %v4398_v52, 0.0 }
0x2b9f   : > { %4403 = vst [vmem:[%s727_s3 + $0x8] sm:$0xff] %v4401_v25 }
0x2ba0 PF: > { %s6712_s4 = sld [smem:[#allocation8_spill]]  ;;  %s6713_s1 = sld [smem:[#allocation6_spill]] }
0x2ba6   : > { %p5225_p5 = scmp.ge.s32.totalorder %s6712_s4, 2  ;;  %s4445_s14 = sand.u32 1, %s6713_s1  }
0x2ba7   : > { %s4446_s13 = scalar_lea.sflag [#allocation4], %s4445_s14 }
0x2ba8   : > { %p5222_p1 = pnand %p5225_p5, %p5747_p6 }
0x2baa   : > { %5553 = dma.done.wait (!%p5222_p1), %s4446_s13, 16  }
0x2bab   : > { %5555 = vsyncadd (!%p5222_p1), %s4446_s13, 4294967280  ;;  %s6715_s28 = sld [smem:[#allocation10_spill]]  ;;  %s6716_s15 = sld [smem:[#allocation7_spill]] }
0x2bac   : > { %s6717_s3 = sld [smem:[#allocation11_spill]]  ;;  %s6718_s26 = smov %s5562_s27 }
0x2bb1   : > { %p34_p2 = scmp.ge.s32.totalorder %s6715_s28, 4   ;;  %s6719_s27 = smov %s6716_s15 }
0x2bb3   :  { %36 = sbr.rel (!%p34_p2) target bundleno = 20 (0x14), region = 166 }
0x2bba   :  { %4450 = vsyncpa [#allocation4], 1 }
0x2bbb   :  { %4452 = vsyncpa [#allocation4 + $0x1], 1 }

</bundles_post_ra>
